<compile_context>
chip_gen: v5e
topology: v5e:2x2
jax: 0.10.0
libtpu: 0.0.40
codegen_flags: <defaults>
</compile_context>

<pallas_src>
import functools
import math

import jax
import jax.numpy as jnp
from jax import lax
from jax.experimental import pallas as pl
from jax.experimental.pallas import tpu as pltpu

EMBED_DIM = 32
NUM_HEADS = 4

# rows of the packed (D -> 3D) weight stack
I_QKV_NAVI, I_FF1_W1, I_KVQ, I_FF2_W1, I_FF3_W1 = range(5)
# rows of the packed (D -> D) weight stack
I_OUT_NAVI, I_WQ1, I_OUT1, I_OUT2 = range(4)
# rows of the packed (D -> 2D) weight stack
I_QKP, I_KV2 = range(2)
# rows of the packed (3D -> D) weight stack
I_FF1_W2, I_FF2_W2, I_FF3_W2 = range(3)


# ----------------------------- fused Pallas kernel --------------------------

def _fused_forward_kernel(node_ref, prefc_ref, alphas_ref,
                          w_d3_ref, w_dd_ref, w_d2_ref, w_3d_ref, out_ref,
                          *, num_heads, num_agents):
    Bt, S, D = node_ref.shape
    A = num_agents
    C = S - A
    H = num_heads
    hd = D // H
    f32, bf16 = jnp.float32, jnp.bfloat16
    scale = 1.0 / math.sqrt(hd)

    def unpack(ref, idx):
        # packed Linear: weight (din, dout) with the bias appended as last row
        wb = ref[idx]
        din = wb.shape[0] - 1
        return wb[:din, :], wb[din:, :].astype(f32)

    # Hoisted weight loads (VMEM -> vregs once, reused across the batch loop).
    w_qkv, b_qkv = unpack(w_d3_ref, I_QKV_NAVI)
    w_ff1a, b_ff1a = unpack(w_d3_ref, I_FF1_W1)
    w_kvq, b_kvq = unpack(w_d3_ref, I_KVQ)          # [Wk1 | Wv1 | Wq2] on c_out
    w_ff2a, b_ff2a = unpack(w_d3_ref, I_FF2_W1)
    w_ff3a, b_ff3a = unpack(w_d3_ref, I_FF3_W1)
    w_on, b_on = unpack(w_dd_ref, I_OUT_NAVI)
    w_q1, b_q1 = unpack(w_dd_ref, I_WQ1)
    w_o1, b_o1 = unpack(w_dd_ref, I_OUT1)
    w_o2, b_o2 = unpack(w_dd_ref, I_OUT2)
    w_qkp, b_qkp = unpack(w_d2_ref, I_QKP)          # [wq_p | wk_p] on prefer
    w_kv2, b_kv2 = unpack(w_d2_ref, I_KV2)          # [Wk2 | Wv2] on a_out
    w_ff1b, b_ff1b = unpack(w_3d_ref, I_FF1_W2)
    w_ff2b, b_ff2b = unpack(w_3d_ref, I_FF2_W2)
    w_ff3b, b_ff3b = unpack(w_3d_ref, I_FF3_W2)

    a_an1 = alphas_ref[0]
    a_ff1 = alphas_ref[1]
    a_an2 = alphas_ref[2]
    a_ff2 = alphas_ref[3]
    a_an3 = alphas_ref[4]
    a_ff3 = alphas_ref[5]

    def lin(x, w, b):
        # nn.Linear with pre-transposed weight: x @ W^T + b  (bf16 MXU, f32 acc)
        return jnp.dot(x.astype(bf16), w, preferred_element_type=f32) + b

    def ffn(x, w1, b1, w2, b2, alpha):
        # Feed_Forward_Module: x + W2(relu(W1 x)) * alpha
        hmid = jnp.maximum(lin(x, w1, b1), 0.0)
        return x + lin(hmid, w2, b2) * alpha

    def mha(q, k, v, wo, bo):
        # multi-head SDPA fused with the output projection; head concat folded
        # into per-head row blocks of wo (no in-kernel concatenate/transpose).
        # q is already scaled by 1/sqrt(hd).
        acc = bo
        for hh in range(H):
            sl = slice(hh * hd, (hh + 1) * hd)
            qh = q[:, sl].astype(bf16)
            kh = k[:, sl].astype(bf16)
            vh = v[:, sl].astype(bf16)
            s = lax.dot_general(qh, kh, (((1,), (1,)), ((), ())),
                                preferred_element_type=f32)        # (Lq, Lk)
            m = jnp.max(s, axis=-1, keepdims=True)
            p = jnp.exp(s - m)
            l = jnp.sum(p, axis=-1, keepdims=True)
            p = p * pl.reciprocal(l, approx=True)                  # EUP divide
            o = jnp.dot(p.astype(bf16), vh, preferred_element_type=f32)
            acc = acc + jnp.dot(o.astype(bf16), wo[sl, :],
                                preferred_element_type=f32)
        return acc

    def pref_mha(q, k, v, wo, bo):
        # preference attention, faithful to the reference:
        #   scores[a, i, j] = <q[a, i], k[a, j]>   (q pre-scaled)
        #   weights = softmax over i, then SUM over i  (same axis, as in PyTorch)
        acc = bo
        for hh in range(H):
            sl = slice(hh * hd, (hh + 1) * hd)
            qh = q[:, :, sl].astype(bf16)
            kh = k[:, :, sl].astype(bf16)
            vh = v[:, sl].astype(bf16)
            s = lax.dot_general(qh, kh, (((2,), (2,)), ((0,), (0,))),
                                preferred_element_type=f32)        # (A, C, C)
            m = jnp.max(s, axis=1, keepdims=True)
            p = jnp.exp(s - m)
            denom = jnp.sum(p, axis=1, keepdims=True)
            w = jnp.sum(p * pl.reciprocal(denom, approx=True), axis=1)  # (A, C)
            o = jnp.dot(w.astype(bf16), vh, preferred_element_type=f32)  # (A, hd)
            acc = acc + jnp.dot(o.astype(bf16), wo[sl, :],
                                preferred_element_type=f32)
        return acc

    # Folded batches per grid step (short unrolled loop over tiny per-sample work)
    for t in range(Bt):
        node_t = node_ref[t].astype(f32)             # (S, D)
        agent = node_t[:A, :]                        # (A, D)
        cust = node_t[A:, :]                         # (C, D)
        prefc = prefc_ref[t].astype(f32)             # (A*C, D)

        # --- stage 1: customer self-attention (navigation) ---
        qkv = lin(cust, w_qkv, b_qkv)                # (C, 3D)
        q1 = qkv[:, :D] * scale
        k1 = qkv[:, D:2 * D]
        v1 = qkv[:, 2 * D:]
        c_att = mha(q1, k1, v1, w_on, b_on)          # (C, D)
        c_out = cust + c_att * a_an1
        c_out = ffn(c_out, w_ff1a, b_ff1a, w_ff1b, b_ff1b, a_ff1)

        # --- stage 2: preference-biased agent -> customer attention ---
        aq = lin(agent, w_q1, b_q1)                  # (A, D)
        kvq = lin(c_out, w_kvq, b_kvq)               # (C, 3D) = [K1 | V1 | Q2]
        ck1 = kvq[:, :D]
        cv1 = kvq[:, D:2 * D]
        cq2 = kvq[:, 2 * D:]                         # reused in stage 3
        qk_p = lin(prefc, w_qkp, b_qkp)              # (A*C, 2D) = [Qp | Kp]
        pq = qk_p[:, :D].reshape(A, C, D)
        pk = qk_p[:, D:].reshape(A, C, D)
        q_full = (aq[:, None, :] + pq) * scale       # (A, C, D)
        k_full = ck1[None, :, :] + pk                # (A, C, D)
        a_att = pref_mha(q_full, k_full, cv1, w_o1, b_o1)   # (A, D)
        a_out = agent + a_att * a_an2
        a_out = ffn(a_out, w_ff2a, b_ff2a, w_ff2b, b_ff2b, a_ff2)

        # --- stage 3: customer -> agent cross attention ---
        akv = lin(a_out, w_kv2, b_kv2)               # (A, 2D) = [K2 | V2]
        ak = akv[:, :D]
        av = akv[:, D:]
        c_att2 = mha(cq2 * scale, ak, av, w_o2, b_o2)        # (C, D)
        c_out2 = c_out + c_att2 * a_an3
        c_out2 = ffn(c_out2, w_ff3a, b_ff3a, w_ff3b, b_ff3b, a_ff3)

        # merged output: agent rows first, then customer rows (torch.cat(dim=1))
        out_ref[t, :A, :] = a_out.astype(out_ref.dtype)
        out_ref[t, A:, :] = c_out2.astype(out_ref.dtype)


# ----------------------------- wrapper --------------------------------------

def forward(packed, node_emb, prefer_emb, num_heads=NUM_HEADS, batch_tile=None):
    B, S, D = node_emb.shape
    A = prefer_emb.shape[1]
    C = S - A
    assert D % num_heads == 0

    if batch_tile is None:
        # Fold batches per grid step to amortize the ~0.35us per-step overhead,
        # but keep the grid length >= 2 so both v7x TensorCores get a step
        # (dimension_semantics=("parallel",)); on single-TC v5e/v6e this simply
        # halves the serial step count.
        batch_tile = B // 2 if (B % 2 == 0 and B >= 2) else 1
    assert B % batch_tile == 0, (B, batch_tile)
    steps = B // batch_tile

    # Only XLA-side prep: the preference-customer slice+reshape (tiny).  node_emb
    # is passed un-sliced and split inside the kernel with free row slices.
    prefer_cust = prefer_emb[:, :, A:, :].reshape(B, A * C, D)

    kernel = functools.partial(_fused_forward_kernel,
                               num_heads=num_heads, num_agents=A)

    return pl.pallas_call(
        kernel,
        out_shape=jax.ShapeDtypeStruct((B, S, D), node_emb.dtype),
        grid=(steps,),
        in_specs=[
            pl.BlockSpec((batch_tile, S, D), lambda b: (b, 0, 0)),
            pl.BlockSpec((batch_tile, A * C, D), lambda b: (b, 0, 0)),
            pl.BlockSpec(memory_space=pltpu.MemorySpace.SMEM),       # alphas
            pl.BlockSpec(packed['w_d3'].shape, lambda b: (0, 0, 0)),
            pl.BlockSpec(packed['w_dd'].shape, lambda b: (0, 0, 0)),
            pl.BlockSpec(packed['w_d2'].shape, lambda b: (0, 0, 0)),
            pl.BlockSpec(packed['w_3d'].shape, lambda b: (0, 0, 0)),
        ],
        out_specs=pl.BlockSpec((batch_tile, S, D), lambda b: (b, 0, 0)),
        compiler_params=pltpu.CompilerParams(
            dimension_semantics=("parallel",)),
    )(node_emb, prefer_cust, packed['alphas'],
      packed['w_d3'], packed['w_dd'], packed['w_d2'], packed['w_3d'])


# ----------------------------- parameters -----------------------------------

def init_params(key, D=EMBED_DIM):
    """Per-layer Linear params (weight stored transposed as (in, out), bias (out,))."""
    F = 3 * D
    shapes = {
        'wqkv_navi': (D, F), 'out_navi': (D, D),
        'ff1_w1': (D, F), 'ff1_w2': (F, D),
        'wq1': (D, D), 'wk1': (D, D), 'wv1': (D, D),
        'wqp': (D, D), 'wkp': (D, D), 'out1': (D, D),
        'ff2_w1': (D, F), 'ff2_w2': (F, D),
        'wq2': (D, D), 'wk2': (D, D), 'wv2': (D, D), 'out2': (D, D),
        'ff3_w1': (D, F), 'ff3_w2': (F, D),
    }
    keys = jax.random.split(key, 2 * len(shapes))
    p = {}
    for i, (name, (din, dout)) in enumerate(shapes.items()):
        p[name + '_w'] = 0.05 * jax.random.normal(keys[2 * i], (din, dout), jnp.float32)
        p[name + '_b'] = 0.05 * jax.random.normal(keys[2 * i + 1], (dout,), jnp.float32)
    # NOTE: the PyTorch module initializes every alpha to 0; we use 0.3 so the
    # attention/FFN branches actually influence this synthetic smoke test.
    # order: [addnorm1, ff1, addnorm2, ff2, addnorm3, ff3]
    p['alphas'] = jnp.full((6,), 0.3, jnp.float32)
    return p


def pack_params(p, D=EMBED_DIM):
    """Packs the ~34 Linear tensors into 4 stacked bf16 operands (grouped by
    shape, bias appended as a trailing row of each weight, shared-input
    projections fused column-wise) + the alpha scalars."""
    def wb(w, b):
        return jnp.concatenate([w, b.reshape(1, -1)], axis=0)

    def fuse(*names):
        w = jnp.concatenate([p[n + '_w'] for n in names], axis=1)
        b = jnp.concatenate([p[n + '_b'] for n in names], axis=0)
        return wb(w, b)

    w_d3 = jnp.stack([
        wb(p['wqkv_navi_w'], p['wqkv_navi_b']),     # I_QKV_NAVI
        wb(p['ff1_w1_w'], p['ff1_w1_b']),           # I_FF1_W1
        fuse('wk1', 'wv1', 'wq2'),                  # I_KVQ   (all applied to c_out)
        wb(p['ff2_w1_w'], p['ff2_w1_b']),           # I_FF2_W1
        wb(p['ff3_w1_w'], p['ff3_w1_b']),           # I_FF3_W1
    ]).astype(jnp.bfloat16)
    w_dd = jnp.stack([
        wb(p['out_navi_w'], p['out_navi_b']),       # I_OUT_NAVI
        wb(p['wq1_w'], p['wq1_b']),                 # I_WQ1
        wb(p['out1_w'], p['out1_b']),               # I_OUT1
        wb(p['out2_w'], p['out2_b']),               # I_OUT2
    ]).astype(jnp.bfloat16)
    w_d2 = jnp.stack([
        fuse('wqp', 'wkp'),                         # I_QKP  (applied to prefer)
        fuse('wk2', 'wv2'),                         # I_KV2  (applied to a_out)
    ]).astype(jnp.bfloat16)
    w_3d = jnp.stack([
        wb(p['ff1_w2_w'], p['ff1_w2_b']),           # I_FF1_W2
        wb(p['ff2_w2_w'], p['ff2_w2_b']),           # I_FF2_W2
        wb(p['ff3_w2_w'], p['ff3_w2_b']),           # I_FF3_W2
    ]).astype(jnp.bfloat16)
    return {'w_d3': w_d3, 'w_dd': w_dd, 'w_d2': w_d2, 'w_3d': w_3d,
            'alphas': p['alphas']}


# ----------------------------- pure-JAX reference ---------------------------

def forward_reference(params, node_emb, prefer_emb, num_heads=NUM_HEADS):
    """Direct f32 translation of the PyTorch forward (no Pallas), for validation."""
    B, S, D = node_emb.shape
    A = prefer_emb.shape[1]
    C = S - A
    H = num_heads
    hd = D // H
    al = params['alphas']
    hi = lax.Precision.HIGHEST

    def lin(x, name):
        return jnp.dot(x, params[name + '_w'], precision=hi) + params[name + '_b']

    def split_heads(x):    # (..., S, D) -> (..., H, S, hd)
        return jnp.moveaxis(x.reshape(*x.shape[:-1], H, hd), -2, -3)

    def merge_heads(x):    # (..., H, S, hd) -> (..., S, D)
        x = jnp.moveaxis(x, -3, -2)
        return x.reshape(*x.shape[:-2], H * hd)

    def sdpa(q, k, v):
        s = jnp.einsum('...qd,...kd->...qk', q, k, precision=hi) / math.sqrt(hd)
        p = jax.nn.softmax(s, axis=-1)
        return jnp.einsum('...qk,...kd->...qd', p, v, precision=hi)

    agent = node_emb[:, :A]
    cust = node_emb[:, A:]

    qkv = lin(cust, 'wqkv_navi')
    cq, ck, cv = jnp.split(qkv, 3, axis=-1)
    att = merge_heads(sdpa(split_heads(cq), split_heads(ck), split_heads(cv)))
    c_out = cust + lin(att, 'out_navi') * al[0]
    c_out = c_out + lin(jax.nn.relu(lin(c_out, 'ff1_w1')), 'ff1_w2') * al[1]

    aq = lin(agent, 'wq1')
    ck1 = lin(c_out, 'wk1')
    cv1 = lin(c_out, 'wv1')
    pref_c = prefer_emb[:, :, A:, :]
    pq = lin(pref_c, 'wqp')
    pk = lin(pref_c, 'wkp')
    q_full = aq[:, :, None, :] + pq                   # (B, A, C, D)
    k_full = ck1[:, None, :, :] + pk                  # (B, A, C, D)
    qh = jnp.moveaxis(q_full.reshape(B, A, C, H, hd), 3, 1)   # (B, H, A, C, hd)
    kh = jnp.moveaxis(k_full.reshape(B, A, C, H, hd), 3, 1)
    vh = jnp.moveaxis(cv1.reshape(B, C, H, hd), 2, 1)         # (B, H, C, hd)
    scores = jnp.einsum('bhaid,bhajd->bhaij', qh, kh, precision=hi) / math.sqrt(hd)
    w = jax.nn.softmax(scores, axis=3).sum(axis=3)            # (B, H, A, C)
    ao = merge_heads(jnp.einsum('bhac,bhcd->bhad', w, vh, precision=hi))
    a_out = agent + lin(ao, 'out1') * al[2]
    a_out = a_out + lin(jax.nn.relu(lin(a_out, 'ff2_w1')), 'ff2_w2') * al[3]

    cq2 = lin(c_out, 'wq2')
    ak = lin(a_out, 'wk2')
    av = lin(a_out, 'wv2')
    att2 = merge_heads(sdpa(split_heads(cq2), split_heads(ak), split_heads(av)))
    c_out2 = c_out + lin(att2, 'out2') * al[4]
    c_out2 = c_out2 + lin(jax.nn.relu(lin(c_out2, 'ff3_w1')), 'ff3_w2') * al[5]
    return jnp.concatenate([a_out, c_out2], axis=1)


# ----------------------------- main ------------------------------------------

if __name__ == "__main__":
    key = jax.random.PRNGKey(0)
    k_params, k_node, k_pref = jax.random.split(key, 3)
    B, A, S, D = 4, 3, 11, EMBED_DIM          # 4 samples -> 2 grid steps x 2 folded batches
    params = init_params(k_params, D)
    packed = pack_params(params, D)
    node_emb = jax.random.normal(k_node, (B, S, D), jnp.float32)
    prefer_emb = jax.random.normal(k_pref, (B, A, S, D), jnp.float32)

    out = jax.jit(forward)(packed, node_emb, prefer_emb)
    out = jax.block_until_ready(out)

    assert out.shape == (B, S, D), out.shape
    assert bool(jnp.all(jnp.isfinite(out)))

    # bf16 MXU inputs + approx reciprocal drift slightly from the f32 reference,
    # well inside this tolerance.
    ref = forward_reference(params, node_emb, prefer_emb)
    max_diff = float(jnp.max(jnp.abs(out - ref)))
    assert bool(jnp.allclose(out, ref, atol=1e-2, rtol=1e-2)), max_diff

    print("KERNEL_OK")
</pallas_src>

<mosaic_0001>
module attributes {stable_mosaic.version = 11 : i64} {
  func.func @_fused_forward_kernel(%arg0: i32, %arg1: memref<2x11x32xf32, #tpu.memory_space<vmem>>, %arg2: memref<2x24x32xf32, #tpu.memory_space<vmem>>, %arg3: memref<6xf32, #tpu.memory_space<smem>>, %arg4: memref<5x33x96xbf16, #tpu.memory_space<vmem>>, %arg5: memref<4x33x32xbf16, #tpu.memory_space<vmem>>, %arg6: memref<2x33x64xbf16, #tpu.memory_space<vmem>>, %arg7: memref<3x97x32xbf16, #tpu.memory_space<vmem>>, %arg8: memref<2x11x32xf32, #tpu.memory_space<vmem>>) attributes {dimension_semantics = [#tpu.dimension_semantics<parallel>], iteration_bounds = array<i64: 2>, scalar_prefetch = 0 : i64, scratch_operands = 0 : i64, tpu.core_type = #tpu.core_type<tc>, window_params = [{transform_indices = @transform_0, window_bounds = array<i64: 2, 11, 32>}, {transform_indices = @transform_1, window_bounds = array<i64: 2, 24, 32>}, {transform_indices = @transform_2, window_bounds = array<i64: 6>}, {pipeline_mode = #tpu.pipeline_mode<synchronous>, transform_indices = @transform_3, window_bounds = array<i64: 5, 33, 96>}, {pipeline_mode = #tpu.pipeline_mode<synchronous>, transform_indices = @transform_4, window_bounds = array<i64: 4, 33, 32>}, {pipeline_mode = #tpu.pipeline_mode<synchronous>, transform_indices = @transform_5, window_bounds = array<i64: 2, 33, 64>}, {pipeline_mode = #tpu.pipeline_mode<synchronous>, transform_indices = @transform_6, window_bounds = array<i64: 3, 97, 32>}, {transform_indices = @transform_7, window_bounds = array<i64: 2, 11, 32>}]} {
    %c0 = arith.constant 0 : index
    %c0_0 = arith.constant 0 : index
    %c0_1 = arith.constant 0 : index
    %0 = vector.load %arg4[%c0, %c0_0, %c0_1] : memref<5x33x96xbf16, #tpu.memory_space<vmem>>, vector<1x33x96xbf16>
    %1 = vector.shape_cast %0 : vector<1x33x96xbf16> to vector<33x96xbf16>
    %2 = vector.extract_strided_slice %1 {offsets = [0, 0], sizes = [32, 96], strides = [1, 1]} : vector<33x96xbf16> to vector<32x96xbf16>
    %3 = vector.extract_strided_slice %1 {offsets = [32, 0], sizes = [1, 96], strides = [1, 1]} : vector<33x96xbf16> to vector<1x96xbf16>
    %4 = arith.extf %3 : vector<1x96xbf16> to vector<1x96xf32>
    %c1 = arith.constant 1 : index
    %c0_2 = arith.constant 0 : index
    %c0_3 = arith.constant 0 : index
    %5 = vector.load %arg4[%c1, %c0_2, %c0_3] : memref<5x33x96xbf16, #tpu.memory_space<vmem>>, vector<1x33x96xbf16>
    %6 = vector.shape_cast %5 : vector<1x33x96xbf16> to vector<33x96xbf16>
    %7 = vector.extract_strided_slice %6 {offsets = [0, 0], sizes = [32, 96], strides = [1, 1]} : vector<33x96xbf16> to vector<32x96xbf16>
    %8 = vector.extract_strided_slice %6 {offsets = [32, 0], sizes = [1, 96], strides = [1, 1]} : vector<33x96xbf16> to vector<1x96xbf16>
    %9 = arith.extf %8 : vector<1x96xbf16> to vector<1x96xf32>
    %c2 = arith.constant 2 : index
    %c0_4 = arith.constant 0 : index
    %c0_5 = arith.constant 0 : index
    %10 = vector.load %arg4[%c2, %c0_4, %c0_5] : memref<5x33x96xbf16, #tpu.memory_space<vmem>>, vector<1x33x96xbf16>
    %11 = vector.shape_cast %10 : vector<1x33x96xbf16> to vector<33x96xbf16>
    %12 = vector.extract_strided_slice %11 {offsets = [0, 0], sizes = [32, 96], strides = [1, 1]} : vector<33x96xbf16> to vector<32x96xbf16>
    %13 = vector.extract_strided_slice %11 {offsets = [32, 0], sizes = [1, 96], strides = [1, 1]} : vector<33x96xbf16> to vector<1x96xbf16>
    %14 = arith.extf %13 : vector<1x96xbf16> to vector<1x96xf32>
    %c3 = arith.constant 3 : index
    %c0_6 = arith.constant 0 : index
    %c0_7 = arith.constant 0 : index
    %15 = vector.load %arg4[%c3, %c0_6, %c0_7] : memref<5x33x96xbf16, #tpu.memory_space<vmem>>, vector<1x33x96xbf16>
    %16 = vector.shape_cast %15 : vector<1x33x96xbf16> to vector<33x96xbf16>
    %17 = vector.extract_strided_slice %16 {offsets = [0, 0], sizes = [32, 96], strides = [1, 1]} : vector<33x96xbf16> to vector<32x96xbf16>
    %18 = vector.extract_strided_slice %16 {offsets = [32, 0], sizes = [1, 96], strides = [1, 1]} : vector<33x96xbf16> to vector<1x96xbf16>
    %19 = arith.extf %18 : vector<1x96xbf16> to vector<1x96xf32>
    %c4 = arith.constant 4 : index
    %c0_8 = arith.constant 0 : index
    %c0_9 = arith.constant 0 : index
    %20 = vector.load %arg4[%c4, %c0_8, %c0_9] : memref<5x33x96xbf16, #tpu.memory_space<vmem>>, vector<1x33x96xbf16>
    %21 = vector.shape_cast %20 : vector<1x33x96xbf16> to vector<33x96xbf16>
    %22 = vector.extract_strided_slice %21 {offsets = [0, 0], sizes = [32, 96], strides = [1, 1]} : vector<33x96xbf16> to vector<32x96xbf16>
    %23 = vector.extract_strided_slice %21 {offsets = [32, 0], sizes = [1, 96], strides = [1, 1]} : vector<33x96xbf16> to vector<1x96xbf16>
    %24 = arith.extf %23 : vector<1x96xbf16> to vector<1x96xf32>
    %c0_10 = arith.constant 0 : index
    %c0_11 = arith.constant 0 : index
    %c0_12 = arith.constant 0 : index
    %25 = vector.load %arg5[%c0_10, %c0_11, %c0_12] : memref<4x33x32xbf16, #tpu.memory_space<vmem>>, vector<1x33x32xbf16>
    %26 = vector.shape_cast %25 : vector<1x33x32xbf16> to vector<33x32xbf16>
    %27 = vector.extract_strided_slice %26 {offsets = [0, 0], sizes = [32, 32], strides = [1, 1]} : vector<33x32xbf16> to vector<32x32xbf16>
    %28 = vector.extract_strided_slice %26 {offsets = [32, 0], sizes = [1, 32], strides = [1, 1]} : vector<33x32xbf16> to vector<1x32xbf16>
    %29 = arith.extf %28 : vector<1x32xbf16> to vector<1x32xf32>
    %c1_13 = arith.constant 1 : index
    %c0_14 = arith.constant 0 : index
    %c0_15 = arith.constant 0 : index
    %30 = vector.load %arg5[%c1_13, %c0_14, %c0_15] : memref<4x33x32xbf16, #tpu.memory_space<vmem>>, vector<1x33x32xbf16>
    %31 = vector.shape_cast %30 : vector<1x33x32xbf16> to vector<33x32xbf16>
    %32 = vector.extract_strided_slice %31 {offsets = [0, 0], sizes = [32, 32], strides = [1, 1]} : vector<33x32xbf16> to vector<32x32xbf16>
    %33 = vector.extract_strided_slice %31 {offsets = [32, 0], sizes = [1, 32], strides = [1, 1]} : vector<33x32xbf16> to vector<1x32xbf16>
    %34 = arith.extf %33 : vector<1x32xbf16> to vector<1x32xf32>
    %c2_16 = arith.constant 2 : index
    %c0_17 = arith.constant 0 : index
    %c0_18 = arith.constant 0 : index
    %35 = vector.load %arg5[%c2_16, %c0_17, %c0_18] : memref<4x33x32xbf16, #tpu.memory_space<vmem>>, vector<1x33x32xbf16>
    %36 = vector.shape_cast %35 : vector<1x33x32xbf16> to vector<33x32xbf16>
    %37 = vector.extract_strided_slice %36 {offsets = [0, 0], sizes = [32, 32], strides = [1, 1]} : vector<33x32xbf16> to vector<32x32xbf16>
    %38 = vector.extract_strided_slice %36 {offsets = [32, 0], sizes = [1, 32], strides = [1, 1]} : vector<33x32xbf16> to vector<1x32xbf16>
    %39 = arith.extf %38 : vector<1x32xbf16> to vector<1x32xf32>
    %c3_19 = arith.constant 3 : index
    %c0_20 = arith.constant 0 : index
    %c0_21 = arith.constant 0 : index
    %40 = vector.load %arg5[%c3_19, %c0_20, %c0_21] : memref<4x33x32xbf16, #tpu.memory_space<vmem>>, vector<1x33x32xbf16>
    %41 = vector.shape_cast %40 : vector<1x33x32xbf16> to vector<33x32xbf16>
    %42 = vector.extract_strided_slice %41 {offsets = [0, 0], sizes = [32, 32], strides = [1, 1]} : vector<33x32xbf16> to vector<32x32xbf16>
    %43 = vector.extract_strided_slice %41 {offsets = [32, 0], sizes = [1, 32], strides = [1, 1]} : vector<33x32xbf16> to vector<1x32xbf16>
    %44 = arith.extf %43 : vector<1x32xbf16> to vector<1x32xf32>
    %c0_22 = arith.constant 0 : index
    %c0_23 = arith.constant 0 : index
    %c0_24 = arith.constant 0 : index
    %45 = vector.load %arg6[%c0_22, %c0_23, %c0_24] : memref<2x33x64xbf16, #tpu.memory_space<vmem>>, vector<1x33x64xbf16>
    %46 = vector.shape_cast %45 : vector<1x33x64xbf16> to vector<33x64xbf16>
    %47 = vector.extract_strided_slice %46 {offsets = [0, 0], sizes = [32, 64], strides = [1, 1]} : vector<33x64xbf16> to vector<32x64xbf16>
    %48 = vector.extract_strided_slice %46 {offsets = [32, 0], sizes = [1, 64], strides = [1, 1]} : vector<33x64xbf16> to vector<1x64xbf16>
    %49 = arith.extf %48 : vector<1x64xbf16> to vector<1x64xf32>
    %c1_25 = arith.constant 1 : index
    %c0_26 = arith.constant 0 : index
    %c0_27 = arith.constant 0 : index
    %50 = vector.load %arg6[%c1_25, %c0_26, %c0_27] : memref<2x33x64xbf16, #tpu.memory_space<vmem>>, vector<1x33x64xbf16>
    %51 = vector.shape_cast %50 : vector<1x33x64xbf16> to vector<33x64xbf16>
    %52 = vector.extract_strided_slice %51 {offsets = [0, 0], sizes = [32, 64], strides = [1, 1]} : vector<33x64xbf16> to vector<32x64xbf16>
    %53 = vector.extract_strided_slice %51 {offsets = [32, 0], sizes = [1, 64], strides = [1, 1]} : vector<33x64xbf16> to vector<1x64xbf16>
    %54 = arith.extf %53 : vector<1x64xbf16> to vector<1x64xf32>
    %c0_28 = arith.constant 0 : index
    %c0_29 = arith.constant 0 : index
    %c0_30 = arith.constant 0 : index
    %55 = vector.load %arg7[%c0_28, %c0_29, %c0_30] : memref<3x97x32xbf16, #tpu.memory_space<vmem>>, vector<1x97x32xbf16>
    %56 = vector.shape_cast %55 : vector<1x97x32xbf16> to vector<97x32xbf16>
    %57 = vector.extract_strided_slice %56 {offsets = [0, 0], sizes = [96, 32], strides = [1, 1]} : vector<97x32xbf16> to vector<96x32xbf16>
    %58 = vector.extract_strided_slice %56 {offsets = [96, 0], sizes = [1, 32], strides = [1, 1]} : vector<97x32xbf16> to vector<1x32xbf16>
    %59 = arith.extf %58 : vector<1x32xbf16> to vector<1x32xf32>
    %c1_31 = arith.constant 1 : index
    %c0_32 = arith.constant 0 : index
    %c0_33 = arith.constant 0 : index
    %60 = vector.load %arg7[%c1_31, %c0_32, %c0_33] : memref<3x97x32xbf16, #tpu.memory_space<vmem>>, vector<1x97x32xbf16>
    %61 = vector.shape_cast %60 : vector<1x97x32xbf16> to vector<97x32xbf16>
    %62 = vector.extract_strided_slice %61 {offsets = [0, 0], sizes = [96, 32], strides = [1, 1]} : vector<97x32xbf16> to vector<96x32xbf16>
    %63 = vector.extract_strided_slice %61 {offsets = [96, 0], sizes = [1, 32], strides = [1, 1]} : vector<97x32xbf16> to vector<1x32xbf16>
    %64 = arith.extf %63 : vector<1x32xbf16> to vector<1x32xf32>
    %c2_34 = arith.constant 2 : index
    %c0_35 = arith.constant 0 : index
    %c0_36 = arith.constant 0 : index
    %65 = vector.load %arg7[%c2_34, %c0_35, %c0_36] : memref<3x97x32xbf16, #tpu.memory_space<vmem>>, vector<1x97x32xbf16>
    %66 = vector.shape_cast %65 : vector<1x97x32xbf16> to vector<97x32xbf16>
    %67 = vector.extract_strided_slice %66 {offsets = [0, 0], sizes = [96, 32], strides = [1, 1]} : vector<97x32xbf16> to vector<96x32xbf16>
    %68 = vector.extract_strided_slice %66 {offsets = [96, 0], sizes = [1, 32], strides = [1, 1]} : vector<97x32xbf16> to vector<1x32xbf16>
    %69 = arith.extf %68 : vector<1x32xbf16> to vector<1x32xf32>
    %c0_37 = arith.constant 0 : index
    %70 = memref.load %arg3[%c0_37] : memref<6xf32, #tpu.memory_space<smem>>
    %c1_38 = arith.constant 1 : index
    %71 = memref.load %arg3[%c1_38] : memref<6xf32, #tpu.memory_space<smem>>
    %c2_39 = arith.constant 2 : index
    %72 = memref.load %arg3[%c2_39] : memref<6xf32, #tpu.memory_space<smem>>
    %c3_40 = arith.constant 3 : index
    %73 = memref.load %arg3[%c3_40] : memref<6xf32, #tpu.memory_space<smem>>
    %c4_41 = arith.constant 4 : index
    %74 = memref.load %arg3[%c4_41] : memref<6xf32, #tpu.memory_space<smem>>
    %c5 = arith.constant 5 : index
    %75 = memref.load %arg3[%c5] : memref<6xf32, #tpu.memory_space<smem>>
    %c0_42 = arith.constant 0 : index
    %c0_43 = arith.constant 0 : index
    %c0_44 = arith.constant 0 : index
    %76 = vector.load %arg1[%c0_42, %c0_43, %c0_44] : memref<2x11x32xf32, #tpu.memory_space<vmem>>, vector<1x11x32xf32>
    %77 = vector.shape_cast %76 : vector<1x11x32xf32> to vector<11x32xf32>
    %78 = vector.extract_strided_slice %77 {offsets = [0, 0], sizes = [3, 32], strides = [1, 1]} : vector<11x32xf32> to vector<3x32xf32>
    %79 = vector.extract_strided_slice %77 {offsets = [3, 0], sizes = [8, 32], strides = [1, 1]} : vector<11x32xf32> to vector<8x32xf32>
    %c0_45 = arith.constant 0 : index
    %c0_46 = arith.constant 0 : index
    %c0_47 = arith.constant 0 : index
    %80 = vector.load %arg2[%c0_45, %c0_46, %c0_47] : memref<2x24x32xf32, #tpu.memory_space<vmem>>, vector<1x24x32xf32>
    %81 = vector.shape_cast %80 : vector<1x24x32xf32> to vector<24x32xf32>
    %82 = arith.truncf %79 : vector<8x32xf32> to vector<8x32xbf16>
    %cst = arith.constant dense<0.000000e+00> : vector<8x96xf32>
    %83 = tpu.matmul %82, %2, %cst {dimension_numbers = #tpu.dot_dimension_numbers<[1], [0], [0], [1], [0, 0, 1, 1], [], []>} : vector<8x32xbf16>, vector<32x96xbf16>, vector<8x96xf32> -> vector<8x96xf32>
    %84 = vector.broadcast %4 : vector<1x96xf32> to vector<8x96xf32>
    %85 = arith.addf %83, %84 : vector<8x96xf32>
    %86 = vector.extract_strided_slice %85 {offsets = [0, 0], sizes = [8, 32], strides = [1, 1]} : vector<8x96xf32> to vector<8x32xf32>
    %cst_48 = arith.constant 0.353553385 : f32
    %87 = vector.broadcast %cst_48 : f32 to vector<8x32xf32>
    %88 = arith.mulf %86, %87 : vector<8x32xf32>
    %89 = vector.extract_strided_slice %85 {offsets = [0, 32], sizes = [8, 32], strides = [1, 1]} : vector<8x96xf32> to vector<8x32xf32>
    %90 = vector.extract_strided_slice %85 {offsets = [0, 64], sizes = [8, 32], strides = [1, 1]} : vector<8x96xf32> to vector<8x32xf32>
    %91 = vector.extract_strided_slice %88 {offsets = [0, 0], sizes = [8, 8], strides = [1, 1]} : vector<8x32xf32> to vector<8x8xf32>
    %92 = arith.truncf %91 : vector<8x8xf32> to vector<8x8xbf16>
    %93 = vector.extract_strided_slice %89 {offsets = [0, 0], sizes = [8, 8], strides = [1, 1]} : vector<8x32xf32> to vector<8x8xf32>
    %94 = arith.truncf %93 : vector<8x8xf32> to vector<8x8xbf16>
    %95 = vector.extract_strided_slice %90 {offsets = [0, 0], sizes = [8, 8], strides = [1, 1]} : vector<8x32xf32> to vector<8x8xf32>
    %96 = arith.truncf %95 : vector<8x8xf32> to vector<8x8xbf16>
    %cst_49 = arith.constant dense<0.000000e+00> : vector<8x8xf32>
    %97 = tpu.matmul %92, %94, %cst_49 {dimension_numbers = #tpu.dot_dimension_numbers<[1], [1], [0], [0], [0, 0, 1, 0], [], []>} : vector<8x8xbf16>, vector<8x8xbf16>, vector<8x8xf32> -> vector<8x8xf32>
    %cst_50 = arith.constant dense<0xFF800000> : vector<8xf32>
    %98 = vector.multi_reduction <maximumf>, %97, %cst_50 [1] : vector<8x8xf32> to vector<8xf32>
    %99 = vector.shape_cast %98 : vector<8xf32> to vector<8x1xf32>
    %100 = vector.broadcast %99 : vector<8x1xf32> to vector<8x8xf32>
    %101 = arith.subf %97, %100 : vector<8x8xf32>
    %102 = math.exp %101 : vector<8x8xf32>
    %cst_51 = arith.constant dense<0.000000e+00> : vector<8xf32>
    %103 = vector.multi_reduction <add>, %102, %cst_51 [1] : vector<8x8xf32> to vector<8xf32>
    %104 = vector.shape_cast %103 : vector<8xf32> to vector<8x1xf32>
    %105 = tpu.reciprocal %104 {approx = true} : vector<8x1xf32> -> vector<8x1xf32>
    %106 = vector.broadcast %105 : vector<8x1xf32> to vector<8x8xf32>
    %107 = arith.mulf %102, %106 : vector<8x8xf32>
    %108 = arith.truncf %107 : vector<8x8xf32> to vector<8x8xbf16>
    %cst_52 = arith.constant dense<0.000000e+00> : vector<8x8xf32>
    %109 = tpu.matmul %108, %96, %cst_52 {dimension_numbers = #tpu.dot_dimension_numbers<[1], [0], [0], [1], [0, 0, 1, 1], [], []>} : vector<8x8xbf16>, vector<8x8xbf16>, vector<8x8xf32> -> vector<8x8xf32>
    %110 = arith.truncf %109 : vector<8x8xf32> to vector<8x8xbf16>
    %111 = vector.extract_strided_slice %27 {offsets = [0, 0], sizes = [8, 32], strides = [1, 1]} : vector<32x32xbf16> to vector<8x32xbf16>
    %cst_53 = arith.constant dense<0.000000e+00> : vector<8x32xf32>
    %112 = tpu.matmul %110, %111, %cst_53 {dimension_numbers = #tpu.dot_dimension_numbers<[1], [0], [0], [1], [0, 0, 1, 1], [], []>} : vector<8x8xbf16>, vector<8x32xbf16>, vector<8x32xf32> -> vector<8x32xf32>
    %113 = vector.broadcast %29 : vector<1x32xf32> to vector<8x32xf32>
    %114 = arith.addf %113, %112 : vector<8x32xf32>
    %115 = vector.extract_strided_slice %88 {offsets = [0, 8], sizes = [8, 8], strides = [1, 1]} : vector<8x32xf32> to vector<8x8xf32>
    %116 = arith.truncf %115 : vector<8x8xf32> to vector<8x8xbf16>
    %117 = vector.extract_strided_slice %89 {offsets = [0, 8], sizes = [8, 8], strides = [1, 1]} : vector<8x32xf32> to vector<8x8xf32>
    %118 = arith.truncf %117 : vector<8x8xf32> to vector<8x8xbf16>
    %119 = vector.extract_strided_slice %90 {offsets = [0, 8], sizes = [8, 8], strides = [1, 1]} : vector<8x32xf32> to vector<8x8xf32>
    %120 = arith.truncf %119 : vector<8x8xf32> to vector<8x8xbf16>
    %cst_54 = arith.constant dense<0.000000e+00> : vector<8x8xf32>
    %121 = tpu.matmul %116, %118, %cst_54 {dimension_numbers = #tpu.dot_dimension_numbers<[1], [1], [0], [0], [0, 0, 1, 0], [], []>} : vector<8x8xbf16>, vector<8x8xbf16>, vector<8x8xf32> -> vector<8x8xf32>
    %cst_55 = arith.constant dense<0xFF800000> : vector<8xf32>
    %122 = vector.multi_reduction <maximumf>, %121, %cst_55 [1] : vector<8x8xf32> to vector<8xf32>
    %123 = vector.shape_cast %122 : vector<8xf32> to vector<8x1xf32>
    %124 = vector.broadcast %123 : vector<8x1xf32> to vector<8x8xf32>
    %125 = arith.subf %121, %124 : vector<8x8xf32>
    %126 = math.exp %125 : vector<8x8xf32>
    %cst_56 = arith.constant dense<0.000000e+00> : vector<8xf32>
    %127 = vector.multi_reduction <add>, %126, %cst_56 [1] : vector<8x8xf32> to vector<8xf32>
    %128 = vector.shape_cast %127 : vector<8xf32> to vector<8x1xf32>
    %129 = tpu.reciprocal %128 {approx = true} : vector<8x1xf32> -> vector<8x1xf32>
    %130 = vector.broadcast %129 : vector<8x1xf32> to vector<8x8xf32>
    %131 = arith.mulf %126, %130 : vector<8x8xf32>
    %132 = arith.truncf %131 : vector<8x8xf32> to vector<8x8xbf16>
    %cst_57 = arith.constant dense<0.000000e+00> : vector<8x8xf32>
    %133 = tpu.matmul %132, %120, %cst_57 {dimension_numbers = #tpu.dot_dimension_numbers<[1], [0], [0], [1], [0, 0, 1, 1], [], []>} : vector<8x8xbf16>, vector<8x8xbf16>, vector<8x8xf32> -> vector<8x8xf32>
    %134 = arith.truncf %133 : vector<8x8xf32> to vector<8x8xbf16>
    %135 = vector.extract_strided_slice %27 {offsets = [8, 0], sizes = [8, 32], strides = [1, 1]} : vector<32x32xbf16> to vector<8x32xbf16>
    %cst_58 = arith.constant dense<0.000000e+00> : vector<8x32xf32>
    %136 = tpu.matmul %134, %135, %cst_58 {dimension_numbers = #tpu.dot_dimension_numbers<[1], [0], [0], [1], [0, 0, 1, 1], [], []>} : vector<8x8xbf16>, vector<8x32xbf16>, vector<8x32xf32> -> vector<8x32xf32>
    %137 = arith.addf %114, %136 : vector<8x32xf32>
    %138 = vector.extract_strided_slice %88 {offsets = [0, 16], sizes = [8, 8], strides = [1, 1]} : vector<8x32xf32> to vector<8x8xf32>
    %139 = arith.truncf %138 : vector<8x8xf32> to vector<8x8xbf16>
    %140 = vector.extract_strided_slice %89 {offsets = [0, 16], sizes = [8, 8], strides = [1, 1]} : vector<8x32xf32> to vector<8x8xf32>
    %141 = arith.truncf %140 : vector<8x8xf32> to vector<8x8xbf16>
    %142 = vector.extract_strided_slice %90 {offsets = [0, 16], sizes = [8, 8], strides = [1, 1]} : vector<8x32xf32> to vector<8x8xf32>
    %143 = arith.truncf %142 : vector<8x8xf32> to vector<8x8xbf16>
    %cst_59 = arith.constant dense<0.000000e+00> : vector<8x8xf32>
    %144 = tpu.matmul %139, %141, %cst_59 {dimension_numbers = #tpu.dot_dimension_numbers<[1], [1], [0], [0], [0, 0, 1, 0], [], []>} : vector<8x8xbf16>, vector<8x8xbf16>, vector<8x8xf32> -> vector<8x8xf32>
    %cst_60 = arith.constant dense<0xFF800000> : vector<8xf32>
    %145 = vector.multi_reduction <maximumf>, %144, %cst_60 [1] : vector<8x8xf32> to vector<8xf32>
    %146 = vector.shape_cast %145 : vector<8xf32> to vector<8x1xf32>
    %147 = vector.broadcast %146 : vector<8x1xf32> to vector<8x8xf32>
    %148 = arith.subf %144, %147 : vector<8x8xf32>
    %149 = math.exp %148 : vector<8x8xf32>
    %cst_61 = arith.constant dense<0.000000e+00> : vector<8xf32>
    %150 = vector.multi_reduction <add>, %149, %cst_61 [1] : vector<8x8xf32> to vector<8xf32>
    %151 = vector.shape_cast %150 : vector<8xf32> to vector<8x1xf32>
    %152 = tpu.reciprocal %151 {approx = true} : vector<8x1xf32> -> vector<8x1xf32>
    %153 = vector.broadcast %152 : vector<8x1xf32> to vector<8x8xf32>
    %154 = arith.mulf %149, %153 : vector<8x8xf32>
    %155 = arith.truncf %154 : vector<8x8xf32> to vector<8x8xbf16>
    %cst_62 = arith.constant dense<0.000000e+00> : vector<8x8xf32>
    %156 = tpu.matmul %155, %143, %cst_62 {dimension_numbers = #tpu.dot_dimension_numbers<[1], [0], [0], [1], [0, 0, 1, 1], [], []>} : vector<8x8xbf16>, vector<8x8xbf16>, vector<8x8xf32> -> vector<8x8xf32>
    %157 = arith.truncf %156 : vector<8x8xf32> to vector<8x8xbf16>
    %158 = vector.extract_strided_slice %27 {offsets = [16, 0], sizes = [8, 32], strides = [1, 1]} : vector<32x32xbf16> to vector<8x32xbf16>
    %cst_63 = arith.constant dense<0.000000e+00> : vector<8x32xf32>
    %159 = tpu.matmul %157, %158, %cst_63 {dimension_numbers = #tpu.dot_dimension_numbers<[1], [0], [0], [1], [0, 0, 1, 1], [], []>} : vector<8x8xbf16>, vector<8x32xbf16>, vector<8x32xf32> -> vector<8x32xf32>
    %160 = arith.addf %137, %159 : vector<8x32xf32>
    %161 = vector.extract_strided_slice %88 {offsets = [0, 24], sizes = [8, 8], strides = [1, 1]} : vector<8x32xf32> to vector<8x8xf32>
    %162 = arith.truncf %161 : vector<8x8xf32> to vector<8x8xbf16>
    %163 = vector.extract_strided_slice %89 {offsets = [0, 24], sizes = [8, 8], strides = [1, 1]} : vector<8x32xf32> to vector<8x8xf32>
    %164 = arith.truncf %163 : vector<8x8xf32> to vector<8x8xbf16>
    %165 = vector.extract_strided_slice %90 {offsets = [0, 24], sizes = [8, 8], strides = [1, 1]} : vector<8x32xf32> to vector<8x8xf32>
    %166 = arith.truncf %165 : vector<8x8xf32> to vector<8x8xbf16>
    %cst_64 = arith.constant dense<0.000000e+00> : vector<8x8xf32>
    %167 = tpu.matmul %162, %164, %cst_64 {dimension_numbers = #tpu.dot_dimension_numbers<[1], [1], [0], [0], [0, 0, 1, 0], [], []>} : vector<8x8xbf16>, vector<8x8xbf16>, vector<8x8xf32> -> vector<8x8xf32>
    %cst_65 = arith.constant dense<0xFF800000> : vector<8xf32>
    %168 = vector.multi_reduction <maximumf>, %167, %cst_65 [1] : vector<8x8xf32> to vector<8xf32>
    %169 = vector.shape_cast %168 : vector<8xf32> to vector<8x1xf32>
    %170 = vector.broadcast %169 : vector<8x1xf32> to vector<8x8xf32>
    %171 = arith.subf %167, %170 : vector<8x8xf32>
    %172 = math.exp %171 : vector<8x8xf32>
    %cst_66 = arith.constant dense<0.000000e+00> : vector<8xf32>
    %173 = vector.multi_reduction <add>, %172, %cst_66 [1] : vector<8x8xf32> to vector<8xf32>
    %174 = vector.shape_cast %173 : vector<8xf32> to vector<8x1xf32>
    %175 = tpu.reciprocal %174 {approx = true} : vector<8x1xf32> -> vector<8x1xf32>
    %176 = vector.broadcast %175 : vector<8x1xf32> to vector<8x8xf32>
    %177 = arith.mulf %172, %176 : vector<8x8xf32>
    %178 = arith.truncf %177 : vector<8x8xf32> to vector<8x8xbf16>
    %cst_67 = arith.constant dense<0.000000e+00> : vector<8x8xf32>
    %179 = tpu.matmul %178, %166, %cst_67 {dimension_numbers = #tpu.dot_dimension_numbers<[1], [0], [0], [1], [0, 0, 1, 1], [], []>} : vector<8x8xbf16>, vector<8x8xbf16>, vector<8x8xf32> -> vector<8x8xf32>
    %180 = arith.truncf %179 : vector<8x8xf32> to vector<8x8xbf16>
    %181 = vector.extract_strided_slice %27 {offsets = [24, 0], sizes = [8, 32], strides = [1, 1]} : vector<32x32xbf16> to vector<8x32xbf16>
    %cst_68 = arith.constant dense<0.000000e+00> : vector<8x32xf32>
    %182 = tpu.matmul %180, %181, %cst_68 {dimension_numbers = #tpu.dot_dimension_numbers<[1], [0], [0], [1], [0, 0, 1, 1], [], []>} : vector<8x8xbf16>, vector<8x32xbf16>, vector<8x32xf32> -> vector<8x32xf32>
    %183 = arith.addf %160, %182 : vector<8x32xf32>
    %184 = vector.broadcast %70 : f32 to vector<8x32xf32>
    %185 = arith.mulf %183, %184 : vector<8x32xf32>
    %186 = arith.addf %79, %185 : vector<8x32xf32>
    %187 = arith.truncf %186 : vector<8x32xf32> to vector<8x32xbf16>
    %cst_69 = arith.constant dense<0.000000e+00> : vector<8x96xf32>
    %188 = tpu.matmul %187, %7, %cst_69 {dimension_numbers = #tpu.dot_dimension_numbers<[1], [0], [0], [1], [0, 0, 1, 1], [], []>} : vector<8x32xbf16>, vector<32x96xbf16>, vector<8x96xf32> -> vector<8x96xf32>
    %189 = vector.broadcast %9 : vector<1x96xf32> to vector<8x96xf32>
    %190 = arith.addf %188, %189 : vector<8x96xf32>
    %cst_70 = arith.constant 0.000000e+00 : f32
    %191 = vector.broadcast %cst_70 : f32 to vector<8x96xf32>
    %192 = arith.maximumf %190, %191 : vector<8x96xf32>
    %193 = arith.truncf %192 : vector<8x96xf32> to vector<8x96xbf16>
    %cst_71 = arith.constant dense<0.000000e+00> : vector<8x32xf32>
    %194 = tpu.matmul %193, %57, %cst_71 {dimension_numbers = #tpu.dot_dimension_numbers<[1], [0], [0], [1], [0, 0, 1, 1], [], []>} : vector<8x96xbf16>, vector<96x32xbf16>, vector<8x32xf32> -> vector<8x32xf32>
    %195 = vector.broadcast %59 : vector<1x32xf32> to vector<8x32xf32>
    %196 = arith.addf %194, %195 : vector<8x32xf32>
    %197 = vector.broadcast %71 : f32 to vector<8x32xf32>
    %198 = arith.mulf %196, %197 : vector<8x32xf32>
    %199 = arith.addf %186, %198 : vector<8x32xf32>
    %200 = arith.truncf %78 : vector<3x32xf32> to vector<3x32xbf16>
    %cst_72 = arith.constant dense<0.000000e+00> : vector<3x32xf32>
    %201 = tpu.matmul %200, %32, %cst_72 {dimension_numbers = #tpu.dot_dimension_numbers<[1], [0], [0], [1], [0, 0, 1, 1], [], []>} : vector<3x32xbf16>, vector<32x32xbf16>, vector<3x32xf32> -> vector<3x32xf32>
    %202 = vector.broadcast %34 : vector<1x32xf32> to vector<3x32xf32>
    %203 = arith.addf %201, %202 : vector<3x32xf32>
    %204 = arith.truncf %199 : vector<8x32xf32> to vector<8x32xbf16>
    %cst_73 = arith.constant dense<0.000000e+00> : vector<8x96xf32>
    %205 = tpu.matmul %204, %12, %cst_73 {dimension_numbers = #tpu.dot_dimension_numbers<[1], [0], [0], [1], [0, 0, 1, 1], [], []>} : vector<8x32xbf16>, vector<32x96xbf16>, vector<8x96xf32> -> vector<8x96xf32>
    %206 = vector.broadcast %14 : vector<1x96xf32> to vector<8x96xf32>
    %207 = arith.addf %205, %206 : vector<8x96xf32>
    %208 = vector.extract_strided_slice %207 {offsets = [0, 0], sizes = [8, 32], strides = [1, 1]} : vector<8x96xf32> to vector<8x32xf32>
    %209 = vector.extract_strided_slice %207 {offsets = [0, 32], sizes = [8, 32], strides = [1, 1]} : vector<8x96xf32> to vector<8x32xf32>
    %210 = vector.extract_strided_slice %207 {offsets = [0, 64], sizes = [8, 32], strides = [1, 1]} : vector<8x96xf32> to vector<8x32xf32>
    %211 = arith.truncf %81 : vector<24x32xf32> to vector<24x32xbf16>
    %cst_74 = arith.constant dense<0.000000e+00> : vector<24x64xf32>
    %212 = tpu.matmul %211, %47, %cst_74 {dimension_numbers = #tpu.dot_dimension_numbers<[1], [0], [0], [1], [0, 0, 1, 1], [], []>} : vector<24x32xbf16>, vector<32x64xbf16>, vector<24x64xf32> -> vector<24x64xf32>
    %213 = vector.broadcast %49 : vector<1x64xf32> to vector<24x64xf32>
    %214 = arith.addf %212, %213 : vector<24x64xf32>
    %215 = vector.extract_strided_slice %214 {offsets = [0, 0], sizes = [24, 32], strides = [1, 1]} : vector<24x64xf32> to vector<24x32xf32>
    %216 = vector.shape_cast %215 : vector<24x32xf32> to vector<3x8x32xf32>
    %217 = vector.extract_strided_slice %214 {offsets = [0, 32], sizes = [24, 32], strides = [1, 1]} : vector<24x64xf32> to vector<24x32xf32>
    %218 = vector.shape_cast %217 : vector<24x32xf32> to vector<3x8x32xf32>
    %219 = vector.shape_cast %203 : vector<3x32xf32> to vector<3x1x32xf32>
    %220 = vector.broadcast %219 : vector<3x1x32xf32> to vector<3x8x32xf32>
    %221 = arith.addf %220, %216 : vector<3x8x32xf32>
    %cst_75 = arith.constant 0.353553385 : f32
    %222 = vector.broadcast %cst_75 : f32 to vector<3x8x32xf32>
    %223 = arith.mulf %221, %222 : vector<3x8x32xf32>
    %224 = vector.shape_cast %208 : vector<8x32xf32> to vector<1x8x32xf32>
    %225 = vector.broadcast %224 : vector<1x8x32xf32> to vector<3x8x32xf32>
    %226 = arith.addf %225, %218 : vector<3x8x32xf32>
    %227 = vector.extract_strided_slice %223 {offsets = [0, 0, 0], sizes = [3, 8, 8], strides = [1, 1, 1]} : vector<3x8x32xf32> to vector<3x8x8xf32>
    %228 = arith.truncf %227 : vector<3x8x8xf32> to vector<3x8x8xbf16>
    %229 = vector.extract_strided_slice %226 {offsets = [0, 0, 0], sizes = [3, 8, 8], strides = [1, 1, 1]} : vector<3x8x32xf32> to vector<3x8x8xf32>
    %230 = arith.truncf %229 : vector<3x8x8xf32> to vector<3x8x8xbf16>
    %231 = vector.extract_strided_slice %209 {offsets = [0, 0], sizes = [8, 8], strides = [1, 1]} : vector<8x32xf32> to vector<8x8xf32>
    %232 = arith.truncf %231 : vector<8x8xf32> to vector<8x8xbf16>
    %cst_76 = arith.constant dense<0.000000e+00> : vector<3x8x8xf32>
    %233 = tpu.matmul %228, %230, %cst_76 {dimension_numbers = #tpu.dot_dimension_numbers<[2], [2], [1], [1], [0, 0, 0, 1, 1, 1], [0], [0]>} : vector<3x8x8xbf16>, vector<3x8x8xbf16>, vector<3x8x8xf32> -> vector<3x8x8xf32>
    %cst_77 = arith.constant dense<0xFF800000> : vector<3x8xf32>
    %234 = vector.multi_reduction <maximumf>, %233, %cst_77 [1] : vector<3x8x8xf32> to vector<3x8xf32>
    %235 = vector.shape_cast %234 : vector<3x8xf32> to vector<3x1x8xf32>
    %236 = vector.broadcast %235 : vector<3x1x8xf32> to vector<3x8x8xf32>
    %237 = arith.subf %233, %236 : vector<3x8x8xf32>
    %238 = math.exp %237 : vector<3x8x8xf32>
    %cst_78 = arith.constant dense<0.000000e+00> : vector<3x8xf32>
    %239 = vector.multi_reduction <add>, %238, %cst_78 [1] : vector<3x8x8xf32> to vector<3x8xf32>
    %240 = vector.shape_cast %239 : vector<3x8xf32> to vector<3x1x8xf32>
    %241 = tpu.reciprocal %240 {approx = true} : vector<3x1x8xf32> -> vector<3x1x8xf32>
    %242 = vector.broadcast %241 : vector<3x1x8xf32> to vector<3x8x8xf32>
    %243 = arith.mulf %238, %242 : vector<3x8x8xf32>
    %cst_79 = arith.constant dense<0.000000e+00> : vector<3x8xf32>
    %244 = vector.multi_reduction <add>, %243, %cst_79 [1] : vector<3x8x8xf32> to vector<3x8xf32>
    %245 = arith.truncf %244 : vector<3x8xf32> to vector<3x8xbf16>
    %cst_80 = arith.constant dense<0.000000e+00> : vector<3x8xf32>
    %246 = tpu.matmul %245, %232, %cst_80 {dimension_numbers = #tpu.dot_dimension_numbers<[1], [0], [0], [1], [0, 0, 1, 1], [], []>} : vector<3x8xbf16>, vector<8x8xbf16>, vector<3x8xf32> -> vector<3x8xf32>
    %247 = arith.truncf %246 : vector<3x8xf32> to vector<3x8xbf16>
    %248 = vector.extract_strided_slice %37 {offsets = [0, 0], sizes = [8, 32], strides = [1, 1]} : vector<32x32xbf16> to vector<8x32xbf16>
    %cst_81 = arith.constant dense<0.000000e+00> : vector<3x32xf32>
    %249 = tpu.matmul %247, %248, %cst_81 {dimension_numbers = #tpu.dot_dimension_numbers<[1], [0], [0], [1], [0, 0, 1, 1], [], []>} : vector<3x8xbf16>, vector<8x32xbf16>, vector<3x32xf32> -> vector<3x32xf32>
    %250 = vector.broadcast %39 : vector<1x32xf32> to vector<3x32xf32>
    %251 = arith.addf %250, %249 : vector<3x32xf32>
    %252 = vector.extract_strided_slice %223 {offsets = [0, 0, 8], sizes = [3, 8, 8], strides = [1, 1, 1]} : vector<3x8x32xf32> to vector<3x8x8xf32>
    %253 = arith.truncf %252 : vector<3x8x8xf32> to vector<3x8x8xbf16>
    %254 = vector.extract_strided_slice %226 {offsets = [0, 0, 8], sizes = [3, 8, 8], strides = [1, 1, 1]} : vector<3x8x32xf32> to vector<3x8x8xf32>
    %255 = arith.truncf %254 : vector<3x8x8xf32> to vector<3x8x8xbf16>
    %256 = vector.extract_strided_slice %209 {offsets = [0, 8], sizes = [8, 8], strides = [1, 1]} : vector<8x32xf32> to vector<8x8xf32>
    %257 = arith.truncf %256 : vector<8x8xf32> to vector<8x8xbf16>
    %cst_82 = arith.constant dense<0.000000e+00> : vector<3x8x8xf32>
    %258 = tpu.matmul %253, %255, %cst_82 {dimension_numbers = #tpu.dot_dimension_numbers<[2], [2], [1], [1], [0, 0, 0, 1, 1, 1], [0], [0]>} : vector<3x8x8xbf16>, vector<3x8x8xbf16>, vector<3x8x8xf32> -> vector<3x8x8xf32>
    %cst_83 = arith.constant dense<0xFF800000> : vector<3x8xf32>
    %259 = vector.multi_reduction <maximumf>, %258, %cst_83 [1] : vector<3x8x8xf32> to vector<3x8xf32>
    %260 = vector.shape_cast %259 : vector<3x8xf32> to vector<3x1x8xf32>
    %261 = vector.broadcast %260 : vector<3x1x8xf32> to vector<3x8x8xf32>
    %262 = arith.subf %258, %261 : vector<3x8x8xf32>
    %263 = math.exp %262 : vector<3x8x8xf32>
    %cst_84 = arith.constant dense<0.000000e+00> : vector<3x8xf32>
    %264 = vector.multi_reduction <add>, %263, %cst_84 [1] : vector<3x8x8xf32> to vector<3x8xf32>
    %265 = vector.shape_cast %264 : vector<3x8xf32> to vector<3x1x8xf32>
    %266 = tpu.reciprocal %265 {approx = true} : vector<3x1x8xf32> -> vector<3x1x8xf32>
    %267 = vector.broadcast %266 : vector<3x1x8xf32> to vector<3x8x8xf32>
    %268 = arith.mulf %263, %267 : vector<3x8x8xf32>
    %cst_85 = arith.constant dense<0.000000e+00> : vector<3x8xf32>
    %269 = vector.multi_reduction <add>, %268, %cst_85 [1] : vector<3x8x8xf32> to vector<3x8xf32>
    %270 = arith.truncf %269 : vector<3x8xf32> to vector<3x8xbf16>
    %cst_86 = arith.constant dense<0.000000e+00> : vector<3x8xf32>
    %271 = tpu.matmul %270, %257, %cst_86 {dimension_numbers = #tpu.dot_dimension_numbers<[1], [0], [0], [1], [0, 0, 1, 1], [], []>} : vector<3x8xbf16>, vector<8x8xbf16>, vector<3x8xf32> -> vector<3x8xf32>
    %272 = arith.truncf %271 : vector<3x8xf32> to vector<3x8xbf16>
    %273 = vector.extract_strided_slice %37 {offsets = [8, 0], sizes = [8, 32], strides = [1, 1]} : vector<32x32xbf16> to vector<8x32xbf16>
    %cst_87 = arith.constant dense<0.000000e+00> : vector<3x32xf32>
    %274 = tpu.matmul %272, %273, %cst_87 {dimension_numbers = #tpu.dot_dimension_numbers<[1], [0], [0], [1], [0, 0, 1, 1], [], []>} : vector<3x8xbf16>, vector<8x32xbf16>, vector<3x32xf32> -> vector<3x32xf32>
    %275 = arith.addf %251, %274 : vector<3x32xf32>
    %276 = vector.extract_strided_slice %223 {offsets = [0, 0, 16], sizes = [3, 8, 8], strides = [1, 1, 1]} : vector<3x8x32xf32> to vector<3x8x8xf32>
    %277 = arith.truncf %276 : vector<3x8x8xf32> to vector<3x8x8xbf16>
    %278 = vector.extract_strided_slice %226 {offsets = [0, 0, 16], sizes = [3, 8, 8], strides = [1, 1, 1]} : vector<3x8x32xf32> to vector<3x8x8xf32>
    %279 = arith.truncf %278 : vector<3x8x8xf32> to vector<3x8x8xbf16>
    %280 = vector.extract_strided_slice %209 {offsets = [0, 16], sizes = [8, 8], strides = [1, 1]} : vector<8x32xf32> to vector<8x8xf32>
    %281 = arith.truncf %280 : vector<8x8xf32> to vector<8x8xbf16>
    %cst_88 = arith.constant dense<0.000000e+00> : vector<3x8x8xf32>
    %282 = tpu.matmul %277, %279, %cst_88 {dimension_numbers = #tpu.dot_dimension_numbers<[2], [2], [1], [1], [0, 0, 0, 1, 1, 1], [0], [0]>} : vector<3x8x8xbf16>, vector<3x8x8xbf16>, vector<3x8x8xf32> -> vector<3x8x8xf32>
    %cst_89 = arith.constant dense<0xFF800000> : vector<3x8xf32>
    %283 = vector.multi_reduction <maximumf>, %282, %cst_89 [1] : vector<3x8x8xf32> to vector<3x8xf32>
    %284 = vector.shape_cast %283 : vector<3x8xf32> to vector<3x1x8xf32>
    %285 = vector.broadcast %284 : vector<3x1x8xf32> to vector<3x8x8xf32>
    %286 = arith.subf %282, %285 : vector<3x8x8xf32>
    %287 = math.exp %286 : vector<3x8x8xf32>
    %cst_90 = arith.constant dense<0.000000e+00> : vector<3x8xf32>
    %288 = vector.multi_reduction <add>, %287, %cst_90 [1] : vector<3x8x8xf32> to vector<3x8xf32>
    %289 = vector.shape_cast %288 : vector<3x8xf32> to vector<3x1x8xf32>
    %290 = tpu.reciprocal %289 {approx = true} : vector<3x1x8xf32> -> vector<3x1x8xf32>
    %291 = vector.broadcast %290 : vector<3x1x8xf32> to vector<3x8x8xf32>
    %292 = arith.mulf %287, %291 : vector<3x8x8xf32>
    %cst_91 = arith.constant dense<0.000000e+00> : vector<3x8xf32>
    %293 = vector.multi_reduction <add>, %292, %cst_91 [1] : vector<3x8x8xf32> to vector<3x8xf32>
    %294 = arith.truncf %293 : vector<3x8xf32> to vector<3x8xbf16>
    %cst_92 = arith.constant dense<0.000000e+00> : vector<3x8xf32>
    %295 = tpu.matmul %294, %281, %cst_92 {dimension_numbers = #tpu.dot_dimension_numbers<[1], [0], [0], [1], [0, 0, 1, 1], [], []>} : vector<3x8xbf16>, vector<8x8xbf16>, vector<3x8xf32> -> vector<3x8xf32>
    %296 = arith.truncf %295 : vector<3x8xf32> to vector<3x8xbf16>
    %297 = vector.extract_strided_slice %37 {offsets = [16, 0], sizes = [8, 32], strides = [1, 1]} : vector<32x32xbf16> to vector<8x32xbf16>
    %cst_93 = arith.constant dense<0.000000e+00> : vector<3x32xf32>
    %298 = tpu.matmul %296, %297, %cst_93 {dimension_numbers = #tpu.dot_dimension_numbers<[1], [0], [0], [1], [0, 0, 1, 1], [], []>} : vector<3x8xbf16>, vector<8x32xbf16>, vector<3x32xf32> -> vector<3x32xf32>
    %299 = arith.addf %275, %298 : vector<3x32xf32>
    %300 = vector.extract_strided_slice %223 {offsets = [0, 0, 24], sizes = [3, 8, 8], strides = [1, 1, 1]} : vector<3x8x32xf32> to vector<3x8x8xf32>
    %301 = arith.truncf %300 : vector<3x8x8xf32> to vector<3x8x8xbf16>
    %302 = vector.extract_strided_slice %226 {offsets = [0, 0, 24], sizes = [3, 8, 8], strides = [1, 1, 1]} : vector<3x8x32xf32> to vector<3x8x8xf32>
    %303 = arith.truncf %302 : vector<3x8x8xf32> to vector<3x8x8xbf16>
    %304 = vector.extract_strided_slice %209 {offsets = [0, 24], sizes = [8, 8], strides = [1, 1]} : vector<8x32xf32> to vector<8x8xf32>
    %305 = arith.truncf %304 : vector<8x8xf32> to vector<8x8xbf16>
    %cst_94 = arith.constant dense<0.000000e+00> : vector<3x8x8xf32>
    %306 = tpu.matmul %301, %303, %cst_94 {dimension_numbers = #tpu.dot_dimension_numbers<[2], [2], [1], [1], [0, 0, 0, 1, 1, 1], [0], [0]>} : vector<3x8x8xbf16>, vector<3x8x8xbf16>, vector<3x8x8xf32> -> vector<3x8x8xf32>
    %cst_95 = arith.constant dense<0xFF800000> : vector<3x8xf32>
    %307 = vector.multi_reduction <maximumf>, %306, %cst_95 [1] : vector<3x8x8xf32> to vector<3x8xf32>
    %308 = vector.shape_cast %307 : vector<3x8xf32> to vector<3x1x8xf32>
    %309 = vector.broadcast %308 : vector<3x1x8xf32> to vector<3x8x8xf32>
    %310 = arith.subf %306, %309 : vector<3x8x8xf32>
    %311 = math.exp %310 : vector<3x8x8xf32>
    %cst_96 = arith.constant dense<0.000000e+00> : vector<3x8xf32>
    %312 = vector.multi_reduction <add>, %311, %cst_96 [1] : vector<3x8x8xf32> to vector<3x8xf32>
    %313 = vector.shape_cast %312 : vector<3x8xf32> to vector<3x1x8xf32>
    %314 = tpu.reciprocal %313 {approx = true} : vector<3x1x8xf32> -> vector<3x1x8xf32>
    %315 = vector.broadcast %314 : vector<3x1x8xf32> to vector<3x8x8xf32>
    %316 = arith.mulf %311, %315 : vector<3x8x8xf32>
    %cst_97 = arith.constant dense<0.000000e+00> : vector<3x8xf32>
    %317 = vector.multi_reduction <add>, %316, %cst_97 [1] : vector<3x8x8xf32> to vector<3x8xf32>
    %318 = arith.truncf %317 : vector<3x8xf32> to vector<3x8xbf16>
    %cst_98 = arith.constant dense<0.000000e+00> : vector<3x8xf32>
    %319 = tpu.matmul %318, %305, %cst_98 {dimension_numbers = #tpu.dot_dimension_numbers<[1], [0], [0], [1], [0, 0, 1, 1], [], []>} : vector<3x8xbf16>, vector<8x8xbf16>, vector<3x8xf32> -> vector<3x8xf32>
    %320 = arith.truncf %319 : vector<3x8xf32> to vector<3x8xbf16>
    %321 = vector.extract_strided_slice %37 {offsets = [24, 0], sizes = [8, 32], strides = [1, 1]} : vector<32x32xbf16> to vector<8x32xbf16>
    %cst_99 = arith.constant dense<0.000000e+00> : vector<3x32xf32>
    %322 = tpu.matmul %320, %321, %cst_99 {dimension_numbers = #tpu.dot_dimension_numbers<[1], [0], [0], [1], [0, 0, 1, 1], [], []>} : vector<3x8xbf16>, vector<8x32xbf16>, vector<3x32xf32> -> vector<3x32xf32>
    %323 = arith.addf %299, %322 : vector<3x32xf32>
    %324 = vector.broadcast %72 : f32 to vector<3x32xf32>
    %325 = arith.mulf %323, %324 : vector<3x32xf32>
    %326 = arith.addf %78, %325 : vector<3x32xf32>
    %327 = arith.truncf %326 : vector<3x32xf32> to vector<3x32xbf16>
    %cst_100 = arith.constant dense<0.000000e+00> : vector<3x96xf32>
    %328 = tpu.matmul %327, %17, %cst_100 {dimension_numbers = #tpu.dot_dimension_numbers<[1], [0], [0], [1], [0, 0, 1, 1], [], []>} : vector<3x32xbf16>, vector<32x96xbf16>, vector<3x96xf32> -> vector<3x96xf32>
    %329 = vector.broadcast %19 : vector<1x96xf32> to vector<3x96xf32>
    %330 = arith.addf %328, %329 : vector<3x96xf32>
    %cst_101 = arith.constant 0.000000e+00 : f32
    %331 = vector.broadcast %cst_101 : f32 to vector<3x96xf32>
    %332 = arith.maximumf %330, %331 : vector<3x96xf32>
    %333 = arith.truncf %332 : vector<3x96xf32> to vector<3x96xbf16>
    %cst_102 = arith.constant dense<0.000000e+00> : vector<3x32xf32>
    %334 = tpu.matmul %333, %62, %cst_102 {dimension_numbers = #tpu.dot_dimension_numbers<[1], [0], [0], [1], [0, 0, 1, 1], [], []>} : vector<3x96xbf16>, vector<96x32xbf16>, vector<3x32xf32> -> vector<3x32xf32>
    %335 = vector.broadcast %64 : vector<1x32xf32> to vector<3x32xf32>
    %336 = arith.addf %334, %335 : vector<3x32xf32>
    %337 = vector.broadcast %73 : f32 to vector<3x32xf32>
    %338 = arith.mulf %336, %337 : vector<3x32xf32>
    %339 = arith.addf %326, %338 : vector<3x32xf32>
    %340 = arith.truncf %339 : vector<3x32xf32> to vector<3x32xbf16>
    %cst_103 = arith.constant dense<0.000000e+00> : vector<3x64xf32>
    %341 = tpu.matmul %340, %52, %cst_103 {dimension_numbers = #tpu.dot_dimension_numbers<[1], [0], [0], [1], [0, 0, 1, 1], [], []>} : vector<3x32xbf16>, vector<32x64xbf16>, vector<3x64xf32> -> vector<3x64xf32>
    %342 = vector.broadcast %54 : vector<1x64xf32> to vector<3x64xf32>
    %343 = arith.addf %341, %342 : vector<3x64xf32>
    %344 = vector.extract_strided_slice %343 {offsets = [0, 0], sizes = [3, 32], strides = [1, 1]} : vector<3x64xf32> to vector<3x32xf32>
    %345 = vector.extract_strided_slice %343 {offsets = [0, 32], sizes = [3, 32], strides = [1, 1]} : vector<3x64xf32> to vector<3x32xf32>
    %cst_104 = arith.constant 0.353553385 : f32
    %346 = vector.broadcast %cst_104 : f32 to vector<8x32xf32>
    %347 = arith.mulf %210, %346 : vector<8x32xf32>
    %348 = vector.extract_strided_slice %347 {offsets = [0, 0], sizes = [8, 8], strides = [1, 1]} : vector<8x32xf32> to vector<8x8xf32>
    %349 = arith.truncf %348 : vector<8x8xf32> to vector<8x8xbf16>
    %350 = vector.extract_strided_slice %344 {offsets = [0, 0], sizes = [3, 8], strides = [1, 1]} : vector<3x32xf32> to vector<3x8xf32>
    %351 = arith.truncf %350 : vector<3x8xf32> to vector<3x8xbf16>
    %352 = vector.extract_strided_slice %345 {offsets = [0, 0], sizes = [3, 8], strides = [1, 1]} : vector<3x32xf32> to vector<3x8xf32>
    %353 = arith.truncf %352 : vector<3x8xf32> to vector<3x8xbf16>
    %cst_105 = arith.constant dense<0.000000e+00> : vector<8x3xf32>
    %354 = tpu.matmul %349, %351, %cst_105 {dimension_numbers = #tpu.dot_dimension_numbers<[1], [1], [0], [0], [0, 0, 1, 0], [], []>} : vector<8x8xbf16>, vector<3x8xbf16>, vector<8x3xf32> -> vector<8x3xf32>
    %cst_106 = arith.constant dense<0xFF800000> : vector<8xf32>
    %355 = vector.multi_reduction <maximumf>, %354, %cst_106 [1] : vector<8x3xf32> to vector<8xf32>
    %356 = vector.shape_cast %355 : vector<8xf32> to vector<8x1xf32>
    %357 = vector.broadcast %356 : vector<8x1xf32> to vector<8x3xf32>
    %358 = arith.subf %354, %357 : vector<8x3xf32>
    %359 = math.exp %358 : vector<8x3xf32>
    %cst_107 = arith.constant dense<0.000000e+00> : vector<8xf32>
    %360 = vector.multi_reduction <add>, %359, %cst_107 [1] : vector<8x3xf32> to vector<8xf32>
    %361 = vector.shape_cast %360 : vector<8xf32> to vector<8x1xf32>
    %362 = tpu.reciprocal %361 {approx = true} : vector<8x1xf32> -> vector<8x1xf32>
    %363 = vector.broadcast %362 : vector<8x1xf32> to vector<8x3xf32>
    %364 = arith.mulf %359, %363 : vector<8x3xf32>
    %365 = arith.truncf %364 : vector<8x3xf32> to vector<8x3xbf16>
    %cst_108 = arith.constant dense<0.000000e+00> : vector<8x8xf32>
    %366 = tpu.matmul %365, %353, %cst_108 {dimension_numbers = #tpu.dot_dimension_numbers<[1], [0], [0], [1], [0, 0, 1, 1], [], []>} : vector<8x3xbf16>, vector<3x8xbf16>, vector<8x8xf32> -> vector<8x8xf32>
    %367 = arith.truncf %366 : vector<8x8xf32> to vector<8x8xbf16>
    %368 = vector.extract_strided_slice %42 {offsets = [0, 0], sizes = [8, 32], strides = [1, 1]} : vector<32x32xbf16> to vector<8x32xbf16>
    %cst_109 = arith.constant dense<0.000000e+00> : vector<8x32xf32>
    %369 = tpu.matmul %367, %368, %cst_109 {dimension_numbers = #tpu.dot_dimension_numbers<[1], [0], [0], [1], [0, 0, 1, 1], [], []>} : vector<8x8xbf16>, vector<8x32xbf16>, vector<8x32xf32> -> vector<8x32xf32>
    %370 = vector.broadcast %44 : vector<1x32xf32> to vector<8x32xf32>
    %371 = arith.addf %370, %369 : vector<8x32xf32>
    %372 = vector.extract_strided_slice %347 {offsets = [0, 8], sizes = [8, 8], strides = [1, 1]} : vector<8x32xf32> to vector<8x8xf32>
    %373 = arith.truncf %372 : vector<8x8xf32> to vector<8x8xbf16>
    %374 = vector.extract_strided_slice %344 {offsets = [0, 8], sizes = [3, 8], strides = [1, 1]} : vector<3x32xf32> to vector<3x8xf32>
    %375 = arith.truncf %374 : vector<3x8xf32> to vector<3x8xbf16>
    %376 = vector.extract_strided_slice %345 {offsets = [0, 8], sizes = [3, 8], strides = [1, 1]} : vector<3x32xf32> to vector<3x8xf32>
    %377 = arith.truncf %376 : vector<3x8xf32> to vector<3x8xbf16>
    %cst_110 = arith.constant dense<0.000000e+00> : vector<8x3xf32>
    %378 = tpu.matmul %373, %375, %cst_110 {dimension_numbers = #tpu.dot_dimension_numbers<[1], [1], [0], [0], [0, 0, 1, 0], [], []>} : vector<8x8xbf16>, vector<3x8xbf16>, vector<8x3xf32> -> vector<8x3xf32>
    %cst_111 = arith.constant dense<0xFF800000> : vector<8xf32>
    %379 = vector.multi_reduction <maximumf>, %378, %cst_111 [1] : vector<8x3xf32> to vector<8xf32>
    %380 = vector.shape_cast %379 : vector<8xf32> to vector<8x1xf32>
    %381 = vector.broadcast %380 : vector<8x1xf32> to vector<8x3xf32>
    %382 = arith.subf %378, %381 : vector<8x3xf32>
    %383 = math.exp %382 : vector<8x3xf32>
    %cst_112 = arith.constant dense<0.000000e+00> : vector<8xf32>
    %384 = vector.multi_reduction <add>, %383, %cst_112 [1] : vector<8x3xf32> to vector<8xf32>
    %385 = vector.shape_cast %384 : vector<8xf32> to vector<8x1xf32>
    %386 = tpu.reciprocal %385 {approx = true} : vector<8x1xf32> -> vector<8x1xf32>
    %387 = vector.broadcast %386 : vector<8x1xf32> to vector<8x3xf32>
    %388 = arith.mulf %383, %387 : vector<8x3xf32>
    %389 = arith.truncf %388 : vector<8x3xf32> to vector<8x3xbf16>
    %cst_113 = arith.constant dense<0.000000e+00> : vector<8x8xf32>
    %390 = tpu.matmul %389, %377, %cst_113 {dimension_numbers = #tpu.dot_dimension_numbers<[1], [0], [0], [1], [0, 0, 1, 1], [], []>} : vector<8x3xbf16>, vector<3x8xbf16>, vector<8x8xf32> -> vector<8x8xf32>
    %391 = arith.truncf %390 : vector<8x8xf32> to vector<8x8xbf16>
    %392 = vector.extract_strided_slice %42 {offsets = [8, 0], sizes = [8, 32], strides = [1, 1]} : vector<32x32xbf16> to vector<8x32xbf16>
    %cst_114 = arith.constant dense<0.000000e+00> : vector<8x32xf32>
    %393 = tpu.matmul %391, %392, %cst_114 {dimension_numbers = #tpu.dot_dimension_numbers<[1], [0], [0], [1], [0, 0, 1, 1], [], []>} : vector<8x8xbf16>, vector<8x32xbf16>, vector<8x32xf32> -> vector<8x32xf32>
    %394 = arith.addf %371, %393 : vector<8x32xf32>
    %395 = vector.extract_strided_slice %347 {offsets = [0, 16], sizes = [8, 8], strides = [1, 1]} : vector<8x32xf32> to vector<8x8xf32>
    %396 = arith.truncf %395 : vector<8x8xf32> to vector<8x8xbf16>
    %397 = vector.extract_strided_slice %344 {offsets = [0, 16], sizes = [3, 8], strides = [1, 1]} : vector<3x32xf32> to vector<3x8xf32>
    %398 = arith.truncf %397 : vector<3x8xf32> to vector<3x8xbf16>
    %399 = vector.extract_strided_slice %345 {offsets = [0, 16], sizes = [3, 8], strides = [1, 1]} : vector<3x32xf32> to vector<3x8xf32>
    %400 = arith.truncf %399 : vector<3x8xf32> to vector<3x8xbf16>
    %cst_115 = arith.constant dense<0.000000e+00> : vector<8x3xf32>
    %401 = tpu.matmul %396, %398, %cst_115 {dimension_numbers = #tpu.dot_dimension_numbers<[1], [1], [0], [0], [0, 0, 1, 0], [], []>} : vector<8x8xbf16>, vector<3x8xbf16>, vector<8x3xf32> -> vector<8x3xf32>
    %cst_116 = arith.constant dense<0xFF800000> : vector<8xf32>
    %402 = vector.multi_reduction <maximumf>, %401, %cst_116 [1] : vector<8x3xf32> to vector<8xf32>
    %403 = vector.shape_cast %402 : vector<8xf32> to vector<8x1xf32>
    %404 = vector.broadcast %403 : vector<8x1xf32> to vector<8x3xf32>
    %405 = arith.subf %401, %404 : vector<8x3xf32>
    %406 = math.exp %405 : vector<8x3xf32>
    %cst_117 = arith.constant dense<0.000000e+00> : vector<8xf32>
    %407 = vector.multi_reduction <add>, %406, %cst_117 [1] : vector<8x3xf32> to vector<8xf32>
    %408 = vector.shape_cast %407 : vector<8xf32> to vector<8x1xf32>
    %409 = tpu.reciprocal %408 {approx = true} : vector<8x1xf32> -> vector<8x1xf32>
    %410 = vector.broadcast %409 : vector<8x1xf32> to vector<8x3xf32>
    %411 = arith.mulf %406, %410 : vector<8x3xf32>
    %412 = arith.truncf %411 : vector<8x3xf32> to vector<8x3xbf16>
    %cst_118 = arith.constant dense<0.000000e+00> : vector<8x8xf32>
    %413 = tpu.matmul %412, %400, %cst_118 {dimension_numbers = #tpu.dot_dimension_numbers<[1], [0], [0], [1], [0, 0, 1, 1], [], []>} : vector<8x3xbf16>, vector<3x8xbf16>, vector<8x8xf32> -> vector<8x8xf32>
    %414 = arith.truncf %413 : vector<8x8xf32> to vector<8x8xbf16>
    %415 = vector.extract_strided_slice %42 {offsets = [16, 0], sizes = [8, 32], strides = [1, 1]} : vector<32x32xbf16> to vector<8x32xbf16>
    %cst_119 = arith.constant dense<0.000000e+00> : vector<8x32xf32>
    %416 = tpu.matmul %414, %415, %cst_119 {dimension_numbers = #tpu.dot_dimension_numbers<[1], [0], [0], [1], [0, 0, 1, 1], [], []>} : vector<8x8xbf16>, vector<8x32xbf16>, vector<8x32xf32> -> vector<8x32xf32>
    %417 = arith.addf %394, %416 : vector<8x32xf32>
    %418 = vector.extract_strided_slice %347 {offsets = [0, 24], sizes = [8, 8], strides = [1, 1]} : vector<8x32xf32> to vector<8x8xf32>
    %419 = arith.truncf %418 : vector<8x8xf32> to vector<8x8xbf16>
    %420 = vector.extract_strided_slice %344 {offsets = [0, 24], sizes = [3, 8], strides = [1, 1]} : vector<3x32xf32> to vector<3x8xf32>
    %421 = arith.truncf %420 : vector<3x8xf32> to vector<3x8xbf16>
    %422 = vector.extract_strided_slice %345 {offsets = [0, 24], sizes = [3, 8], strides = [1, 1]} : vector<3x32xf32> to vector<3x8xf32>
    %423 = arith.truncf %422 : vector<3x8xf32> to vector<3x8xbf16>
    %cst_120 = arith.constant dense<0.000000e+00> : vector<8x3xf32>
    %424 = tpu.matmul %419, %421, %cst_120 {dimension_numbers = #tpu.dot_dimension_numbers<[1], [1], [0], [0], [0, 0, 1, 0], [], []>} : vector<8x8xbf16>, vector<3x8xbf16>, vector<8x3xf32> -> vector<8x3xf32>
    %cst_121 = arith.constant dense<0xFF800000> : vector<8xf32>
    %425 = vector.multi_reduction <maximumf>, %424, %cst_121 [1] : vector<8x3xf32> to vector<8xf32>
    %426 = vector.shape_cast %425 : vector<8xf32> to vector<8x1xf32>
    %427 = vector.broadcast %426 : vector<8x1xf32> to vector<8x3xf32>
    %428 = arith.subf %424, %427 : vector<8x3xf32>
    %429 = math.exp %428 : vector<8x3xf32>
    %cst_122 = arith.constant dense<0.000000e+00> : vector<8xf32>
    %430 = vector.multi_reduction <add>, %429, %cst_122 [1] : vector<8x3xf32> to vector<8xf32>
    %431 = vector.shape_cast %430 : vector<8xf32> to vector<8x1xf32>
    %432 = tpu.reciprocal %431 {approx = true} : vector<8x1xf32> -> vector<8x1xf32>
    %433 = vector.broadcast %432 : vector<8x1xf32> to vector<8x3xf32>
    %434 = arith.mulf %429, %433 : vector<8x3xf32>
    %435 = arith.truncf %434 : vector<8x3xf32> to vector<8x3xbf16>
    %cst_123 = arith.constant dense<0.000000e+00> : vector<8x8xf32>
    %436 = tpu.matmul %435, %423, %cst_123 {dimension_numbers = #tpu.dot_dimension_numbers<[1], [0], [0], [1], [0, 0, 1, 1], [], []>} : vector<8x3xbf16>, vector<3x8xbf16>, vector<8x8xf32> -> vector<8x8xf32>
    %437 = arith.truncf %436 : vector<8x8xf32> to vector<8x8xbf16>
    %438 = vector.extract_strided_slice %42 {offsets = [24, 0], sizes = [8, 32], strides = [1, 1]} : vector<32x32xbf16> to vector<8x32xbf16>
    %cst_124 = arith.constant dense<0.000000e+00> : vector<8x32xf32>
    %439 = tpu.matmul %437, %438, %cst_124 {dimension_numbers = #tpu.dot_dimension_numbers<[1], [0], [0], [1], [0, 0, 1, 1], [], []>} : vector<8x8xbf16>, vector<8x32xbf16>, vector<8x32xf32> -> vector<8x32xf32>
    %440 = arith.addf %417, %439 : vector<8x32xf32>
    %441 = vector.broadcast %74 : f32 to vector<8x32xf32>
    %442 = arith.mulf %440, %441 : vector<8x32xf32>
    %443 = arith.addf %199, %442 : vector<8x32xf32>
    %444 = arith.truncf %443 : vector<8x32xf32> to vector<8x32xbf16>
    %cst_125 = arith.constant dense<0.000000e+00> : vector<8x96xf32>
    %445 = tpu.matmul %444, %22, %cst_125 {dimension_numbers = #tpu.dot_dimension_numbers<[1], [0], [0], [1], [0, 0, 1, 1], [], []>} : vector<8x32xbf16>, vector<32x96xbf16>, vector<8x96xf32> -> vector<8x96xf32>
    %446 = vector.broadcast %24 : vector<1x96xf32> to vector<8x96xf32>
    %447 = arith.addf %445, %446 : vector<8x96xf32>
    %cst_126 = arith.constant 0.000000e+00 : f32
    %448 = vector.broadcast %cst_126 : f32 to vector<8x96xf32>
    %449 = arith.maximumf %447, %448 : vector<8x96xf32>
    %450 = arith.truncf %449 : vector<8x96xf32> to vector<8x96xbf16>
    %cst_127 = arith.constant dense<0.000000e+00> : vector<8x32xf32>
    %451 = tpu.matmul %450, %67, %cst_127 {dimension_numbers = #tpu.dot_dimension_numbers<[1], [0], [0], [1], [0, 0, 1, 1], [], []>} : vector<8x96xbf16>, vector<96x32xbf16>, vector<8x32xf32> -> vector<8x32xf32>
    %452 = vector.broadcast %69 : vector<1x32xf32> to vector<8x32xf32>
    %453 = arith.addf %451, %452 : vector<8x32xf32>
    %454 = vector.broadcast %75 : f32 to vector<8x32xf32>
    %455 = arith.mulf %453, %454 : vector<8x32xf32>
    %456 = arith.addf %443, %455 : vector<8x32xf32>
    %c0_128 = arith.constant 0 : index
    %c0_129 = arith.constant 0 : index
    %c0_130 = arith.constant 0 : index
    %457 = vector.load %arg8[%c0_128, %c0_129, %c0_130] : memref<2x11x32xf32, #tpu.memory_space<vmem>>, vector<1x3x32xf32>
    %458 = vector.shape_cast %457 : vector<1x3x32xf32> to vector<3x32xf32>
    %459 = vector.shape_cast %339 : vector<3x32xf32> to vector<1x3x32xf32>
    tpu.vector_store %arg8[%c0_128, %c0_129, %c0_130], %459 {strides = array<i32>} : memref<2x11x32xf32, #tpu.memory_space<vmem>>, vector<1x3x32xf32>,
    %c0_131 = arith.constant 0 : index
    %c3_132 = arith.constant 3 : index
    %c0_133 = arith.constant 0 : index
    %460 = vector.load %arg8[%c0_131, %c3_132, %c0_133] : memref<2x11x32xf32, #tpu.memory_space<vmem>>, vector<1x8x32xf32>
    %461 = vector.shape_cast %460 : vector<1x8x32xf32> to vector<8x32xf32>
    %462 = vector.shape_cast %456 : vector<8x32xf32> to vector<1x8x32xf32>
    tpu.vector_store %arg8[%c0_131, %c3_132, %c0_133], %462 {strides = array<i32>} : memref<2x11x32xf32, #tpu.memory_space<vmem>>, vector<1x8x32xf32>,
    %c1_134 = arith.constant 1 : index
    %c0_135 = arith.constant 0 : index
    %c0_136 = arith.constant 0 : index
    %463 = vector.load %arg1[%c1_134, %c0_135, %c0_136] : memref<2x11x32xf32, #tpu.memory_space<vmem>>, vector<1x11x32xf32>
    %464 = vector.shape_cast %463 : vector<1x11x32xf32> to vector<11x32xf32>
    %465 = vector.extract_strided_slice %464 {offsets = [0, 0], sizes = [3, 32], strides = [1, 1]} : vector<11x32xf32> to vector<3x32xf32>
    %466 = vector.extract_strided_slice %464 {offsets = [3, 0], sizes = [8, 32], strides = [1, 1]} : vector<11x32xf32> to vector<8x32xf32>
    %c1_137 = arith.constant 1 : index
    %c0_138 = arith.constant 0 : index
    %c0_139 = arith.constant 0 : index
    %467 = vector.load %arg2[%c1_137, %c0_138, %c0_139] : memref<2x24x32xf32, #tpu.memory_space<vmem>>, vector<1x24x32xf32>
    %468 = vector.shape_cast %467 : vector<1x24x32xf32> to vector<24x32xf32>
    %469 = arith.truncf %466 : vector<8x32xf32> to vector<8x32xbf16>
    %cst_140 = arith.constant dense<0.000000e+00> : vector<8x96xf32>
    %470 = tpu.matmul %469, %2, %cst_140 {dimension_numbers = #tpu.dot_dimension_numbers<[1], [0], [0], [1], [0, 0, 1, 1], [], []>} : vector<8x32xbf16>, vector<32x96xbf16>, vector<8x96xf32> -> vector<8x96xf32>
    %471 = vector.broadcast %4 : vector<1x96xf32> to vector<8x96xf32>
    %472 = arith.addf %470, %471 : vector<8x96xf32>
    %473 = vector.extract_strided_slice %472 {offsets = [0, 0], sizes = [8, 32], strides = [1, 1]} : vector<8x96xf32> to vector<8x32xf32>
    %cst_141 = arith.constant 0.353553385 : f32
    %474 = vector.broadcast %cst_141 : f32 to vector<8x32xf32>
    %475 = arith.mulf %473, %474 : vector<8x32xf32>
    %476 = vector.extract_strided_slice %472 {offsets = [0, 32], sizes = [8, 32], strides = [1, 1]} : vector<8x96xf32> to vector<8x32xf32>
    %477 = vector.extract_strided_slice %472 {offsets = [0, 64], sizes = [8, 32], strides = [1, 1]} : vector<8x96xf32> to vector<8x32xf32>
    %478 = vector.extract_strided_slice %475 {offsets = [0, 0], sizes = [8, 8], strides = [1, 1]} : vector<8x32xf32> to vector<8x8xf32>
    %479 = arith.truncf %478 : vector<8x8xf32> to vector<8x8xbf16>
    %480 = vector.extract_strided_slice %476 {offsets = [0, 0], sizes = [8, 8], strides = [1, 1]} : vector<8x32xf32> to vector<8x8xf32>
    %481 = arith.truncf %480 : vector<8x8xf32> to vector<8x8xbf16>
    %482 = vector.extract_strided_slice %477 {offsets = [0, 0], sizes = [8, 8], strides = [1, 1]} : vector<8x32xf32> to vector<8x8xf32>
    %483 = arith.truncf %482 : vector<8x8xf32> to vector<8x8xbf16>
    %cst_142 = arith.constant dense<0.000000e+00> : vector<8x8xf32>
    %484 = tpu.matmul %479, %481, %cst_142 {dimension_numbers = #tpu.dot_dimension_numbers<[1], [1], [0], [0], [0, 0, 1, 0], [], []>} : vector<8x8xbf16>, vector<8x8xbf16>, vector<8x8xf32> -> vector<8x8xf32>
    %cst_143 = arith.constant dense<0xFF800000> : vector<8xf32>
    %485 = vector.multi_reduction <maximumf>, %484, %cst_143 [1] : vector<8x8xf32> to vector<8xf32>
    %486 = vector.shape_cast %485 : vector<8xf32> to vector<8x1xf32>
    %487 = vector.broadcast %486 : vector<8x1xf32> to vector<8x8xf32>
    %488 = arith.subf %484, %487 : vector<8x8xf32>
    %489 = math.exp %488 : vector<8x8xf32>
    %cst_144 = arith.constant dense<0.000000e+00> : vector<8xf32>
    %490 = vector.multi_reduction <add>, %489, %cst_144 [1] : vector<8x8xf32> to vector<8xf32>
    %491 = vector.shape_cast %490 : vector<8xf32> to vector<8x1xf32>
    %492 = tpu.reciprocal %491 {approx = true} : vector<8x1xf32> -> vector<8x1xf32>
    %493 = vector.broadcast %492 : vector<8x1xf32> to vector<8x8xf32>
    %494 = arith.mulf %489, %493 : vector<8x8xf32>
    %495 = arith.truncf %494 : vector<8x8xf32> to vector<8x8xbf16>
    %cst_145 = arith.constant dense<0.000000e+00> : vector<8x8xf32>
    %496 = tpu.matmul %495, %483, %cst_145 {dimension_numbers = #tpu.dot_dimension_numbers<[1], [0], [0], [1], [0, 0, 1, 1], [], []>} : vector<8x8xbf16>, vector<8x8xbf16>, vector<8x8xf32> -> vector<8x8xf32>
    %497 = arith.truncf %496 : vector<8x8xf32> to vector<8x8xbf16>
    %498 = vector.extract_strided_slice %27 {offsets = [0, 0], sizes = [8, 32], strides = [1, 1]} : vector<32x32xbf16> to vector<8x32xbf16>
    %cst_146 = arith.constant dense<0.000000e+00> : vector<8x32xf32>
    %499 = tpu.matmul %497, %498, %cst_146 {dimension_numbers = #tpu.dot_dimension_numbers<[1], [0], [0], [1], [0, 0, 1, 1], [], []>} : vector<8x8xbf16>, vector<8x32xbf16>, vector<8x32xf32> -> vector<8x32xf32>
    %500 = vector.broadcast %29 : vector<1x32xf32> to vector<8x32xf32>
    %501 = arith.addf %500, %499 : vector<8x32xf32>
    %502 = vector.extract_strided_slice %475 {offsets = [0, 8], sizes = [8, 8], strides = [1, 1]} : vector<8x32xf32> to vector<8x8xf32>
    %503 = arith.truncf %502 : vector<8x8xf32> to vector<8x8xbf16>
    %504 = vector.extract_strided_slice %476 {offsets = [0, 8], sizes = [8, 8], strides = [1, 1]} : vector<8x32xf32> to vector<8x8xf32>
    %505 = arith.truncf %504 : vector<8x8xf32> to vector<8x8xbf16>
    %506 = vector.extract_strided_slice %477 {offsets = [0, 8], sizes = [8, 8], strides = [1, 1]} : vector<8x32xf32> to vector<8x8xf32>
    %507 = arith.truncf %506 : vector<8x8xf32> to vector<8x8xbf16>
    %cst_147 = arith.constant dense<0.000000e+00> : vector<8x8xf32>
    %508 = tpu.matmul %503, %505, %cst_147 {dimension_numbers = #tpu.dot_dimension_numbers<[1], [1], [0], [0], [0, 0, 1, 0], [], []>} : vector<8x8xbf16>, vector<8x8xbf16>, vector<8x8xf32> -> vector<8x8xf32>
    %cst_148 = arith.constant dense<0xFF800000> : vector<8xf32>
    %509 = vector.multi_reduction <maximumf>, %508, %cst_148 [1] : vector<8x8xf32> to vector<8xf32>
    %510 = vector.shape_cast %509 : vector<8xf32> to vector<8x1xf32>
    %511 = vector.broadcast %510 : vector<8x1xf32> to vector<8x8xf32>
    %512 = arith.subf %508, %511 : vector<8x8xf32>
    %513 = math.exp %512 : vector<8x8xf32>
    %cst_149 = arith.constant dense<0.000000e+00> : vector<8xf32>
    %514 = vector.multi_reduction <add>, %513, %cst_149 [1] : vector<8x8xf32> to vector<8xf32>
    %515 = vector.shape_cast %514 : vector<8xf32> to vector<8x1xf32>
    %516 = tpu.reciprocal %515 {approx = true} : vector<8x1xf32> -> vector<8x1xf32>
    %517 = vector.broadcast %516 : vector<8x1xf32> to vector<8x8xf32>
    %518 = arith.mulf %513, %517 : vector<8x8xf32>
    %519 = arith.truncf %518 : vector<8x8xf32> to vector<8x8xbf16>
    %cst_150 = arith.constant dense<0.000000e+00> : vector<8x8xf32>
    %520 = tpu.matmul %519, %507, %cst_150 {dimension_numbers = #tpu.dot_dimension_numbers<[1], [0], [0], [1], [0, 0, 1, 1], [], []>} : vector<8x8xbf16>, vector<8x8xbf16>, vector<8x8xf32> -> vector<8x8xf32>
    %521 = arith.truncf %520 : vector<8x8xf32> to vector<8x8xbf16>
    %522 = vector.extract_strided_slice %27 {offsets = [8, 0], sizes = [8, 32], strides = [1, 1]} : vector<32x32xbf16> to vector<8x32xbf16>
    %cst_151 = arith.constant dense<0.000000e+00> : vector<8x32xf32>
    %523 = tpu.matmul %521, %522, %cst_151 {dimension_numbers = #tpu.dot_dimension_numbers<[1], [0], [0], [1], [0, 0, 1, 1], [], []>} : vector<8x8xbf16>, vector<8x32xbf16>, vector<8x32xf32> -> vector<8x32xf32>
    %524 = arith.addf %501, %523 : vector<8x32xf32>
    %525 = vector.extract_strided_slice %475 {offsets = [0, 16], sizes = [8, 8], strides = [1, 1]} : vector<8x32xf32> to vector<8x8xf32>
    %526 = arith.truncf %525 : vector<8x8xf32> to vector<8x8xbf16>
    %527 = vector.extract_strided_slice %476 {offsets = [0, 16], sizes = [8, 8], strides = [1, 1]} : vector<8x32xf32> to vector<8x8xf32>
    %528 = arith.truncf %527 : vector<8x8xf32> to vector<8x8xbf16>
    %529 = vector.extract_strided_slice %477 {offsets = [0, 16], sizes = [8, 8], strides = [1, 1]} : vector<8x32xf32> to vector<8x8xf32>
    %530 = arith.truncf %529 : vector<8x8xf32> to vector<8x8xbf16>
    %cst_152 = arith.constant dense<0.000000e+00> : vector<8x8xf32>
    %531 = tpu.matmul %526, %528, %cst_152 {dimension_numbers = #tpu.dot_dimension_numbers<[1], [1], [0], [0], [0, 0, 1, 0], [], []>} : vector<8x8xbf16>, vector<8x8xbf16>, vector<8x8xf32> -> vector<8x8xf32>
    %cst_153 = arith.constant dense<0xFF800000> : vector<8xf32>
    %532 = vector.multi_reduction <maximumf>, %531, %cst_153 [1] : vector<8x8xf32> to vector<8xf32>
    %533 = vector.shape_cast %532 : vector<8xf32> to vector<8x1xf32>
    %534 = vector.broadcast %533 : vector<8x1xf32> to vector<8x8xf32>
    %535 = arith.subf %531, %534 : vector<8x8xf32>
    %536 = math.exp %535 : vector<8x8xf32>
    %cst_154 = arith.constant dense<0.000000e+00> : vector<8xf32>
    %537 = vector.multi_reduction <add>, %536, %cst_154 [1] : vector<8x8xf32> to vector<8xf32>
    %538 = vector.shape_cast %537 : vector<8xf32> to vector<8x1xf32>
    %539 = tpu.reciprocal %538 {approx = true} : vector<8x1xf32> -> vector<8x1xf32>
    %540 = vector.broadcast %539 : vector<8x1xf32> to vector<8x8xf32>
    %541 = arith.mulf %536, %540 : vector<8x8xf32>
    %542 = arith.truncf %541 : vector<8x8xf32> to vector<8x8xbf16>
    %cst_155 = arith.constant dense<0.000000e+00> : vector<8x8xf32>
    %543 = tpu.matmul %542, %530, %cst_155 {dimension_numbers = #tpu.dot_dimension_numbers<[1], [0], [0], [1], [0, 0, 1, 1], [], []>} : vector<8x8xbf16>, vector<8x8xbf16>, vector<8x8xf32> -> vector<8x8xf32>
    %544 = arith.truncf %543 : vector<8x8xf32> to vector<8x8xbf16>
    %545 = vector.extract_strided_slice %27 {offsets = [16, 0], sizes = [8, 32], strides = [1, 1]} : vector<32x32xbf16> to vector<8x32xbf16>
    %cst_156 = arith.constant dense<0.000000e+00> : vector<8x32xf32>
    %546 = tpu.matmul %544, %545, %cst_156 {dimension_numbers = #tpu.dot_dimension_numbers<[1], [0], [0], [1], [0, 0, 1, 1], [], []>} : vector<8x8xbf16>, vector<8x32xbf16>, vector<8x32xf32> -> vector<8x32xf32>
    %547 = arith.addf %524, %546 : vector<8x32xf32>
    %548 = vector.extract_strided_slice %475 {offsets = [0, 24], sizes = [8, 8], strides = [1, 1]} : vector<8x32xf32> to vector<8x8xf32>
    %549 = arith.truncf %548 : vector<8x8xf32> to vector<8x8xbf16>
    %550 = vector.extract_strided_slice %476 {offsets = [0, 24], sizes = [8, 8], strides = [1, 1]} : vector<8x32xf32> to vector<8x8xf32>
    %551 = arith.truncf %550 : vector<8x8xf32> to vector<8x8xbf16>
    %552 = vector.extract_strided_slice %477 {offsets = [0, 24], sizes = [8, 8], strides = [1, 1]} : vector<8x32xf32> to vector<8x8xf32>
    %553 = arith.truncf %552 : vector<8x8xf32> to vector<8x8xbf16>
    %cst_157 = arith.constant dense<0.000000e+00> : vector<8x8xf32>
    %554 = tpu.matmul %549, %551, %cst_157 {dimension_numbers = #tpu.dot_dimension_numbers<[1], [1], [0], [0], [0, 0, 1, 0], [], []>} : vector<8x8xbf16>, vector<8x8xbf16>, vector<8x8xf32> -> vector<8x8xf32>
    %cst_158 = arith.constant dense<0xFF800000> : vector<8xf32>
    %555 = vector.multi_reduction <maximumf>, %554, %cst_158 [1] : vector<8x8xf32> to vector<8xf32>
    %556 = vector.shape_cast %555 : vector<8xf32> to vector<8x1xf32>
    %557 = vector.broadcast %556 : vector<8x1xf32> to vector<8x8xf32>
    %558 = arith.subf %554, %557 : vector<8x8xf32>
    %559 = math.exp %558 : vector<8x8xf32>
    %cst_159 = arith.constant dense<0.000000e+00> : vector<8xf32>
    %560 = vector.multi_reduction <add>, %559, %cst_159 [1] : vector<8x8xf32> to vector<8xf32>
    %561 = vector.shape_cast %560 : vector<8xf32> to vector<8x1xf32>
    %562 = tpu.reciprocal %561 {approx = true} : vector<8x1xf32> -> vector<8x1xf32>
    %563 = vector.broadcast %562 : vector<8x1xf32> to vector<8x8xf32>
    %564 = arith.mulf %559, %563 : vector<8x8xf32>
    %565 = arith.truncf %564 : vector<8x8xf32> to vector<8x8xbf16>
    %cst_160 = arith.constant dense<0.000000e+00> : vector<8x8xf32>
    %566 = tpu.matmul %565, %553, %cst_160 {dimension_numbers = #tpu.dot_dimension_numbers<[1], [0], [0], [1], [0, 0, 1, 1], [], []>} : vector<8x8xbf16>, vector<8x8xbf16>, vector<8x8xf32> -> vector<8x8xf32>
    %567 = arith.truncf %566 : vector<8x8xf32> to vector<8x8xbf16>
    %568 = vector.extract_strided_slice %27 {offsets = [24, 0], sizes = [8, 32], strides = [1, 1]} : vector<32x32xbf16> to vector<8x32xbf16>
    %cst_161 = arith.constant dense<0.000000e+00> : vector<8x32xf32>
    %569 = tpu.matmul %567, %568, %cst_161 {dimension_numbers = #tpu.dot_dimension_numbers<[1], [0], [0], [1], [0, 0, 1, 1], [], []>} : vector<8x8xbf16>, vector<8x32xbf16>, vector<8x32xf32> -> vector<8x32xf32>
    %570 = arith.addf %547, %569 : vector<8x32xf32>
    %571 = vector.broadcast %70 : f32 to vector<8x32xf32>
    %572 = arith.mulf %570, %571 : vector<8x32xf32>
    %573 = arith.addf %466, %572 : vector<8x32xf32>
    %574 = arith.truncf %573 : vector<8x32xf32> to vector<8x32xbf16>
    %cst_162 = arith.constant dense<0.000000e+00> : vector<8x96xf32>
    %575 = tpu.matmul %574, %7, %cst_162 {dimension_numbers = #tpu.dot_dimension_numbers<[1], [0], [0], [1], [0, 0, 1, 1], [], []>} : vector<8x32xbf16>, vector<32x96xbf16>, vector<8x96xf32> -> vector<8x96xf32>
    %576 = vector.broadcast %9 : vector<1x96xf32> to vector<8x96xf32>
    %577 = arith.addf %575, %576 : vector<8x96xf32>
    %cst_163 = arith.constant 0.000000e+00 : f32
    %578 = vector.broadcast %cst_163 : f32 to vector<8x96xf32>
    %579 = arith.maximumf %577, %578 : vector<8x96xf32>
    %580 = arith.truncf %579 : vector<8x96xf32> to vector<8x96xbf16>
    %cst_164 = arith.constant dense<0.000000e+00> : vector<8x32xf32>
    %581 = tpu.matmul %580, %57, %cst_164 {dimension_numbers = #tpu.dot_dimension_numbers<[1], [0], [0], [1], [0, 0, 1, 1], [], []>} : vector<8x96xbf16>, vector<96x32xbf16>, vector<8x32xf32> -> vector<8x32xf32>
    %582 = vector.broadcast %59 : vector<1x32xf32> to vector<8x32xf32>
    %583 = arith.addf %581, %582 : vector<8x32xf32>
    %584 = vector.broadcast %71 : f32 to vector<8x32xf32>
    %585 = arith.mulf %583, %584 : vector<8x32xf32>
    %586 = arith.addf %573, %585 : vector<8x32xf32>
    %587 = arith.truncf %465 : vector<3x32xf32> to vector<3x32xbf16>
    %cst_165 = arith.constant dense<0.000000e+00> : vector<3x32xf32>
    %588 = tpu.matmul %587, %32, %cst_165 {dimension_numbers = #tpu.dot_dimension_numbers<[1], [0], [0], [1], [0, 0, 1, 1], [], []>} : vector<3x32xbf16>, vector<32x32xbf16>, vector<3x32xf32> -> vector<3x32xf32>
    %589 = vector.broadcast %34 : vector<1x32xf32> to vector<3x32xf32>
    %590 = arith.addf %588, %589 : vector<3x32xf32>
    %591 = arith.truncf %586 : vector<8x32xf32> to vector<8x32xbf16>
    %cst_166 = arith.constant dense<0.000000e+00> : vector<8x96xf32>
    %592 = tpu.matmul %591, %12, %cst_166 {dimension_numbers = #tpu.dot_dimension_numbers<[1], [0], [0], [1], [0, 0, 1, 1], [], []>} : vector<8x32xbf16>, vector<32x96xbf16>, vector<8x96xf32> -> vector<8x96xf32>
    %593 = vector.broadcast %14 : vector<1x96xf32> to vector<8x96xf32>
    %594 = arith.addf %592, %593 : vector<8x96xf32>
    %595 = vector.extract_strided_slice %594 {offsets = [0, 0], sizes = [8, 32], strides = [1, 1]} : vector<8x96xf32> to vector<8x32xf32>
    %596 = vector.extract_strided_slice %594 {offsets = [0, 32], sizes = [8, 32], strides = [1, 1]} : vector<8x96xf32> to vector<8x32xf32>
    %597 = vector.extract_strided_slice %594 {offsets = [0, 64], sizes = [8, 32], strides = [1, 1]} : vector<8x96xf32> to vector<8x32xf32>
    %598 = arith.truncf %468 : vector<24x32xf32> to vector<24x32xbf16>
    %cst_167 = arith.constant dense<0.000000e+00> : vector<24x64xf32>
    %599 = tpu.matmul %598, %47, %cst_167 {dimension_numbers = #tpu.dot_dimension_numbers<[1], [0], [0], [1], [0, 0, 1, 1], [], []>} : vector<24x32xbf16>, vector<32x64xbf16>, vector<24x64xf32> -> vector<24x64xf32>
    %600 = vector.broadcast %49 : vector<1x64xf32> to vector<24x64xf32>
    %601 = arith.addf %599, %600 : vector<24x64xf32>
    %602 = vector.extract_strided_slice %601 {offsets = [0, 0], sizes = [24, 32], strides = [1, 1]} : vector<24x64xf32> to vector<24x32xf32>
    %603 = vector.shape_cast %602 : vector<24x32xf32> to vector<3x8x32xf32>
    %604 = vector.extract_strided_slice %601 {offsets = [0, 32], sizes = [24, 32], strides = [1, 1]} : vector<24x64xf32> to vector<24x32xf32>
    %605 = vector.shape_cast %604 : vector<24x32xf32> to vector<3x8x32xf32>
    %606 = vector.shape_cast %590 : vector<3x32xf32> to vector<3x1x32xf32>
    %607 = vector.broadcast %606 : vector<3x1x32xf32> to vector<3x8x32xf32>
    %608 = arith.addf %607, %603 : vector<3x8x32xf32>
    %cst_168 = arith.constant 0.353553385 : f32
    %609 = vector.broadcast %cst_168 : f32 to vector<3x8x32xf32>
    %610 = arith.mulf %608, %609 : vector<3x8x32xf32>
    %611 = vector.shape_cast %595 : vector<8x32xf32> to vector<1x8x32xf32>
    %612 = vector.broadcast %611 : vector<1x8x32xf32> to vector<3x8x32xf32>
    %613 = arith.addf %612, %605 : vector<3x8x32xf32>
    %614 = vector.extract_strided_slice %610 {offsets = [0, 0, 0], sizes = [3, 8, 8], strides = [1, 1, 1]} : vector<3x8x32xf32> to vector<3x8x8xf32>
    %615 = arith.truncf %614 : vector<3x8x8xf32> to vector<3x8x8xbf16>
    %616 = vector.extract_strided_slice %613 {offsets = [0, 0, 0], sizes = [3, 8, 8], strides = [1, 1, 1]} : vector<3x8x32xf32> to vector<3x8x8xf32>
    %617 = arith.truncf %616 : vector<3x8x8xf32> to vector<3x8x8xbf16>
    %618 = vector.extract_strided_slice %596 {offsets = [0, 0], sizes = [8, 8], strides = [1, 1]} : vector<8x32xf32> to vector<8x8xf32>
    %619 = arith.truncf %618 : vector<8x8xf32> to vector<8x8xbf16>
    %cst_169 = arith.constant dense<0.000000e+00> : vector<3x8x8xf32>
    %620 = tpu.matmul %615, %617, %cst_169 {dimension_numbers = #tpu.dot_dimension_numbers<[2], [2], [1], [1], [0, 0, 0, 1, 1, 1], [0], [0]>} : vector<3x8x8xbf16>, vector<3x8x8xbf16>, vector<3x8x8xf32> -> vector<3x8x8xf32>
    %cst_170 = arith.constant dense<0xFF800000> : vector<3x8xf32>
    %621 = vector.multi_reduction <maximumf>, %620, %cst_170 [1] : vector<3x8x8xf32> to vector<3x8xf32>
    %622 = vector.shape_cast %621 : vector<3x8xf32> to vector<3x1x8xf32>
    %623 = vector.broadcast %622 : vector<3x1x8xf32> to vector<3x8x8xf32>
    %624 = arith.subf %620, %623 : vector<3x8x8xf32>
    %625 = math.exp %624 : vector<3x8x8xf32>
    %cst_171 = arith.constant dense<0.000000e+00> : vector<3x8xf32>
    %626 = vector.multi_reduction <add>, %625, %cst_171 [1] : vector<3x8x8xf32> to vector<3x8xf32>
    %627 = vector.shape_cast %626 : vector<3x8xf32> to vector<3x1x8xf32>
    %628 = tpu.reciprocal %627 {approx = true} : vector<3x1x8xf32> -> vector<3x1x8xf32>
    %629 = vector.broadcast %628 : vector<3x1x8xf32> to vector<3x8x8xf32>
    %630 = arith.mulf %625, %629 : vector<3x8x8xf32>
    %cst_172 = arith.constant dense<0.000000e+00> : vector<3x8xf32>
    %631 = vector.multi_reduction <add>, %630, %cst_172 [1] : vector<3x8x8xf32> to vector<3x8xf32>
    %632 = arith.truncf %631 : vector<3x8xf32> to vector<3x8xbf16>
    %cst_173 = arith.constant dense<0.000000e+00> : vector<3x8xf32>
    %633 = tpu.matmul %632, %619, %cst_173 {dimension_numbers = #tpu.dot_dimension_numbers<[1], [0], [0], [1], [0, 0, 1, 1], [], []>} : vector<3x8xbf16>, vector<8x8xbf16>, vector<3x8xf32> -> vector<3x8xf32>
    %634 = arith.truncf %633 : vector<3x8xf32> to vector<3x8xbf16>
    %635 = vector.extract_strided_slice %37 {offsets = [0, 0], sizes = [8, 32], strides = [1, 1]} : vector<32x32xbf16> to vector<8x32xbf16>
    %cst_174 = arith.constant dense<0.000000e+00> : vector<3x32xf32>
    %636 = tpu.matmul %634, %635, %cst_174 {dimension_numbers = #tpu.dot_dimension_numbers<[1], [0], [0], [1], [0, 0, 1, 1], [], []>} : vector<3x8xbf16>, vector<8x32xbf16>, vector<3x32xf32> -> vector<3x32xf32>
    %637 = vector.broadcast %39 : vector<1x32xf32> to vector<3x32xf32>
    %638 = arith.addf %637, %636 : vector<3x32xf32>
    %639 = vector.extract_strided_slice %610 {offsets = [0, 0, 8], sizes = [3, 8, 8], strides = [1, 1, 1]} : vector<3x8x32xf32> to vector<3x8x8xf32>
    %640 = arith.truncf %639 : vector<3x8x8xf32> to vector<3x8x8xbf16>
    %641 = vector.extract_strided_slice %613 {offsets = [0, 0, 8], sizes = [3, 8, 8], strides = [1, 1, 1]} : vector<3x8x32xf32> to vector<3x8x8xf32>
    %642 = arith.truncf %641 : vector<3x8x8xf32> to vector<3x8x8xbf16>
    %643 = vector.extract_strided_slice %596 {offsets = [0, 8], sizes = [8, 8], strides = [1, 1]} : vector<8x32xf32> to vector<8x8xf32>
    %644 = arith.truncf %643 : vector<8x8xf32> to vector<8x8xbf16>
    %cst_175 = arith.constant dense<0.000000e+00> : vector<3x8x8xf32>
    %645 = tpu.matmul %640, %642, %cst_175 {dimension_numbers = #tpu.dot_dimension_numbers<[2], [2], [1], [1], [0, 0, 0, 1, 1, 1], [0], [0]>} : vector<3x8x8xbf16>, vector<3x8x8xbf16>, vector<3x8x8xf32> -> vector<3x8x8xf32>
    %cst_176 = arith.constant dense<0xFF800000> : vector<3x8xf32>
    %646 = vector.multi_reduction <maximumf>, %645, %cst_176 [1] : vector<3x8x8xf32> to vector<3x8xf32>
    %647 = vector.shape_cast %646 : vector<3x8xf32> to vector<3x1x8xf32>
    %648 = vector.broadcast %647 : vector<3x1x8xf32> to vector<3x8x8xf32>
    %649 = arith.subf %645, %648 : vector<3x8x8xf32>
    %650 = math.exp %649 : vector<3x8x8xf32>
    %cst_177 = arith.constant dense<0.000000e+00> : vector<3x8xf32>
    %651 = vector.multi_reduction <add>, %650, %cst_177 [1] : vector<3x8x8xf32> to vector<3x8xf32>
    %652 = vector.shape_cast %651 : vector<3x8xf32> to vector<3x1x8xf32>
    %653 = tpu.reciprocal %652 {approx = true} : vector<3x1x8xf32> -> vector<3x1x8xf32>
    %654 = vector.broadcast %653 : vector<3x1x8xf32> to vector<3x8x8xf32>
    %655 = arith.mulf %650, %654 : vector<3x8x8xf32>
    %cst_178 = arith.constant dense<0.000000e+00> : vector<3x8xf32>
    %656 = vector.multi_reduction <add>, %655, %cst_178 [1] : vector<3x8x8xf32> to vector<3x8xf32>
    %657 = arith.truncf %656 : vector<3x8xf32> to vector<3x8xbf16>
    %cst_179 = arith.constant dense<0.000000e+00> : vector<3x8xf32>
    %658 = tpu.matmul %657, %644, %cst_179 {dimension_numbers = #tpu.dot_dimension_numbers<[1], [0], [0], [1], [0, 0, 1, 1], [], []>} : vector<3x8xbf16>, vector<8x8xbf16>, vector<3x8xf32> -> vector<3x8xf32>
    %659 = arith.truncf %658 : vector<3x8xf32> to vector<3x8xbf16>
    %660 = vector.extract_strided_slice %37 {offsets = [8, 0], sizes = [8, 32], strides = [1, 1]} : vector<32x32xbf16> to vector<8x32xbf16>
    %cst_180 = arith.constant dense<0.000000e+00> : vector<3x32xf32>
    %661 = tpu.matmul %659, %660, %cst_180 {dimension_numbers = #tpu.dot_dimension_numbers<[1], [0], [0], [1], [0, 0, 1, 1], [], []>} : vector<3x8xbf16>, vector<8x32xbf16>, vector<3x32xf32> -> vector<3x32xf32>
    %662 = arith.addf %638, %661 : vector<3x32xf32>
    %663 = vector.extract_strided_slice %610 {offsets = [0, 0, 16], sizes = [3, 8, 8], strides = [1, 1, 1]} : vector<3x8x32xf32> to vector<3x8x8xf32>
    %664 = arith.truncf %663 : vector<3x8x8xf32> to vector<3x8x8xbf16>
    %665 = vector.extract_strided_slice %613 {offsets = [0, 0, 16], sizes = [3, 8, 8], strides = [1, 1, 1]} : vector<3x8x32xf32> to vector<3x8x8xf32>
    %666 = arith.truncf %665 : vector<3x8x8xf32> to vector<3x8x8xbf16>
    %667 = vector.extract_strided_slice %596 {offsets = [0, 16], sizes = [8, 8], strides = [1, 1]} : vector<8x32xf32> to vector<8x8xf32>
    %668 = arith.truncf %667 : vector<8x8xf32> to vector<8x8xbf16>
    %cst_181 = arith.constant dense<0.000000e+00> : vector<3x8x8xf32>
    %669 = tpu.matmul %664, %666, %cst_181 {dimension_numbers = #tpu.dot_dimension_numbers<[2], [2], [1], [1], [0, 0, 0, 1, 1, 1], [0], [0]>} : vector<3x8x8xbf16>, vector<3x8x8xbf16>, vector<3x8x8xf32> -> vector<3x8x8xf32>
    %cst_182 = arith.constant dense<0xFF800000> : vector<3x8xf32>
    %670 = vector.multi_reduction <maximumf>, %669, %cst_182 [1] : vector<3x8x8xf32> to vector<3x8xf32>
    %671 = vector.shape_cast %670 : vector<3x8xf32> to vector<3x1x8xf32>
    %672 = vector.broadcast %671 : vector<3x1x8xf32> to vector<3x8x8xf32>
    %673 = arith.subf %669, %672 : vector<3x8x8xf32>
    %674 = math.exp %673 : vector<3x8x8xf32>
    %cst_183 = arith.constant dense<0.000000e+00> : vector<3x8xf32>
    %675 = vector.multi_reduction <add>, %674, %cst_183 [1] : vector<3x8x8xf32> to vector<3x8xf32>
    %676 = vector.shape_cast %675 : vector<3x8xf32> to vector<3x1x8xf32>
    %677 = tpu.reciprocal %676 {approx = true} : vector<3x1x8xf32> -> vector<3x1x8xf32>
    %678 = vector.broadcast %677 : vector<3x1x8xf32> to vector<3x8x8xf32>
    %679 = arith.mulf %674, %678 : vector<3x8x8xf32>
    %cst_184 = arith.constant dense<0.000000e+00> : vector<3x8xf32>
    %680 = vector.multi_reduction <add>, %679, %cst_184 [1] : vector<3x8x8xf32> to vector<3x8xf32>
    %681 = arith.truncf %680 : vector<3x8xf32> to vector<3x8xbf16>
    %cst_185 = arith.constant dense<0.000000e+00> : vector<3x8xf32>
    %682 = tpu.matmul %681, %668, %cst_185 {dimension_numbers = #tpu.dot_dimension_numbers<[1], [0], [0], [1], [0, 0, 1, 1], [], []>} : vector<3x8xbf16>, vector<8x8xbf16>, vector<3x8xf32> -> vector<3x8xf32>
    %683 = arith.truncf %682 : vector<3x8xf32> to vector<3x8xbf16>
    %684 = vector.extract_strided_slice %37 {offsets = [16, 0], sizes = [8, 32], strides = [1, 1]} : vector<32x32xbf16> to vector<8x32xbf16>
    %cst_186 = arith.constant dense<0.000000e+00> : vector<3x32xf32>
    %685 = tpu.matmul %683, %684, %cst_186 {dimension_numbers = #tpu.dot_dimension_numbers<[1], [0], [0], [1], [0, 0, 1, 1], [], []>} : vector<3x8xbf16>, vector<8x32xbf16>, vector<3x32xf32> -> vector<3x32xf32>
    %686 = arith.addf %662, %685 : vector<3x32xf32>
    %687 = vector.extract_strided_slice %610 {offsets = [0, 0, 24], sizes = [3, 8, 8], strides = [1, 1, 1]} : vector<3x8x32xf32> to vector<3x8x8xf32>
    %688 = arith.truncf %687 : vector<3x8x8xf32> to vector<3x8x8xbf16>
    %689 = vector.extract_strided_slice %613 {offsets = [0, 0, 24], sizes = [3, 8, 8], strides = [1, 1, 1]} : vector<3x8x32xf32> to vector<3x8x8xf32>
    %690 = arith.truncf %689 : vector<3x8x8xf32> to vector<3x8x8xbf16>
    %691 = vector.extract_strided_slice %596 {offsets = [0, 24], sizes = [8, 8], strides = [1, 1]} : vector<8x32xf32> to vector<8x8xf32>
    %692 = arith.truncf %691 : vector<8x8xf32> to vector<8x8xbf16>
    %cst_187 = arith.constant dense<0.000000e+00> : vector<3x8x8xf32>
    %693 = tpu.matmul %688, %690, %cst_187 {dimension_numbers = #tpu.dot_dimension_numbers<[2], [2], [1], [1], [0, 0, 0, 1, 1, 1], [0], [0]>} : vector<3x8x8xbf16>, vector<3x8x8xbf16>, vector<3x8x8xf32> -> vector<3x8x8xf32>
    %cst_188 = arith.constant dense<0xFF800000> : vector<3x8xf32>
    %694 = vector.multi_reduction <maximumf>, %693, %cst_188 [1] : vector<3x8x8xf32> to vector<3x8xf32>
    %695 = vector.shape_cast %694 : vector<3x8xf32> to vector<3x1x8xf32>
    %696 = vector.broadcast %695 : vector<3x1x8xf32> to vector<3x8x8xf32>
    %697 = arith.subf %693, %696 : vector<3x8x8xf32>
    %698 = math.exp %697 : vector<3x8x8xf32>
    %cst_189 = arith.constant dense<0.000000e+00> : vector<3x8xf32>
    %699 = vector.multi_reduction <add>, %698, %cst_189 [1] : vector<3x8x8xf32> to vector<3x8xf32>
    %700 = vector.shape_cast %699 : vector<3x8xf32> to vector<3x1x8xf32>
    %701 = tpu.reciprocal %700 {approx = true} : vector<3x1x8xf32> -> vector<3x1x8xf32>
    %702 = vector.broadcast %701 : vector<3x1x8xf32> to vector<3x8x8xf32>
    %703 = arith.mulf %698, %702 : vector<3x8x8xf32>
    %cst_190 = arith.constant dense<0.000000e+00> : vector<3x8xf32>
    %704 = vector.multi_reduction <add>, %703, %cst_190 [1] : vector<3x8x8xf32> to vector<3x8xf32>
    %705 = arith.truncf %704 : vector<3x8xf32> to vector<3x8xbf16>
    %cst_191 = arith.constant dense<0.000000e+00> : vector<3x8xf32>
    %706 = tpu.matmul %705, %692, %cst_191 {dimension_numbers = #tpu.dot_dimension_numbers<[1], [0], [0], [1], [0, 0, 1, 1], [], []>} : vector<3x8xbf16>, vector<8x8xbf16>, vector<3x8xf32> -> vector<3x8xf32>
    %707 = arith.truncf %706 : vector<3x8xf32> to vector<3x8xbf16>
    %708 = vector.extract_strided_slice %37 {offsets = [24, 0], sizes = [8, 32], strides = [1, 1]} : vector<32x32xbf16> to vector<8x32xbf16>
    %cst_192 = arith.constant dense<0.000000e+00> : vector<3x32xf32>
    %709 = tpu.matmul %707, %708, %cst_192 {dimension_numbers = #tpu.dot_dimension_numbers<[1], [0], [0], [1], [0, 0, 1, 1], [], []>} : vector<3x8xbf16>, vector<8x32xbf16>, vector<3x32xf32> -> vector<3x32xf32>
    %710 = arith.addf %686, %709 : vector<3x32xf32>
    %711 = vector.broadcast %72 : f32 to vector<3x32xf32>
    %712 = arith.mulf %710, %711 : vector<3x32xf32>
    %713 = arith.addf %465, %712 : vector<3x32xf32>
    %714 = arith.truncf %713 : vector<3x32xf32> to vector<3x32xbf16>
    %cst_193 = arith.constant dense<0.000000e+00> : vector<3x96xf32>
    %715 = tpu.matmul %714, %17, %cst_193 {dimension_numbers = #tpu.dot_dimension_numbers<[1], [0], [0], [1], [0, 0, 1, 1], [], []>} : vector<3x32xbf16>, vector<32x96xbf16>, vector<3x96xf32> -> vector<3x96xf32>
    %716 = vector.broadcast %19 : vector<1x96xf32> to vector<3x96xf32>
    %717 = arith.addf %715, %716 : vector<3x96xf32>
    %cst_194 = arith.constant 0.000000e+00 : f32
    %718 = vector.broadcast %cst_194 : f32 to vector<3x96xf32>
    %719 = arith.maximumf %717, %718 : vector<3x96xf32>
    %720 = arith.truncf %719 : vector<3x96xf32> to vector<3x96xbf16>
    %cst_195 = arith.constant dense<0.000000e+00> : vector<3x32xf32>
    %721 = tpu.matmul %720, %62, %cst_195 {dimension_numbers = #tpu.dot_dimension_numbers<[1], [0], [0], [1], [0, 0, 1, 1], [], []>} : vector<3x96xbf16>, vector<96x32xbf16>, vector<3x32xf32> -> vector<3x32xf32>
    %722 = vector.broadcast %64 : vector<1x32xf32> to vector<3x32xf32>
    %723 = arith.addf %721, %722 : vector<3x32xf32>
    %724 = vector.broadcast %73 : f32 to vector<3x32xf32>
    %725 = arith.mulf %723, %724 : vector<3x32xf32>
    %726 = arith.addf %713, %725 : vector<3x32xf32>
    %727 = arith.truncf %726 : vector<3x32xf32> to vector<3x32xbf16>
    %cst_196 = arith.constant dense<0.000000e+00> : vector<3x64xf32>
    %728 = tpu.matmul %727, %52, %cst_196 {dimension_numbers = #tpu.dot_dimension_numbers<[1], [0], [0], [1], [0, 0, 1, 1], [], []>} : vector<3x32xbf16>, vector<32x64xbf16>, vector<3x64xf32> -> vector<3x64xf32>
    %729 = vector.broadcast %54 : vector<1x64xf32> to vector<3x64xf32>
    %730 = arith.addf %728, %729 : vector<3x64xf32>
    %731 = vector.extract_strided_slice %730 {offsets = [0, 0], sizes = [3, 32], strides = [1, 1]} : vector<3x64xf32> to vector<3x32xf32>
    %732 = vector.extract_strided_slice %730 {offsets = [0, 32], sizes = [3, 32], strides = [1, 1]} : vector<3x64xf32> to vector<3x32xf32>
    %cst_197 = arith.constant 0.353553385 : f32
    %733 = vector.broadcast %cst_197 : f32 to vector<8x32xf32>
    %734 = arith.mulf %597, %733 : vector<8x32xf32>
    %735 = vector.extract_strided_slice %734 {offsets = [0, 0], sizes = [8, 8], strides = [1, 1]} : vector<8x32xf32> to vector<8x8xf32>
    %736 = arith.truncf %735 : vector<8x8xf32> to vector<8x8xbf16>
    %737 = vector.extract_strided_slice %731 {offsets = [0, 0], sizes = [3, 8], strides = [1, 1]} : vector<3x32xf32> to vector<3x8xf32>
    %738 = arith.truncf %737 : vector<3x8xf32> to vector<3x8xbf16>
    %739 = vector.extract_strided_slice %732 {offsets = [0, 0], sizes = [3, 8], strides = [1, 1]} : vector<3x32xf32> to vector<3x8xf32>
    %740 = arith.truncf %739 : vector<3x8xf32> to vector<3x8xbf16>
    %cst_198 = arith.constant dense<0.000000e+00> : vector<8x3xf32>
    %741 = tpu.matmul %736, %738, %cst_198 {dimension_numbers = #tpu.dot_dimension_numbers<[1], [1], [0], [0], [0, 0, 1, 0], [], []>} : vector<8x8xbf16>, vector<3x8xbf16>, vector<8x3xf32> -> vector<8x3xf32>
    %cst_199 = arith.constant dense<0xFF800000> : vector<8xf32>
    %742 = vector.multi_reduction <maximumf>, %741, %cst_199 [1] : vector<8x3xf32> to vector<8xf32>
    %743 = vector.shape_cast %742 : vector<8xf32> to vector<8x1xf32>
    %744 = vector.broadcast %743 : vector<8x1xf32> to vector<8x3xf32>
    %745 = arith.subf %741, %744 : vector<8x3xf32>
    %746 = math.exp %745 : vector<8x3xf32>
    %cst_200 = arith.constant dense<0.000000e+00> : vector<8xf32>
    %747 = vector.multi_reduction <add>, %746, %cst_200 [1] : vector<8x3xf32> to vector<8xf32>
    %748 = vector.shape_cast %747 : vector<8xf32> to vector<8x1xf32>
    %749 = tpu.reciprocal %748 {approx = true} : vector<8x1xf32> -> vector<8x1xf32>
    %750 = vector.broadcast %749 : vector<8x1xf32> to vector<8x3xf32>
    %751 = arith.mulf %746, %750 : vector<8x3xf32>
    %752 = arith.truncf %751 : vector<8x3xf32> to vector<8x3xbf16>
    %cst_201 = arith.constant dense<0.000000e+00> : vector<8x8xf32>
    %753 = tpu.matmul %752, %740, %cst_201 {dimension_numbers = #tpu.dot_dimension_numbers<[1], [0], [0], [1], [0, 0, 1, 1], [], []>} : vector<8x3xbf16>, vector<3x8xbf16>, vector<8x8xf32> -> vector<8x8xf32>
    %754 = arith.truncf %753 : vector<8x8xf32> to vector<8x8xbf16>
    %755 = vector.extract_strided_slice %42 {offsets = [0, 0], sizes = [8, 32], strides = [1, 1]} : vector<32x32xbf16> to vector<8x32xbf16>
    %cst_202 = arith.constant dense<0.000000e+00> : vector<8x32xf32>
    %756 = tpu.matmul %754, %755, %cst_202 {dimension_numbers = #tpu.dot_dimension_numbers<[1], [0], [0], [1], [0, 0, 1, 1], [], []>} : vector<8x8xbf16>, vector<8x32xbf16>, vector<8x32xf32> -> vector<8x32xf32>
    %757 = vector.broadcast %44 : vector<1x32xf32> to vector<8x32xf32>
    %758 = arith.addf %757, %756 : vector<8x32xf32>
    %759 = vector.extract_strided_slice %734 {offsets = [0, 8], sizes = [8, 8], strides = [1, 1]} : vector<8x32xf32> to vector<8x8xf32>
    %760 = arith.truncf %759 : vector<8x8xf32> to vector<8x8xbf16>
    %761 = vector.extract_strided_slice %731 {offsets = [0, 8], sizes = [3, 8], strides = [1, 1]} : vector<3x32xf32> to vector<3x8xf32>
    %762 = arith.truncf %761 : vector<3x8xf32> to vector<3x8xbf16>
    %763 = vector.extract_strided_slice %732 {offsets = [0, 8], sizes = [3, 8], strides = [1, 1]} : vector<3x32xf32> to vector<3x8xf32>
    %764 = arith.truncf %763 : vector<3x8xf32> to vector<3x8xbf16>
    %cst_203 = arith.constant dense<0.000000e+00> : vector<8x3xf32>
    %765 = tpu.matmul %760, %762, %cst_203 {dimension_numbers = #tpu.dot_dimension_numbers<[1], [1], [0], [0], [0, 0, 1, 0], [], []>} : vector<8x8xbf16>, vector<3x8xbf16>, vector<8x3xf32> -> vector<8x3xf32>
    %cst_204 = arith.constant dense<0xFF800000> : vector<8xf32>
    %766 = vector.multi_reduction <maximumf>, %765, %cst_204 [1] : vector<8x3xf32> to vector<8xf32>
    %767 = vector.shape_cast %766 : vector<8xf32> to vector<8x1xf32>
    %768 = vector.broadcast %767 : vector<8x1xf32> to vector<8x3xf32>
    %769 = arith.subf %765, %768 : vector<8x3xf32>
    %770 = math.exp %769 : vector<8x3xf32>
    %cst_205 = arith.constant dense<0.000000e+00> : vector<8xf32>
    %771 = vector.multi_reduction <add>, %770, %cst_205 [1] : vector<8x3xf32> to vector<8xf32>
    %772 = vector.shape_cast %771 : vector<8xf32> to vector<8x1xf32>
    %773 = tpu.reciprocal %772 {approx = true} : vector<8x1xf32> -> vector<8x1xf32>
    %774 = vector.broadcast %773 : vector<8x1xf32> to vector<8x3xf32>
    %775 = arith.mulf %770, %774 : vector<8x3xf32>
    %776 = arith.truncf %775 : vector<8x3xf32> to vector<8x3xbf16>
    %cst_206 = arith.constant dense<0.000000e+00> : vector<8x8xf32>
    %777 = tpu.matmul %776, %764, %cst_206 {dimension_numbers = #tpu.dot_dimension_numbers<[1], [0], [0], [1], [0, 0, 1, 1], [], []>} : vector<8x3xbf16>, vector<3x8xbf16>, vector<8x8xf32> -> vector<8x8xf32>
    %778 = arith.truncf %777 : vector<8x8xf32> to vector<8x8xbf16>
    %779 = vector.extract_strided_slice %42 {offsets = [8, 0], sizes = [8, 32], strides = [1, 1]} : vector<32x32xbf16> to vector<8x32xbf16>
    %cst_207 = arith.constant dense<0.000000e+00> : vector<8x32xf32>
    %780 = tpu.matmul %778, %779, %cst_207 {dimension_numbers = #tpu.dot_dimension_numbers<[1], [0], [0], [1], [0, 0, 1, 1], [], []>} : vector<8x8xbf16>, vector<8x32xbf16>, vector<8x32xf32> -> vector<8x32xf32>
    %781 = arith.addf %758, %780 : vector<8x32xf32>
    %782 = vector.extract_strided_slice %734 {offsets = [0, 16], sizes = [8, 8], strides = [1, 1]} : vector<8x32xf32> to vector<8x8xf32>
    %783 = arith.truncf %782 : vector<8x8xf32> to vector<8x8xbf16>
    %784 = vector.extract_strided_slice %731 {offsets = [0, 16], sizes = [3, 8], strides = [1, 1]} : vector<3x32xf32> to vector<3x8xf32>
    %785 = arith.truncf %784 : vector<3x8xf32> to vector<3x8xbf16>
    %786 = vector.extract_strided_slice %732 {offsets = [0, 16], sizes = [3, 8], strides = [1, 1]} : vector<3x32xf32> to vector<3x8xf32>
    %787 = arith.truncf %786 : vector<3x8xf32> to vector<3x8xbf16>
    %cst_208 = arith.constant dense<0.000000e+00> : vector<8x3xf32>
    %788 = tpu.matmul %783, %785, %cst_208 {dimension_numbers = #tpu.dot_dimension_numbers<[1], [1], [0], [0], [0, 0, 1, 0], [], []>} : vector<8x8xbf16>, vector<3x8xbf16>, vector<8x3xf32> -> vector<8x3xf32>
    %cst_209 = arith.constant dense<0xFF800000> : vector<8xf32>
    %789 = vector.multi_reduction <maximumf>, %788, %cst_209 [1] : vector<8x3xf32> to vector<8xf32>
    %790 = vector.shape_cast %789 : vector<8xf32> to vector<8x1xf32>
    %791 = vector.broadcast %790 : vector<8x1xf32> to vector<8x3xf32>
    %792 = arith.subf %788, %791 : vector<8x3xf32>
    %793 = math.exp %792 : vector<8x3xf32>
    %cst_210 = arith.constant dense<0.000000e+00> : vector<8xf32>
    %794 = vector.multi_reduction <add>, %793, %cst_210 [1] : vector<8x3xf32> to vector<8xf32>
    %795 = vector.shape_cast %794 : vector<8xf32> to vector<8x1xf32>
    %796 = tpu.reciprocal %795 {approx = true} : vector<8x1xf32> -> vector<8x1xf32>
    %797 = vector.broadcast %796 : vector<8x1xf32> to vector<8x3xf32>
    %798 = arith.mulf %793, %797 : vector<8x3xf32>
    %799 = arith.truncf %798 : vector<8x3xf32> to vector<8x3xbf16>
    %cst_211 = arith.constant dense<0.000000e+00> : vector<8x8xf32>
    %800 = tpu.matmul %799, %787, %cst_211 {dimension_numbers = #tpu.dot_dimension_numbers<[1], [0], [0], [1], [0, 0, 1, 1], [], []>} : vector<8x3xbf16>, vector<3x8xbf16>, vector<8x8xf32> -> vector<8x8xf32>
    %801 = arith.truncf %800 : vector<8x8xf32> to vector<8x8xbf16>
    %802 = vector.extract_strided_slice %42 {offsets = [16, 0], sizes = [8, 32], strides = [1, 1]} : vector<32x32xbf16> to vector<8x32xbf16>
    %cst_212 = arith.constant dense<0.000000e+00> : vector<8x32xf32>
    %803 = tpu.matmul %801, %802, %cst_212 {dimension_numbers = #tpu.dot_dimension_numbers<[1], [0], [0], [1], [0, 0, 1, 1], [], []>} : vector<8x8xbf16>, vector<8x32xbf16>, vector<8x32xf32> -> vector<8x32xf32>
    %804 = arith.addf %781, %803 : vector<8x32xf32>
    %805 = vector.extract_strided_slice %734 {offsets = [0, 24], sizes = [8, 8], strides = [1, 1]} : vector<8x32xf32> to vector<8x8xf32>
    %806 = arith.truncf %805 : vector<8x8xf32> to vector<8x8xbf16>
    %807 = vector.extract_strided_slice %731 {offsets = [0, 24], sizes = [3, 8], strides = [1, 1]} : vector<3x32xf32> to vector<3x8xf32>
    %808 = arith.truncf %807 : vector<3x8xf32> to vector<3x8xbf16>
    %809 = vector.extract_strided_slice %732 {offsets = [0, 24], sizes = [3, 8], strides = [1, 1]} : vector<3x32xf32> to vector<3x8xf32>
    %810 = arith.truncf %809 : vector<3x8xf32> to vector<3x8xbf16>
    %cst_213 = arith.constant dense<0.000000e+00> : vector<8x3xf32>
    %811 = tpu.matmul %806, %808, %cst_213 {dimension_numbers = #tpu.dot_dimension_numbers<[1], [1], [0], [0], [0, 0, 1, 0], [], []>} : vector<8x8xbf16>, vector<3x8xbf16>, vector<8x3xf32> -> vector<8x3xf32>
    %cst_214 = arith.constant dense<0xFF800000> : vector<8xf32>
    %812 = vector.multi_reduction <maximumf>, %811, %cst_214 [1] : vector<8x3xf32> to vector<8xf32>
    %813 = vector.shape_cast %812 : vector<8xf32> to vector<8x1xf32>
    %814 = vector.broadcast %813 : vector<8x1xf32> to vector<8x3xf32>
    %815 = arith.subf %811, %814 : vector<8x3xf32>
    %816 = math.exp %815 : vector<8x3xf32>
    %cst_215 = arith.constant dense<0.000000e+00> : vector<8xf32>
    %817 = vector.multi_reduction <add>, %816, %cst_215 [1] : vector<8x3xf32> to vector<8xf32>
    %818 = vector.shape_cast %817 : vector<8xf32> to vector<8x1xf32>
    %819 = tpu.reciprocal %818 {approx = true} : vector<8x1xf32> -> vector<8x1xf32>
    %820 = vector.broadcast %819 : vector<8x1xf32> to vector<8x3xf32>
    %821 = arith.mulf %816, %820 : vector<8x3xf32>
    %822 = arith.truncf %821 : vector<8x3xf32> to vector<8x3xbf16>
    %cst_216 = arith.constant dense<0.000000e+00> : vector<8x8xf32>
    %823 = tpu.matmul %822, %810, %cst_216 {dimension_numbers = #tpu.dot_dimension_numbers<[1], [0], [0], [1], [0, 0, 1, 1], [], []>} : vector<8x3xbf16>, vector<3x8xbf16>, vector<8x8xf32> -> vector<8x8xf32>
    %824 = arith.truncf %823 : vector<8x8xf32> to vector<8x8xbf16>
    %825 = vector.extract_strided_slice %42 {offsets = [24, 0], sizes = [8, 32], strides = [1, 1]} : vector<32x32xbf16> to vector<8x32xbf16>
    %cst_217 = arith.constant dense<0.000000e+00> : vector<8x32xf32>
    %826 = tpu.matmul %824, %825, %cst_217 {dimension_numbers = #tpu.dot_dimension_numbers<[1], [0], [0], [1], [0, 0, 1, 1], [], []>} : vector<8x8xbf16>, vector<8x32xbf16>, vector<8x32xf32> -> vector<8x32xf32>
    %827 = arith.addf %804, %826 : vector<8x32xf32>
    %828 = vector.broadcast %74 : f32 to vector<8x32xf32>
    %829 = arith.mulf %827, %828 : vector<8x32xf32>
    %830 = arith.addf %586, %829 : vector<8x32xf32>
    %831 = arith.truncf %830 : vector<8x32xf32> to vector<8x32xbf16>
    %cst_218 = arith.constant dense<0.000000e+00> : vector<8x96xf32>
    %832 = tpu.matmul %831, %22, %cst_218 {dimension_numbers = #tpu.dot_dimension_numbers<[1], [0], [0], [1], [0, 0, 1, 1], [], []>} : vector<8x32xbf16>, vector<32x96xbf16>, vector<8x96xf32> -> vector<8x96xf32>
    %833 = vector.broadcast %24 : vector<1x96xf32> to vector<8x96xf32>
    %834 = arith.addf %832, %833 : vector<8x96xf32>
    %cst_219 = arith.constant 0.000000e+00 : f32
    %835 = vector.broadcast %cst_219 : f32 to vector<8x96xf32>
    %836 = arith.maximumf %834, %835 : vector<8x96xf32>
    %837 = arith.truncf %836 : vector<8x96xf32> to vector<8x96xbf16>
    %cst_220 = arith.constant dense<0.000000e+00> : vector<8x32xf32>
    %838 = tpu.matmul %837, %67, %cst_220 {dimension_numbers = #tpu.dot_dimension_numbers<[1], [0], [0], [1], [0, 0, 1, 1], [], []>} : vector<8x96xbf16>, vector<96x32xbf16>, vector<8x32xf32> -> vector<8x32xf32>
    %839 = vector.broadcast %69 : vector<1x32xf32> to vector<8x32xf32>
    %840 = arith.addf %838, %839 : vector<8x32xf32>
    %841 = vector.broadcast %75 : f32 to vector<8x32xf32>
    %842 = arith.mulf %840, %841 : vector<8x32xf32>
    %843 = arith.addf %830, %842 : vector<8x32xf32>
    %c1_221 = arith.constant 1 : index
    %c0_222 = arith.constant 0 : index
    %c0_223 = arith.constant 0 : index
    %844 = vector.load %arg8[%c1_221, %c0_222, %c0_223] : memref<2x11x32xf32, #tpu.memory_space<vmem>>, vector<1x3x32xf32>
    %845 = vector.shape_cast %844 : vector<1x3x32xf32> to vector<3x32xf32>
    %846 = vector.shape_cast %726 : vector<3x32xf32> to vector<1x3x32xf32>
    tpu.vector_store %arg8[%c1_221, %c0_222, %c0_223], %846 {strides = array<i32>} : memref<2x11x32xf32, #tpu.memory_space<vmem>>, vector<1x3x32xf32>,
    %c1_224 = arith.constant 1 : index
    %c3_225 = arith.constant 3 : index
    %c0_226 = arith.constant 0 : index
    %847 = vector.load %arg8[%c1_224, %c3_225, %c0_226] : memref<2x11x32xf32, #tpu.memory_space<vmem>>, vector<1x8x32xf32>
    %848 = vector.shape_cast %847 : vector<1x8x32xf32> to vector<8x32xf32>
    %849 = vector.shape_cast %843 : vector<8x32xf32> to vector<1x8x32xf32>
    tpu.vector_store %arg8[%c1_224, %c3_225, %c0_226], %849 {strides = array<i32>} : memref<2x11x32xf32, #tpu.memory_space<vmem>>, vector<1x8x32xf32>,
    return
  }
  func.func @transform_0(%arg0: i32) -> (i32, i32, i32) {
    %c0_i32 = arith.constant 0 : i32
    %c0_i32_0 = arith.constant 0 : i32
    %c0_i32_1 = arith.constant 0 : i32
    return %arg0, %c0_i32, %c0_i32_0 : i32, i32, i32
  }
  func.func @transform_1(%arg0: i32) -> (i32, i32, i32) {
    %c0_i32 = arith.constant 0 : i32
    %c0_i32_0 = arith.constant 0 : i32
    %c0_i32_1 = arith.constant 0 : i32
    return %arg0, %c0_i32, %c0_i32_0 : i32, i32, i32
  }
  func.func @transform_2(%arg0: i32) -> i32 {
    %c0_i32 = arith.constant 0 : i32
    %c0_i32_0 = arith.constant 0 : i32
    return %c0_i32 : i32
  }
  func.func @transform_3(%arg0: i32) -> (i32, i32, i32) {
    %c0_i32 = arith.constant 0 : i32
    %c0_i32_0 = arith.constant 0 : i32
    %c0_i32_1 = arith.constant 0 : i32
    %c0_i32_2 = arith.constant 0 : i32
    return %c0_i32, %c0_i32_0, %c0_i32_1 : i32, i32, i32
  }
  func.func @transform_4(%arg0: i32) -> (i32, i32, i32) {
    %c0_i32 = arith.constant 0 : i32
    %c0_i32_0 = arith.constant 0 : i32
    %c0_i32_1 = arith.constant 0 : i32
    %c0_i32_2 = arith.constant 0 : i32
    return %c0_i32, %c0_i32_0, %c0_i32_1 : i32, i32, i32
  }
  func.func @transform_5(%arg0: i32) -> (i32, i32, i32) {
    %c0_i32 = arith.constant 0 : i32
    %c0_i32_0 = arith.constant 0 : i32
    %c0_i32_1 = arith.constant 0 : i32
    %c0_i32_2 = arith.constant 0 : i32
    return %c0_i32, %c0_i32_0, %c0_i32_1 : i32, i32, i32
  }
  func.func @transform_6(%arg0: i32) -> (i32, i32, i32) {
    %c0_i32 = arith.constant 0 : i32
    %c0_i32_0 = arith.constant 0 : i32
    %c0_i32_1 = arith.constant 0 : i32
    %c0_i32_2 = arith.constant 0 : i32
    return %c0_i32, %c0_i32_0, %c0_i32_1 : i32, i32, i32
  }
  func.func @transform_7(%arg0: i32) -> (i32, i32, i32) {
    %c0_i32 = arith.constant 0 : i32
    %c0_i32_0 = arith.constant 0 : i32
    %c0_i32_1 = arith.constant 0 : i32
    return %arg0, %c0_i32, %c0_i32_0 : i32, i32, i32
  }
}

</mosaic_0001>

<bundles_post_ra>
// kernel: forward.1
= control target key start
LH: loop header
LB: loop body
LE: loop exit
PB: predicated region body
PF: predicated region fallthrough
CT: control target
= control target key end

     0   :  { %s5969_s0 = inlined_call_operand.vmem [shape: f32[4,11,32], index: 0, kind: input, shape index: {}]   ;;  %s5970_s1 = inlined_call_operand.vmem [shape: f32[4,24,32], index: 1, kind: input, shape index: {}]   ;;  %s5971_s2 = inlined_call_operand.vmem [shape: f32[6], index: 2, kind: input, shape index: {}]   ;;  %s5972_s3 = inlined_call_operand.vmem [shape: bf16[5,33,96], index: 3, kind: input, shape index: {}]   ;;  %s5973_s4 = inlined_call_operand.vmem [shape: bf16[4,33,32], index: 4, kind: input, shape index: {}]   ;;  %s5974_s5 = inlined_call_operand.vmem [shape: bf16[2,33,64], index: 5, kind: input, shape index: {}]   ;;  %s5975_s6 = inlined_call_operand.vmem [shape: bf16[3,97,32], index: 6, kind: input, shape index: {}]   ;;  %s5976_s7 = inlined_call_operand.vmem [shape: f32[4,11,32], index: 7, kind: output, shape index: {}]  }
   0x1   :  { %5999 = sst [smem:[#allocation5_spill]] %s5969_s0 }
   0x2   :  { %12 = vsyncpa [#allocation3], 0  ;;  %s4899_s24 = smov 0  }
   0x3 LB: > { %s4211_s25 = sadd.s32 4294967295, %s4844_s24   ;;  %p4213_p0 = scmp.ge.s32.totalorder %s4844_s24, 1  ;;  %s4844_s24 = sphi %s4899_s24, %s18_s24  }
   0x4   : > { %p206_p1 = scmp.lt.s32.totalorder %s4844_s24, 3  ;;  %s218_s28 = sshll.u32 %s5971_s2, 4  ;;  %s219_s28 = int_to_ptr.vmem [resolvable:$true] %s218_s28 }
   0x5   : > { %p4600_p3 = scmp.eq.s32.totalorder %s4211_s25, 0  ;;  %s4846_s29 = smov [#allocation2]  }
   0x6   : > { %p207_p2 = pnand %p4213_p0, %p206_p1 }
   0x8   : > { %p4596_p4 = pneg %p207_p2  ;;  %263 = sbr.rel (%p207_p2) target bundleno = 9999 (0x270f), region = 48 }
   0xa   : > { %p4597_p5 = pnand %p4600_p3, %p4596_p4 }
   0xc   : > { %4599 = dma.vmem_to_smem (!%p4597_p5), %s219_s28, 16, %s4846_s29, [#allocation3]  }
   0xd   : > { %4839 = dma.done.wait (%p4600_p3), [#allocation3], 16  }
   0xe   : > { %4841 = vsyncadd (%p4600_p3), [#allocation3], 4294967280 }
   0xf   : > { %270 = sfence }
  0x10   : > { %v4558_v0 = vld [vmem:[%s5972_s3 + $0x8] sm:$0xff]  ;;  %s4218_s9 = sshll.u32 %s4211_s25, 1  ;;  %v4557_v1 = vld [vmem:[%s5972_s3] sm:$0xff]  ;;  %s6000_s0 = sld [smem:[#allocation5_spill]]  ;;  %vm478_vm0 = vcmask 261120   ;;  %vm501_vm1 = vcmask 64512  }
  0x11   : > { %p306_p6 = scmp.lt.s32.totalorder %s4218_s9, 3  ;;  %488 = vmatpush.bf16.msra.mxu0 %v4558_v0  ;;  %v331_v10 = vld [vmem:[%s5972_s3 + $0x10] sm:$0x1]  ;;  %s5986_s18 = smov 88   ;;  %vm538_vm2 = vcmask 1043456   ;;  %vm893_vm3 = vcmask 785408  }
  0x12   : > { %v332_v11 = vunpack.c.l.bf16 %v331_v10  ;;  %s5990_s19 = smov 96   ;;  %s5988_s20 = smov 120   ;;  %v361_v40 = vld [vmem:[%s5973_s4] sm:$0xf]  ;;  %v362_v58 = vld [vmem:[%s5973_s4 + $0x4] sm:$0xf] }
  0x13   : > { %s6014_s9 = smov (!%p306_p6, %s4218_s9), 3  ;;  %s5996_s21 = smov 56   ;;  %v4967_v41 = vsel %vm538_vm2, %v361_v40, 0  ;;  %v4983_v59 = vsel %vm538_vm2, %v362_v58, 0  ;;  %v4560_v58 = vld [vmem:[%s5972_s3 + $0x1c] sm:$0xff]  ;;  %vm1205_vm4 = vcmask 1041409  }
  0x14   : > { %s5981_s12 = sshll.u32 %s6014_s9, 4  ;;  %v4938_v12 = vperm.slane %v332_v11, 0  ;;  %s5992_s22 = smov 112   ;;  %vm1207_vm5 = vcmask 1042434   ;;  %vm2420_vm6 = vcmask 256000   ;;  %vm2021_vm7 = vcmask 23552  }
  0x15   : > { %489 = vmatpush.bf16.msra.mxu0 %v4557_v1  ;;  %s5997_s23 = smov 104   ;;  %s5982_s25 = smov 64   ;;  %vm2040_vm8 = vcmask 1040384   ;;  %vm2041_vm9 = vcmask 1041408   ;;  %vm2422_vm10 = vcmask 261123  }
  0x16   : > { %s4924_s15 = scalar_lea.vmem %s6000_s0, %s5981_s12  ;;  %s5994_s28 = smov 80  }
  0x17   : > { %v4927_v2 = vld [vmem:[%s4924_s15] sm:$0xff]  ;;  %v4930_v3 = vld [vmem:[%s4924_s15 + $0x8] sm:$0x7]  ;;  %s5984_s29 = smov 72   ;;  %s5979_s10 = smov 48  }
  0x18   : > { %v456_v4 = vpack.c.bf16 %v4930_v3, %v4927_v2  ;;  %s5977_s17 = smov 40   ;;  %s5039_s30 = sld [smem:[#allocation2]] }
  0x19   : > { %648 = vmatpush.bf16.msrb.mxu0 %v4983_v59  ;;  %s4591_s13 = smul.u32 24, %s6014_s9  ;;  %s5338_s11 = sld [smem:[#allocation2 + $0x2]] }
  0x1a   : > { %v459_v5 = vshrl.u32 %v456_v4, 16  ;;  %v462_v6 = vshll.u32 %v456_v4, 16  ;;  %s6001_s26 = sshll.u32 %s6014_s9, 4  ;;  %s6002_s9 = smov 48  }
  0x1b   : > { %s5069_s12 = scalar_lea.vmem %s5970_s1, %s4591_s13  ;;  %s5367_s13 = sld [smem:[#allocation2 + $0x3]] }
  0x1c   : > { %v461_v7 = vrot.slane %v459_v5, 1  ;;  %v464_v8 = vrot.slane %v462_v6, 2  ;;  %s6003_s16 = smov 40   ;;  %s6005_s14 = smov 80  }
  0x1d   : > { %s6007_s27 = smov 72   ;;  %s6012_s8 = smov 56  }
  0x1e   : > { %v465_v9 = vor.u32 %v464_v8, %v461_v7 }
  0x20   : > { %4305 = vmatmul.msk.bf16.vlgmr.msra.gmra.mxu0 %vm478_vm0, %v465_v9 }
  0x9d   : > { %v491_v13 = vpop.f32.mrf.mxu0 }
  0x9e   : > { %v492_v14 = vadd.f32 %v491_v13, %v4938_v12 }
  0xa0   : > { %v4941_v15 = vpack.c.bf16 %v492_v14, %v492_v14  ;;  %v495_v16 = vmul.f32 0.35355338, %v492_v14 }
  0xa2   : > { %580 = vrot.lane.b32.xlu2 %v4941_v15, %s5986_s18  ;;  %499 = vrot.lane.b32.xlu0 %v4941_v15, %s5990_s19  ;;  %v496_v18 = vpack.c.bf16 %v495_v16, %v495_v16 }
  0xa5   : > { %v493_v17 = vpop.f32.mrf.mxu0 }
  0xaa   : > { %578 = vrot.lane.b32.xlu2 %v496_v18, %s5988_s20 }
  0xfc   : > { %v581_v33 = vpop.permute.xlu2 %580 }
  0xfd   : > { %v586_v37 = vsel %vm501_vm1, %v581_v33, 0 }
 0x104   : > { %v579_v39 = vpop.permute.xlu2 %578 }
 0x114   : > { %v500_v19 = vpop.permute.xlu0 %499 }
 0x115   : > { %v506_v20 = vsel %vm501_vm1, %v500_v19, 0 }
 0x116   : > { %515 = vmatpush.bf16.xpose.msra.mxu1 %v506_v20  ;;  %v365_v20 = vld [vmem:[%s5973_s4 + $0x10] sm:$0x1] }
 0x11d   : > { %4306 = vmatmul.msk.bf16.vlgmr.msra.gmra.mxu1 %vm501_vm1, %v496_v18 }
 0x11e   : > { %569 = vmatpush.bf16.msrb.mxu1 %v4967_v41 }
 0x19a   : > { %v517_v21 = vpop.f32.mrf.mxu1 }
 0x19b   : > { %v521_v22 = vsel %vm501_vm1, %v517_v21, -inf }
 0x19c   : > { %522 = vmax.xlane.f32.xlu0 %v521_v22  ;;  %v366_v22 = vunpack.c.l.bf16 %v365_v20  ;;  %v4573_v20 = vld [vmem:[%s5975_s6] sm:$0xff] }
 0x1a2   : > { %v519_v23 = vpop.f32.mrf.mxu1 }
 0x1b0   : > { %613 = vrot.lane.b32.xlu0 %v4941_v15, %s5996_s21 }
 0x1b8   : > { %655 = vrot.lane.b32.xlu0 %v496_v18, %s5992_s22 }
 0x1c0   : > { %732 = vrot.lane.b32.xlu0 %v496_v18, %s5997_s23 }
 0x20f   : > { %v523_v24 = vpop.xlane.xlu0 %522 }
 0x210   : > { %v524_v25 = vsub.f32 %v517_v21, %v523_v24  ;;  %v4998_v24 = vperm.slane %v366_v22, 0  ;;  %v453_v22 = vld [vmem:[%s5069_s12] sm:$0xff] }
 0x212   : > { %v525_v26 = vmul.f32 1.442695, %v524_v25 }
 0x214   : > { %4623 = vpow2.f32 %v525_v26 }
 0x21a   : > { %v4624_v27 = vpop.eup %4623 }
 0x21b   : > { %v527_v28 = vsel %vm501_vm1, %v4624_v27, 0.0 }
 0x21c   : > { %528 = vadd.xlane.f32.xlu1 %v527_v28 }
 0x222   : > { %v614_v29 = vpop.permute.xlu0 %613 }
 0x223   : > { %v619_v30 = vsel %vm538_vm2, %v614_v29, 0 }
 0x224   : > { %628 = vmatpush.bf16.msra.mxu3 %v619_v30 }
 0x22a   : > { %v656_v57 = vpop.permute.xlu0 %655 }
 0x232   : > { %v733_v19 = vpop.permute.xlu0 %732 }
 0x235   : > { %533 = vrot.lane.b32.xlu1 %v4941_v15, %s5982_s25 }
 0x28f   : > { %v529_v31 = vpop.xlane.xlu1 %528 }
 0x290   : > { %4625 = vrcp.f32 %v529_v31 }
 0x296   : > { %v4626_v32 = vpop.eup %4625 }
 0x297   : > { %v531_v34 = vmul.f32 %v4626_v32, %v4624_v27 }
 0x299   : > { %v532_v38 = vpack.c.bf16 %v531_v34, %v531_v34  ;;  %v363_v34 = vld [vmem:[%s5973_s4 + $0x8] sm:$0xf] }
 0x2a7   : > { %v534_v35 = vpop.permute.xlu1 %533 }
 0x2a8   : > { %v540_v36 = vsel %vm538_vm2, %v534_v35, 0  ;;  %v5007_v35 = vsel %vm538_vm2, %v363_v34, 0 }
 0x2a9   : > { %549 = vmatpush.bf16.msra.mxu2 %v540_v36  ;;  %725 = vmatpush.bf16.msrb.mxu3 %v5007_v35 }
 0x2ac   : > { %4307 = vmatmul.msk.bf16.vlgmr.msra.gmra.mxu2 %vm501_vm1, %v532_v38 }
 0x2ad   : > { %595 = vmatpush.bf16.xpose.msrb.mxu2 %v586_v37 }
 0x2bc   : > { %4309 = vmatmul.msk.bf16.vlgmr.msrb.gmra.mxu2 %vm501_vm1, %v579_v39 }
 0x32f   : > { %v551_v42 = vpop.f32.mrf.mxu2 }
 0x330   : > { %v555_v43 = vpack.c.bf16 %v551_v42, %v551_v42 }
 0x332   : > { %4308 = vmatmul.msk.bf16.vlgmr.msrb.gmra.mxu1 %vm501_vm1, %v555_v43 }
 0x337   : > { %v553_v44 = vpop.f32.mrf.mxu2 }
 0x33f   : > { %v597_v45 = vpop.f32.mrf.mxu2 }
 0x340   : > { %v601_v46 = vsel %vm501_vm1, %v597_v45, -inf }
 0x341   : > { %602 = vmax.xlane.f32.xlu2 %v601_v46 }
 0x347   : > { %v599_v47 = vpop.f32.mrf.mxu2 }
 0x359   : > { %657 = vrot.lane.b32.xlu2 %v4941_v15, %s5994_s28 }
 0x3af   : > { %v571_v48 = vpop.f32.mrf.mxu1 }
 0x3b0   : > { %v576_v27 = vadd.f32 %v4998_v24, %v571_v48 }
 0x3b4   : > { %v603_v49 = vpop.xlane.xlu2 %602 }
 0x3b5   : > { %v604_v50 = vsub.f32 %v597_v45, %v603_v49 }
 0x3b7   : > { %v605_v51 = vmul.f32 1.442695, %v604_v50  ;;  %v573_v52 = vpop.f32.mrf.mxu1 }
 0x3b9   : > { %4627 = vpow2.f32 %v605_v51 }
 0x3bc   : > { %v658_v53 = vpop.permute.xlu2 %657 }
 0x3bd   : > { %v663_v54 = vsel %vm501_vm1, %v658_v53, 0 }
 0x3be   : > { %672 = vmatpush.bf16.xpose.msra.mxu1 %v663_v54  ;;  %v364_v54 = vld [vmem:[%s5973_s4 + $0xc] sm:$0xf] }
 0x3bf   : > { %v4628_v55 = vpop.eup %4627 }
 0x3c0   : > { %v607_v56 = vsel %vm501_vm1, %v4628_v55, 0.0 }
 0x3c1   : > { %608 = vadd.xlane.f32.xlu1 %v607_v56 }
 0x3c5   : > { %4312 = vmatmul.msk.bf16.vlgmr.msra.gmra.mxu1 %vm501_vm1, %v656_v57 }
 0x3da   : > { %734 = vrot.lane.b32.xlu1 %v4941_v15, %s5984_s29 }
 0x434   : > { %v609_v60 = vpop.xlane.xlu1 %608 }
 0x435   : > { %4629 = vrcp.f32 %v609_v60  ;;  %v4559_v60 = vld [vmem:[%s5972_s3 + $0x14] sm:$0xff] }
 0x43b   : > { %v4630_v61 = vpop.eup %4629 }
 0x43c   : > { %v611_v62 = vmul.f32 %v4630_v61, %v4628_v55  ;;  %v4578_v61 = vld [vmem:[%s5975_s6 + $0x28] sm:$0xff] }
 0x43e   : > { %v612_v63 = vpack.c.bf16 %v611_v62, %v611_v62  ;;  %v4577_v62 = vld [vmem:[%s5975_s6 + $0x20] sm:$0xff] }
 0x440   : > { %4310 = vmatmul.msk.bf16.vlgmr.msra.gmra.mxu3 %vm501_vm1, %v612_v63  ;;  %v4576_v63 = vld [vmem:[%s5975_s6 + $0x18] sm:$0xff] }
 0x441   : > { %847 = vmatpush.bf16.msra.mxu3 %v4560_v58 }
 0x442   : > { %v674_v0 = vpop.f32.mrf.mxu1 }
 0x443   : > { %v678_v1 = vsel %vm501_vm1, %v674_v0, -inf }
 0x444   : > { %679 = vmax.xlane.f32.xlu2 %v678_v1 }
 0x445   : > { %848 = vmatpush.bf16.msra.mxu3 %v4559_v60 }
 0x44a   : > { %v676_v4 = vpop.f32.mrf.mxu1 }
 0x44b   : > { %v809_v4 = vstv %s5039_s30  ;;  %s6008_s30 = smov 96  }
 0x44c   : > { %v735_v5 = vpop.permute.xlu1 %734 }
 0x44d   : > { %v740_v6 = vsel %vm501_vm1, %v735_v5, 0 }
 0x44e   : > { %749 = vmatpush.bf16.xpose.msra.mxu0 %v740_v6 }
 0x45c   : > { %690 = vrot.lane.b32.xlu2 %v4941_v15, %s5979_s10  ;;  %s5119_s10 = sld [smem:[#allocation2 + $0x1]] }
 0x4b7   : > { %v680_v7 = vpop.xlane.xlu2 %679 }
 0x4b8   : > { %v681_v8 = vsub.f32 %v674_v0, %v680_v7  ;;  %v4575_v0 = vld [vmem:[%s5975_s6 + $0x10] sm:$0xff] }
 0x4ba   : > { %v682_v9 = vmul.f32 1.442695, %v681_v8 }
 0x4bc   : > { %4631 = vpow2.f32 %v682_v9 }
 0x4bf   : > { %v691_v10 = vpop.permute.xlu2 %690 }
 0x4c0   : > { %v696_v11 = vsel %vm538_vm2, %v691_v10, 0 }
 0x4c1   : > { %705 = vmatpush.bf16.msra.mxu2 %v696_v11 }
 0x4c2   : > { %v4632_v13 = vpop.eup %4631 }
 0x4c3   : > { %v630_v14 = vpop.f32.mrf.mxu3  ;;  %v684_v16 = vsel %vm501_vm1, %v4632_v13, 0.0 }
 0x4c4   : > { %v634_v17 = vpack.c.bf16 %v630_v14, %v630_v14  ;;  %685 = vadd.xlane.f32.xlu1 %v684_v16 }
 0x4c6   : > { %4311 = vmatmul.msk.bf16.vlgmr.msrb.gmra.mxu0 %vm501_vm1, %v634_v17 }
 0x4c7   : > { %899 = vmatpush.bf16.msrb.mxu0 %v4578_v61 }
 0x4cb   : > { %v632_v18 = vpop.f32.mrf.mxu3  ;;  %900 = vmatpush.bf16.msrb.mxu0 %v4577_v62  ;;  %v413_v62 = vld [vmem:[%s5975_s6 + $0x30] sm:$0x1] }
 0x4cf   : > { %901 = vmatpush.bf16.msrb.mxu0 %v4576_v63 }
 0x4d3   : > { %902 = vmatpush.bf16.msrb.mxu0 %v4575_v0  ;;  %v414_v0 = vunpack.c.l.bf16 %v413_v62 }
 0x4d6   : > { %4315 = vmatmul.msk.bf16.vlgmr.msra.gmra.mxu0 %vm501_vm1, %v733_v19  ;;  %v4574_v19 = vld [vmem:[%s5975_s6 + $0x8] sm:$0xff] }
 0x4d7   : > { %903 = vmatpush.bf16.msrb.mxu0 %v4574_v19 }
 0x4db   : > { %904 = vmatpush.bf16.msrb.mxu0 %v4573_v20 }
 0x537   : > { %v686_v21 = vpop.xlane.xlu1 %685 }
 0x538   : > { %4633 = vrcp.f32 %v686_v21  ;;  %v4569_v21 = vld [vmem:[%s5974_s5] sm:$0xff] }
 0x53e   : > { %v4634_v23 = vpop.eup %4633 }
 0x53f   : > { %v688_v25 = vmul.f32 %v4634_v23, %v4632_v13  ;;  %v454_v23 = vld [vmem:[%s5069_s12 + $0x8] sm:$0xff] }
 0x541   : > { %v689_v26 = vpack.c.bf16 %v688_v25, %v688_v25  ;;  %v985_v25 = vpack.c.bf16 %v454_v23, %v453_v22 }
 0x543   : > { %v650_v28 = vpop.f32.mrf.mxu0  ;;  %4313 = vmatmul.msk.bf16.vlgmr.msra.gmra.mxu2 %vm501_vm1, %v689_v26  ;;  %v4568_v26 = vld [vmem:[%s5973_s4 + $0x1c] sm:$0xff] }
 0x544   : > { %v654_v29 = vadd.f32 %v650_v28, %v576_v27  ;;  %v4567_v27 = vld [vmem:[%s5973_s4 + $0x14] sm:$0xff]  ;;  %v917_v28 = vpack.c.bf16 %v4927_v2, %v4927_v2 }
 0x54b   : > { %v652_v30 = vpop.f32.mrf.mxu0 }
 0x54c   : > { %v4230_v30 = vld [vmem:[%s5972_s3 + $0x24] sm:$0x1] }
 0x553   : > { %v751_v31 = vpop.f32.mrf.mxu0 }
 0x554   : > { %v755_v32 = vsel %vm501_vm1, %v751_v31, -inf }
 0x555   : > { %756 = vmax.xlane.f32.xlu0 %v755_v32  ;;  %v339_v32 = vunpack.c.l.bf16 %v4230_v30 }
 0x55b   : > { %v753_v33 = vpop.f32.mrf.mxu0 }
 0x55c   : > { %v5091_v33 = vperm.slane %v339_v32, 0 }
 0x5c6   : > { %v707_v36 = vpop.f32.mrf.mxu2 }
 0x5c7   : > { %v711_v37 = vpack.c.bf16 %v707_v36, %v707_v36 }
 0x5c8   : > { %v757_v38 = vpop.xlane.xlu0 %756 }
 0x5c9   : > { %v758_v39 = vsub.f32 %v751_v31, %v757_v38  ;;  %4314 = vmatmul.msk.bf16.vlgmr.msrb.gmra.mxu3 %vm501_vm1, %v711_v37 }
 0x5cb   : > { %v759_v40 = vmul.f32 1.442695, %v758_v39  ;;  %v392_v39 = vld [vmem:[%s5974_s5 + $0x10] sm:$0x1] }
 0x5cd   : > { %4635 = vpow2.f32 %v759_v40  ;;  %v393_v40 = vunpack.c.l.bf16 %v392_v39 }
 0x5ce   : > { %v709_v42 = vpop.f32.mrf.mxu2 }
 0x5cf   : > { %v5098_v42 = vperm.slane %v393_v40, 0 }
 0x5d3   : > { %v4636_v43 = vpop.eup %4635 }
 0x5d4   : > { %v761_v44 = vsel %vm501_vm1, %v4636_v43, 0.0 }
 0x5d5   : > { %762 = vadd.xlane.f32.xlu0 %v761_v44 }
 0x5e9   : > { %767 = vrot.lane.b32.xlu0 %v4941_v15, %s5977_s17  ;;  %v5020_v15 = vsel %vm538_vm2, %v364_v54, 0  ;;  %s6004_s17 = smov 64  }
 0x5ea   : > { %802 = vmatpush.bf16.msrb.mxu2 %v5020_v15 }
 0x648   : > { %v763_v47 = vpop.xlane.xlu0 %762 }
 0x649   : > { %4637 = vrcp.f32 %v763_v47 }
 0x64c   : > { %v727_v45 = vpop.f32.mrf.mxu3 }
 0x64d   : > { %v731_v46 = vadd.f32 %v727_v45, %v654_v29  ;;  %v455_v29 = vld [vmem:[%s5069_s12 + $0x10] sm:$0xff]  ;;  %v4250_v45 = vld [vmem:[%s5973_s4 + $0x24] sm:$0x1] }
 0x64e   : > { %v986_v31 = vpack.c.bf16 %v455_v29, %v455_v29  ;;  %v373_v47 = vunpack.c.l.bf16 %v4250_v45 }
 0x64f   : > { %v4638_v49 = vpop.eup %4637 }
 0x650   : > { %v765_v50 = vmul.f32 %v4638_v49, %v4636_v43  ;;  %v4562_v43 = vld [vmem:[%s5972_s3 + $0x30] sm:$0xff]  ;;  %v4561_v49 = vld [vmem:[%s5972_s3 + $0x28] sm:$0xff] }
 0x651   : > { %978 = vmatpush.bf16.msra.mxu2 %v4562_v43 }
 0x652   : > { %v766_v53 = vpack.c.bf16 %v765_v50, %v765_v50 }
 0x654   : > { %v729_v48 = vpop.f32.mrf.mxu3 }
 0x655   : > { %v5108_v48 = vperm.slane %v373_v47, 0  ;;  %979 = vmatpush.bf16.msra.mxu2 %v4561_v49 }
 0x65b   : > { %v768_v51 = vpop.permute.xlu0 %767 }
 0x65c   : > { %v773_v52 = vsel %vm538_vm2, %v768_v51, 0 }
 0x65d   : > { %782 = vmatpush.bf16.msrb.mxu1 %v773_v52 }
 0x660   : > { %4316 = vmatmul.msk.bf16.vlgmr.msrb.gmra.mxu1 %vm501_vm1, %v766_v53 }
 0x661   : > { %940 = vmatpush.bf16.msra.mxu1 %v4568_v26 }
 0x665   : > { %941 = vmatpush.bf16.msra.mxu1 %v4567_v27  ;;  %v4235_v27 = vld [vmem:[%s5972_s3 + $0x38] sm:$0x1] }
 0x670   : > { %4360 = vmatmul.msk.bf16.vlgmr.msra.gmra.mxu1 %vm478_vm0, %v917_v28  ;;  %v346_v28 = vunpack.c.l.bf16 %v4235_v27 }
 0x672   : > { %v5141_v29 = vperm.slane %v346_v28, 0 }
 0x6dd   : > { %v784_v55 = vpop.f32.mrf.mxu1 }
 0x6de   : > { %v788_v56 = vpack.c.bf16 %v784_v55, %v784_v55 }
 0x6e0   : > { %4317 = vmatmul.msk.bf16.vlgmr.msrb.gmra.mxu2 %vm501_vm1, %v788_v56 }
 0x6e5   : > { %v786_v57 = vpop.f32.mrf.mxu1 }
 0x6ed   : > { %v943_v50 = vpop.f32.mrf.mxu1 }
 0x6ee   : > { %v944_v51 = vadd.f32 %v943_v50, %v5108_v48 }
 0x6f0   : > { %v1025_v52 = vrot.slane %v944_v51, 1  ;;  %v1027_v53 = vperm.slane %v944_v51, 0  ;;  %v1026_v60 = vrot.slane %v944_v51, 2 }
 0x6f2   : > { %v1028_v55 = vperm.slane %v1025_v52, 0  ;;  %v1029_v63 = vperm.slane %v1026_v60, 0 }
 0x6f5   : > { %v945_v61 = vpop.f32.mrf.mxu1 }
 0x763   : > { %v804_v1 = vpop.f32.mrf.mxu2 }
 0x764   : > { %v808_v5 = vadd.f32 %v804_v1, %v731_v46 }
 0x766   : > { %v810_v6 = vmul.f32 %v809_v4, %v808_v5 }
 0x768   : > { %v812_v7 = vrot.slane %v810_v6, 5 }
 0x76a   : > { %v5048_v8 = vadd.f32 %v812_v7, %v4927_v2  ;;  %v5051_v9 = vadd.f32 %v812_v7, %v4930_v3  ;;  %v4570_v3 = vld [vmem:[%s5974_s5 + $0x8] sm:$0xff]  ;;  %v5123_v7 = vperm.slane %v414_v0, 0 }
 0x76b   : > { %v806_v10 = vpop.f32.mrf.mxu2  ;;  %1012 = vmatpush.bf16.msrb.mxu3 %v4570_v3 }
 0x76c   : > { %v816_v11 = vpack.c.bf16 %v5051_v9, %v5048_v8 }
 0x76e   : > { %v819_v13 = vshrl.u32 %v816_v11, 16  ;;  %v822_v14 = vshll.u32 %v816_v11, 16  ;;  %v910_v11 = vstv %s5119_s10  ;;  %s6010_s10 = smov 88  }
 0x76f   : > { %1013 = vmatpush.bf16.msrb.mxu3 %v4569_v21 }
 0x770   : > { %v821_v16 = vrot.slane %v819_v13, 1  ;;  %v824_v17 = vrot.slane %v822_v14, 2 }
 0x772   : > { %v825_v18 = vor.u32 %v824_v17, %v821_v16 }
 0x774   : > { %4326 = vmatmul.msk.bf16.vlgmr.msra.gmra.mxu3 %vm478_vm0, %v825_v18 }
 0x784   : > { %4378 = vmatmul.msk.bf16.vlgmr.msrb.gmra.mxu3 %vm478_vm0, %v985_v25 }
 0x794   : > { %4379 = vmatmul.msk.bf16.gmra.mxu3 %vm478_vm0, %v986_v31 }
 0x7f7   : > { %v850_v34 = vpop.f32.mrf.mxu3 }
 0x7f8   : > { %v851_v36 = vadd.f32 %v850_v34, %v5091_v33 }
 0x7fa   : > { %v854_v37 = vmax.f32 %v851_v36, 0.0 }
 0x7fc   : > { %v855_v2 = vpack.c.bf16 %v854_v37, %v854_v37 }
 0x7fe   : > { %4351 = vmatmul.msk.bf16.vlgmr.msrb.gmra.mxu0 %vm893_vm3, %v855_v2 }
 0x7ff   : > { %v852_v38 = vpop.f32.mrf.mxu3 }
 0x807   : > { %v1015_v44 = vpop.f32.mrf.mxu3 }
 0x808   : > { %v1016_v46 = vadd.f32 %v1015_v44, %v5098_v42 }
 0x80a   : > { %1042 = vrot.lane.b32.xlu2 %v1016_v46, %s5990_s19  ;;  %v1033_v56 = vadd.f32 %v1027_v53, %v1016_v46 }
 0x80c   : > { %v1036_v44 = vmul.f32 0.35355338, %v1033_v56 }
 0x80f   : > { %v1017_v54 = vpop.f32.mrf.mxu3 }
 0x810   : > { %v1018_v57 = vadd.f32 %v1017_v54, %v5098_v42 }
 0x812   : > { %v1034_v58 = vadd.f32 %v1028_v55, %v1018_v57  ;;  %1044 = vrot.lane.b32.xlu2 %v1018_v57, %s5990_s19  ;;  %v1054_v57 = vpack.c.bf16 %v1036_v44, %v1036_v44 }
 0x814   : > { %v1037_v45 = vmul.f32 0.35355338, %v1034_v58  ;;  %v1255_v62 = vunpack.c.l.b16 %v1054_v57 }
 0x816   : > { %v1055_v61 = vpack.c.bf16 %v1037_v45, %v1037_v45 }
 0x817   : > { %v1020_v1 = vpop.f32.mrf.mxu3 }
 0x818   : > { %v1021_v5 = vadd.f32 %v1020_v1, %v5098_v42  ;;  %v1256_v1 = vpack.c.b16 %v1255_v62, %v1255_v62 }
 0x81a   : > { %v1035_v6 = vadd.f32 %v1029_v63, %v1021_v5  ;;  %1046 = vrot.lane.b32.xlu1 %v1021_v5, %s5990_s19  ;;  %v1284_v63 = vunpack.c.l.b16 %v1055_v61 }
 0x81c   : > { %v1038_v38 = vmul.f32 0.35355338, %v1035_v6  ;;  %v1285_v5 = vpack.c.b16 %v1284_v63, %v1284_v63 }
 0x81e   : > { %v1056_v54 = vpack.c.bf16 %v1038_v38, %v1038_v38  ;;  %v4253_v38 = vld [vmem:[%s5973_s4 + $0x30] sm:$0xf] }
 0x81f   : > { %v1022_v14 = vpop.f32.mrf.mxu3  ;;  %v5209_v44 = vsel %vm538_vm2, %v4253_v38, 0 }
 0x820   : > { %v1313_v58 = vunpack.c.l.b16 %v1056_v54 }
 0x822   : > { %v1314_v0 = vpack.c.b16 %v1313_v58, %v1313_v58 }
 0x87b   : > { %v906_v10 = vpop.f32.mrf.mxu0 }
 0x87c   : > { %v907_v13 = vadd.f32 %v906_v10, %v5123_v7 }
 0x87e   : > { %v911_v16 = vmul.f32 %v910_v11, %v907_v13  ;;  %v4251_v13 = vld [vmem:[%s5973_s4 + $0x28] sm:$0xf] }
 0x87f   : > { %v5182_v14 = vsel %vm538_vm2, %v4251_v13, 0 }
 0x880   : > { %v913_v17 = vrot.slane %v911_v16, 5 }
 0x882   : > { %v5130_v18 = vadd.f32 %v913_v17, %v5048_v8  ;;  %v5133_v19 = vadd.f32 %v913_v17, %v5051_v9  ;;  %v1043_v8 = vpop.permute.xlu2 %1042 }
 0x883   : > { %v908_v3 = vpop.f32.mrf.mxu0 }
 0x884   : > { %v947_v20 = vpack.c.bf16 %v5133_v19, %v5130_v18 }
 0x886   : > { %v950_v21 = vshrl.u32 %v947_v20, 16  ;;  %v953_v22 = vshll.u32 %v947_v20, 16 }
 0x888   : > { %v952_v23 = vrot.slane %v950_v21, 1  ;;  %v955_v25 = vrot.slane %v953_v22, 2 }
 0x88a   : > { %v956_v26 = vor.u32 %v955_v25, %v952_v23  ;;  %v1045_v32 = vpop.permute.xlu2 %1044 }
 0x88c   : > { %4369 = vmatmul.msk.bf16.vlgmr.msra.gmra.mxu2 %vm478_vm0, %v956_v26  ;;  %v1047_v30 = vpop.permute.xlu1 %1046 }
 0x90f   : > { %v981_v9 = vpop.f32.mrf.mxu2 }
 0x910   : > { %v982_v31 = vadd.f32 %v981_v9, %v5141_v29 }
 0x912   : > { %v1053_v34 = vadd.f32 %v1047_v30, %v982_v31  ;;  %v1060_v36 = vpack.c.bf16 %v982_v31, %v982_v31  ;;  %v1051_v37 = vadd.f32 %v1043_v8, %v982_v31  ;;  %v1052_v2 = vadd.f32 %v1045_v32, %v982_v31  ;;  %v4252_v8 = vld [vmem:[%s5973_s4 + $0x2c] sm:$0xf] }
 0x913   : > { %v1996_v6 = vmul.f32 0.35355338, %v982_v31  ;;  %v5195_v9 = vsel %vm538_vm2, %v4252_v8, 0 }
 0x914   : > { %v1059_v39 = vpack.c.bf16 %v1053_v34, %v1053_v34  ;;  %1211 = vrot.lane.b32.xlu0 %v1060_v36, %s5990_s19  ;;  %v1057_v40 = vpack.c.bf16 %v1051_v37, %v1051_v37  ;;  %v1058_v43 = vpack.c.bf16 %v1052_v2, %v1052_v2 }
 0x915   : > { %v5172_v10 = vpack.c.bf16 %v1996_v6, %v1996_v6 }
 0x916   : > { %v1103_v46 = vsel %vm501_vm1, %v1059_v39, 0  ;;  %v1318_v47 = vunpack.c.l.b16 %v1059_v39  ;;  %v1065_v49 = vsel %vm501_vm1, %v1057_v40, 0  ;;  %v1084_v50 = vsel %vm501_vm1, %v1058_v43, 0 }
 0x917   : > { %v983_v51 = vpop.f32.mrf.mxu2  ;;  %1074 = vmatpush.bf16.xpose.msrb.mxu1 %v1065_v49  ;;  %1093 = vmatpush.bf16.xpose.msra.mxu0 %v1084_v50  ;;  %v1260_v52 = vunpack.c.l.b16 %v1057_v40  ;;  %v1289_v53 = vunpack.c.l.b16 %v1058_v43 }
 0x918   : > { %v1319_v55 = vpack.c.b16 %v1318_v47, %v1318_v47  ;;  %1112 = vmatpush.bf16.xpose.msrb.mxu2 %v1103_v46 }
 0x919   : > { %v1261_v60 = vpack.c.b16 %v1260_v52, %v1260_v52  ;;  %v1290_v56 = vpack.c.b16 %v1289_v53, %v1289_v53 }
 0x91a   : > { %1320 = vrot.lane.b32.xlu1 %v1319_v55, %s5988_s20 }
 0x91b   : > { %1262 = vrot.lane.b32.xlu2 %v1261_v60, %s5988_s20 }
 0x91c   : > { %1291 = vrot.lane.b32.xlu0 %v1290_v56, %s5988_s20 }
 0x91e   : > { %4380 = vmatmul.msk.bf16.vlgmr.msrb.gmra.mxu1 %vm501_vm1, %v1054_v57  ;;  %4381 = vmatmul.msk.bf16.vlgmr.msra.gmra.mxu0 %vm501_vm1, %v1055_v61 }
 0x91f   : > { %4382 = vmatmul.msk.bf16.vlgmr.msrb.gmra.mxu2 %vm501_vm1, %v1056_v54  ;;  %1246 = vmatpush.bf16.msrb.mxu0 %v5182_v14 }
 0x922   : > { %1315 = vrot.lane.b32.xlu1 %v1314_v0, %s5988_s20 }
 0x923   : > { %1257 = vrot.lane.b32.xlu2 %v1256_v1, %s5988_s20 }
 0x924   : > { %1286 = vrot.lane.b32.xlu0 %v1285_v5, %s5988_s20 }
 0x92a   : > { %1498 = vrot.lane.b32.xlu1 %v1290_v56, %s5992_s22 }
 0x92b   : > { %1431 = vrot.lane.b32.xlu2 %v1060_v36, %s5986_s18 }
 0x92c   : > { %1475 = vrot.lane.b32.xlu0 %v1261_v60, %s5992_s22 }
 0x932   : > { %1496 = vrot.lane.b32.xlu1 %v1285_v5, %s5992_s22 }
 0x933   : > { %1521 = vrot.lane.b32.xlu2 %v1319_v55, %s5992_s22 }
 0x934   : > { %1473 = vrot.lane.b32.xlu0 %v1256_v1, %s5992_s22 }
 0x93a   : > { %1722 = vrot.lane.b32.xlu1 %v1319_v55, %s5997_s23 }
 0x93b   : > { %1519 = vrot.lane.b32.xlu2 %v1314_v0, %s5992_s22 }
 0x93c   : > { %1632 = vrot.lane.b32.xlu0 %v1060_v36, %s5994_s28 }
 0x942   : > { %1720 = vrot.lane.b32.xlu1 %v1314_v0, %s5997_s23 }
 0x943   : > { %1676 = vrot.lane.b32.xlu2 %v1261_v60, %s5997_s23 }
 0x944   : > { %1699 = vrot.lane.b32.xlu0 %v1290_v56, %s5997_s23 }
 0x94a   : > { %1833 = vrot.lane.b32.xlu1 %v1060_v36, %s5984_s29 }
 0x94b   : > { %1674 = vrot.lane.b32.xlu2 %v1256_v1, %s5997_s23 }
 0x94c   : > { %1697 = vrot.lane.b32.xlu0 %v1285_v5, %s5997_s23 }
 0x952   : > { %2082 = vrot.lane.b32.xlu1 %v5172_v10, %s5996_s21 }
 0x953   : > { %2000 = vrot.lane.b32.xlu2 %v5172_v10, %s5982_s25  ;;  %s5380_s25 = scalar_lea.vmem %s5976_s7, %s6001_s26  ;;  %s6006_s26 = smov 112  }
 0x975   : > { %v1263_v16 = vpop.permute.xlu2 %1262 }
 0x976   : > { %v1268_v17 = vsel %vm501_vm1, %v1263_v16, 0 }
 0x977   : > { %1277 = vmatpush.bf16.xpose.msra.mxu2 %v1268_v17 }
 0x97d   : > { %v1258_v3 = vpop.permute.xlu2 %1257 }
 0x97e   : > { %4385 = vmatmul.msk.bf16.vlgmr.msra.gmra.mxu2 %vm501_vm1, %v1258_v3 }
 0x97f   : > { %1466 = vmatpush.bf16.msrb.mxu2 %v5195_v9 }
 0x985   : > { %v1432_v20 = vpop.permute.xlu2 %1431 }
 0x986   : > { %v1437_v21 = vsel %vm538_vm2, %v1432_v20, 0  ;;  %v1212_v22 = vpop.permute.xlu0 %1211 }
 0x987   : > { %v1217_v23 = vsel %vm538_vm2, %v1212_v22, 0  ;;  %1446 = vmatpush.bf16.msra.mxu0 %v1437_v21 }
 0x988   : > { %1226 = vmatpush.bf16.msra.mxu1 %v1217_v23 }
 0x98c   : > { %v1321_v25 = vpop.permute.xlu1 %1320 }
 0x98d   : > { %v1326_v26 = vsel %vm501_vm1, %v1321_v25, 0 }
 0x98e   : > { %v1292_v27 = vpop.permute.xlu0 %1291  ;;  %1335 = vmatpush.bf16.xpose.msrb.mxu1 %v1326_v26 }
 0x98f   : > { %v1297_v28 = vsel %vm501_vm1, %v1292_v27, 0 }
 0x990   : > { %1306 = vmatpush.bf16.xpose.msra.mxu3 %v1297_v28 }
 0x994   : > { %v5198_v30 = vpop.permute.xlu1 %1315 }
 0x996   : > { %v1287_v31 = vpop.permute.xlu0 %1286 }
 0x997   : > { %4386 = vmatmul.msk.bf16.vlgmr.msra.gmra.mxu3 %vm501_vm1, %v1287_v31 }
 0x99b   : > { %v1076_v32 = vpop.f32.mrf.mxu1  ;;  %v1095_v34 = vpop.f32.mrf.mxu0 }
 0x99c   : > { %v1118_v36 = vsel %vm501_vm1, %v1076_v32, -inf  ;;  %v1125_v37 = vsel %vm501_vm1, %v1095_v34, -inf  ;;  %v5203_v2 = vpop.permute.xlu1 %1498 }
 0x99d   : > { %v1119_v39 = vrot.slane %v1118_v36, 4  ;;  %v1126_v40 = vrot.slane %v1125_v37, 4 }
 0x99e   : > { %v1476_v43 = vpop.permute.xlu0 %1475 }
 0x99f   : > { %v1120_v45 = vmax.f32 %v1118_v36, %v1119_v39  ;;  %v1127_v46 = vmax.f32 %v1125_v37, %v1126_v40  ;;  %v1481_v47 = vsel %vm501_vm1, %v1476_v43, 0 }
 0x9a0   : > { %1490 = vmatpush.bf16.xpose.msrb.mxu3 %v1481_v47 }
 0x9a1   : > { %v1121_v49 = vrot.slane %v1120_v45, 2  ;;  %v1128_v50 = vrot.slane %v1127_v46, 2 }
 0x9a2   : > { %v1114_v51 = vpop.f32.mrf.mxu2 }
 0x9a3   : > { %v1122_v52 = vmax.f32 %v1120_v45, %v1121_v49  ;;  %v1129_v53 = vmax.f32 %v1127_v46, %v1128_v50  ;;  %v1132_v54 = vsel %vm501_vm1, %v1114_v51, -inf  ;;  %v1078_v55 = vpop.f32.mrf.mxu1  ;;  %v1097_v57 = vpop.f32.mrf.mxu0 }
 0x9a4   : > { %v1133_v60 = vrot.slane %v1132_v54, 4  ;;  %v5214_v61 = vpop.permute.xlu1 %1496 }
 0x9a5   : > { %v1123_v56 = vrot.slane %v1122_v52, 1  ;;  %v1130_v58 = vrot.slane %v1129_v53, 1 }
 0x9a6   : > { %v1134_v62 = vmax.f32 %v1132_v54, %v1133_v60  ;;  %v1474_v63 = vpop.permute.xlu0 %1473 }
 0x9a7   : > { %v1124_v0 = vmax.f32 %v1122_v52, %v1123_v56  ;;  %v1131_v1 = vmax.f32 %v1129_v53, %v1130_v58  ;;  %4390 = vmatmul.msk.bf16.vlgmr.msrb.gmra.mxu3 %vm501_vm1, %v1474_v63 }
 0x9a8   : > { %1667 = vmatpush.bf16.msra.mxu3 %v5209_v44  ;;  %v1135_v5 = vrot.slane %v1134_v62, 2 }
 0x9a9   : > { %v1139_v6 = vsub.f32 %v1076_v32, %v1124_v0  ;;  %v1140_v13 = vsub.f32 %v1095_v34, %v1131_v1 }
 0x9aa   : > { %v1136_v16 = vmax.f32 %v1134_v62, %v1135_v5  ;;  %v1116_v17 = vpop.f32.mrf.mxu2 }
 0x9ab   : > { %v1142_v3 = vmul.f32 1.442695, %v1139_v6  ;;  %v1144_v20 = vmul.f32 1.442695, %v1140_v13 }
 0x9ac   : > { %v1137_v21 = vrot.slane %v1136_v16, 1  ;;  %v5217_v22 = vpop.permute.xlu1 %1722 }
 0x9ad   : > { %4639 = vpow2.f32 %v1142_v3 }
 0x9ae   : > { %4641 = vpow2.f32 %v1144_v20  ;;  %v1138_v23 = vmax.f32 %v1136_v16, %v1137_v21  ;;  %v1633_v25 = vpop.permute.xlu0 %1632 }
 0x9af   : > { %v1638_v26 = vsel %vm538_vm2, %v1633_v25, 0 }
 0x9b0   : > { %v1141_v27 = vsub.f32 %v1114_v51, %v1138_v23  ;;  %1647 = vmatpush.bf16.msra.mxu2 %v1638_v26 }
 0x9b2   : > { %v1146_v8 = vmul.f32 1.442695, %v1141_v27 }
 0x9b3   : > { %v4640_v28 = vpop.eup %4639 }
 0x9b4   : > { %v4642_v31 = vpop.eup %4641  ;;  %v1148_v32 = vsel %vm501_vm1, %v4640_v28, 0.0  ;;  %4643 = vpow2.f32 %v1146_v8  ;;  %v5221_v34 = vpop.permute.xlu1 %1720 }
 0x9b5   : > { %v1149_v36 = vrot.slane %v1148_v32, 4  ;;  %v1155_v37 = vsel %vm501_vm1, %v4642_v31, 0.0 }
 0x9b6   : > { %v1156_v38 = vrot.slane %v1155_v37, 4 }
 0x9b7   : > { %v1150_v39 = vadd.f32 %v1149_v36, %v1148_v32 }
 0x9b8   : > { %v1157_v40 = vadd.f32 %v1156_v38, %v1155_v37 }
 0x9b9   : > { %v1151_v43 = vrot.slane %v1150_v39, 2 }
 0x9ba   : > { %v4644_v45 = vpop.eup %4643  ;;  %v1158_v46 = vrot.slane %v1157_v40, 2 }
 0x9bb   : > { %v1152_v47 = vadd.f32 %v1151_v43, %v1150_v39  ;;  %v1162_v49 = vsel %vm501_vm1, %v4644_v45, 0.0 }
 0x9bc   : > { %v1159_v50 = vadd.f32 %v1158_v46, %v1157_v40  ;;  %v1163_v51 = vrot.slane %v1162_v49, 4  ;;  %v1834_v52 = vpop.permute.xlu1 %1833 }
 0x9bd   : > { %v1153_v53 = vrot.slane %v1152_v47, 1  ;;  %v1839_v54 = vsel %vm538_vm2, %v1834_v52, 0 }
 0x9be   : > { %v1160_v55 = vrot.slane %v1159_v50, 1  ;;  %v1164_v57 = vadd.f32 %v1163_v51, %v1162_v49  ;;  %1848 = vmatpush.bf16.msrb.mxu3 %v1839_v54 }
 0x9bf   : > { %v1154_v60 = vadd.f32 %v1153_v53, %v1152_v47 }
 0x9c0   : > { %v1161_v56 = vadd.f32 %v1160_v55, %v1159_v50  ;;  %v1165_v58 = vrot.slane %v1164_v57, 2 }
 0x9c1   : > { %4645 = vrcp.f32 %v1154_v60 }
 0x9c2   : > { %4647 = vrcp.f32 %v1161_v56  ;;  %v1166_v62 = vadd.f32 %v1165_v58, %v1164_v57 }
 0x9c4   : > { %v1167_v63 = vrot.slane %v1166_v62, 1 }
 0x9c6   : > { %v1168_v0 = vadd.f32 %v1167_v63, %v1166_v62  ;;  %v1504_v62 = vsel %vm501_vm1, %v5203_v2, 0 }
 0x9c7   : > { %v4646_v1 = vpop.eup %4645 }
 0x9c8   : > { %v4648_v5 = vpop.eup %4647  ;;  %v1172_v6 = vmul.f32 %v4646_v1, %v4640_v28  ;;  %4649 = vrcp.f32 %v1168_v0 }
 0x9c9   : > { %v1173_v13 = vmul.f32 %v4648_v5, %v4642_v31 }
 0x9ca   : > { %v1175_v16 = vsel %vm501_vm1, %v1172_v6, 0.0 }
 0x9cb   : > { %v1176_v17 = vrot.slane %v1175_v16, 4  ;;  %v1182_v3 = vsel %vm501_vm1, %v1173_v13, 0.0 }
 0x9cc   : > { %v1183_v20 = vrot.slane %v1182_v3, 4 }
 0x9cd   : > { %v1177_v21 = vadd.f32 %v1176_v17, %v1175_v16 }
 0x9ce   : > { %v4650_v23 = vpop.eup %4649  ;;  %v1184_v25 = vadd.f32 %v1183_v20, %v1182_v3 }
 0x9cf   : > { %v1178_v26 = vrot.slane %v1177_v21, 2  ;;  %v1174_v27 = vmul.f32 %v4650_v23, %v4644_v45  ;;  %v5229_v45 = vpop.permute.xlu2 %1521 }
 0x9d0   : > { %v1185_v8 = vrot.slane %v1184_v25, 2 }
 0x9d1   : > { %v1179_v32 = vadd.f32 %v1178_v26, %v1177_v21  ;;  %v1189_v36 = vsel %vm501_vm1, %v1174_v27, 0.0 }
 0x9d2   : > { %v1186_v37 = vadd.f32 %v1185_v8, %v1184_v25  ;;  %v1190_v38 = vrot.slane %v1189_v36, 4 }
 0x9d3   : > { %v1180_v28 = vrot.slane %v1179_v32, 1 }
 0x9d4   : > { %v1187_v39 = vrot.slane %v1186_v37, 1  ;;  %v1191_v31 = vadd.f32 %v1190_v38, %v1189_v36 }
 0x9d5   : > { %v1181_v40 = vadd.f32 %v1180_v28, %v1179_v32 }
 0x9d6   : > { %v1188_v43 = vadd.f32 %v1187_v39, %v1186_v37  ;;  %v1192_v46 = vrot.slane %v1191_v31, 2 }
 0x9d7   : > { %v1196_v49 = vpack.c.bf16 %v1181_v40, %v1181_v40  ;;  %v5236_v63 = vpop.permute.xlu2 %1519 }
 0x9d8   : > { %v1193_v47 = vadd.f32 %v1192_v46, %v1191_v31  ;;  %v1197_v50 = vpack.c.bf16 %v1188_v43, %v1188_v43 }
 0x9d9   : > { %v1202_v53 = vunpack.c.l.b16 %v1196_v49 }
 0x9da   : > { %v1194_v51 = vrot.slane %v1193_v47, 1  ;;  %v1203_v54 = vunpack.c.l.b16 %v1197_v50 }
 0x9dc   : > { %v1195_v52 = vadd.f32 %v1194_v51, %v1193_v47  ;;  %v1206_v60 = vsel %vm1205_vm4, %v1203_v54, %v1202_v53 }
 0x9de   : > { %v1198_v55 = vpack.c.bf16 %v1195_v52, %v1195_v52 }
 0x9df   : > { %v1677_v0 = vpop.permute.xlu2 %1676 }
 0x9e0   : > { %v1204_v57 = vunpack.c.l.b16 %v1198_v55  ;;  %v1682_v1 = vsel %vm501_vm1, %v1677_v0, 0 }
 0x9e2   : > { %v1208_v56 = vsel %vm1207_vm5, %v1204_v57, %v1206_v60 }
 0x9e3   : > { %v1209_v58 = vpack.c.b16 %v1208_v56, %v1208_v56 }
 0x9e5   : > { %4383 = vmatmul.msk.bf16.vlgmr.msra.gmra.mxu1 %vm501_vm1, %v1209_v58 }
 0x9e6   : > { %1513 = vmatpush.bf16.xpose.msra.mxu1 %v1504_v62 }
 0x9e7   : > { %v1675_v26 = vpop.permute.xlu2 %1674 }
 0x9f5   : > { %4387 = vmatmul.msk.bf16.vlgmr.msrb.gmra.mxu1 %vm501_vm1, %v5198_v30 }
 0x9f6   : > { %1691 = vmatpush.bf16.xpose.msrb.mxu1 %v1682_v1 }
 0xa01   : > { %v1279_v5 = vpop.f32.mrf.mxu2 }
 0xa02   : > { %v1341_v6 = vsel %vm501_vm1, %v1279_v5, -inf }
 0xa03   : > { %v1342_v13 = vrot.slane %v1341_v6, 4 }
 0xa05   : > { %v1343_v16 = vmax.f32 %v1341_v6, %v1342_v13  ;;  %4391 = vmatmul.msk.bf16.vlgmr.msra.gmra.mxu1 %vm501_vm1, %v5214_v61 }
 0xa07   : > { %v1344_v2 = vrot.slane %v1343_v16, 2 }
 0xa09   : > { %v1345_v17 = vmax.f32 %v1343_v16, %v1344_v2  ;;  %v1281_v3 = vpop.f32.mrf.mxu2 }
 0xa0b   : > { %v1346_v20 = vrot.slane %v1345_v17, 1 }
 0xa0d   : > { %v1347_v21 = vmax.f32 %v1345_v17, %v1346_v20 }
 0xa0f   : > { %v1362_v23 = vsub.f32 %v1279_v5, %v1347_v21 }
 0xa11   : > { %v1365_v25 = vmul.f32 1.442695, %v1362_v23 }
 0xa13   : > { %4651 = vpow2.f32 %v1365_v25 }
 0xa15   : > { %4395 = vmatmul.msk.bf16.vlgmr.msrb.gmra.mxu1 %vm501_vm1, %v1675_v26 }
 0xa19   : > { %v4652_v30 = vpop.eup %4651 }
 0xa1a   : > { %v1371_v27 = vsel %vm501_vm1, %v4652_v30, 0.0  ;;  %v1308_v8 = vpop.f32.mrf.mxu3 }
 0xa1b   : > { %v1372_v32 = vrot.slane %v1371_v27, 4  ;;  %v1348_v36 = vsel %vm501_vm1, %v1308_v8, -inf }
 0xa1c   : > { %v1349_v37 = vrot.slane %v1348_v36, 4 }
 0xa1d   : > { %v1373_v61 = vadd.f32 %v1372_v32, %v1371_v27 }
 0xa1e   : > { %v1350_v38 = vmax.f32 %v1348_v36, %v1349_v37 }
 0xa1f   : > { %v1374_v28 = vrot.slane %v1373_v61, 2 }
 0xa20   : > { %v1351_v39 = vrot.slane %v1350_v38, 2 }
 0xa21   : > { %v1375_v31 = vadd.f32 %v1374_v28, %v1373_v61 }
 0xa22   : > { %v1352_v40 = vmax.f32 %v1350_v38, %v1351_v39  ;;  %v1310_v43 = vpop.f32.mrf.mxu3 }
 0xa23   : > { %v1376_v46 = vrot.slane %v1375_v31, 1 }
 0xa24   : > { %v1353_v47 = vrot.slane %v1352_v40, 1 }
 0xa25   : > { %v1377_v50 = vadd.f32 %v1376_v46, %v1375_v31 }
 0xa26   : > { %v1354_v49 = vmax.f32 %v1352_v40, %v1353_v47 }
 0xa27   : > { %4653 = vrcp.f32 %v1377_v50 }
 0xa28   : > { %v1363_v51 = vsub.f32 %v1308_v8, %v1354_v49 }
 0xa2a   : > { %v1367_v52 = vmul.f32 1.442695, %v1363_v51  ;;  %v1492_v53 = vpop.f32.mrf.mxu3 }
 0xa2c   : > { %4655 = vpow2.f32 %v1367_v52 }
 0xa2d   : > { %v4654_v54 = vpop.eup %4653 }
 0xa2e   : > { %v1395_v58 = vmul.f32 %v4654_v54, %v4652_v30  ;;  %v1542_v30 = vsel %vm501_vm1, %v1492_v53, -inf }
 0xa2f   : > { %v1543_v32 = vrot.slane %v1542_v30, 4 }
 0xa30   : > { %v1398_v1 = vsel %vm501_vm1, %v1395_v58, 0.0 }
 0xa31   : > { %v1399_v6 = vrot.slane %v1398_v1, 4  ;;  %v1544_v38 = vmax.f32 %v1542_v30, %v1543_v32 }
 0xa32   : > { %v4656_v55 = vpop.eup %4655  ;;  %v1494_v57 = vpop.f32.mrf.mxu3 }
 0xa33   : > { %v1378_v60 = vsel %vm501_vm1, %v4656_v55, 0.0  ;;  %v1400_v2 = vadd.f32 %v1399_v6, %v1398_v1  ;;  %v1545_v40 = vrot.slane %v1544_v38, 2 }
 0xa34   : > { %v1379_v56 = vrot.slane %v1378_v60, 4 }
 0xa35   : > { %v1401_v17 = vrot.slane %v1400_v2, 2  ;;  %v1546_v49 = vmax.f32 %v1544_v38, %v1545_v40 }
 0xa36   : > { %v1380_v62 = vadd.f32 %v1379_v56, %v1378_v60 }
 0xa37   : > { %v1402_v21 = vadd.f32 %v1401_v17, %v1400_v2  ;;  %v1547_v50 = vrot.slane %v1546_v49, 1 }
 0xa38   : > { %v1381_v0 = vrot.slane %v1380_v62, 2 }
 0xa39   : > { %v1403_v26 = vrot.slane %v1402_v21, 1  ;;  %v1548_v52 = vmax.f32 %v1546_v49, %v1547_v50 }
 0xa3a   : > { %v1382_v5 = vadd.f32 %v1381_v0, %v1380_v62 }
 0xa3b   : > { %v1404_v36 = vadd.f32 %v1403_v26, %v1402_v21  ;;  %v1563_v57 = vsub.f32 %v1492_v53, %v1548_v52 }
 0xa3c   : > { %v1383_v13 = vrot.slane %v1382_v5, 1 }
 0xa3d   : > { %v1419_v28 = vpack.c.bf16 %v1404_v36, %v1404_v36  ;;  %v1566_v56 = vmul.f32 1.442695, %v1563_v57 }
 0xa3e   : > { %v1384_v16 = vadd.f32 %v1383_v13, %v1382_v5 }
 0xa3f   : > { %v1425_v43 = vunpack.c.l.b16 %v1419_v28 }
 0xa40   : > { %4657 = vrcp.f32 %v1384_v16 }
 0xa41   : > { %4659 = vpow2.f32 %v1566_v56 }
 0xa46   : > { %v4658_v3 = vpop.eup %4657 }
 0xa47   : > { %v1396_v20 = vmul.f32 %v4658_v3, %v4656_v55  ;;  %v1527_v55 = vsel %vm501_vm1, %v5229_v45, 0  ;;  %v4660_v1 = vpop.eup %4659 }
 0xa48   : > { %v1572_v6 = vsel %vm501_vm1, %v4660_v1, 0.0 }
 0xa49   : > { %v1405_v23 = vsel %vm501_vm1, %v1396_v20, 0.0  ;;  %v1573_v17 = vrot.slane %v1572_v6, 4 }
 0xa4a   : > { %v1406_v25 = vrot.slane %v1405_v23, 4 }
 0xa4b   : > { %v1574_v20 = vadd.f32 %v1573_v17, %v1572_v6 }
 0xa4c   : > { %v1407_v27 = vadd.f32 %v1406_v25, %v1405_v23 }
 0xa4d   : > { %v1575_v25 = vrot.slane %v1574_v20, 2 }
 0xa4e   : > { %v1408_v8 = vrot.slane %v1407_v27, 2 }
 0xa50   : > { %v1409_v37 = vadd.f32 %v1408_v8, %v1407_v27  ;;  %v1576_v8 = vadd.f32 %v1575_v25, %v1574_v20 }
 0xa52   : > { %v1410_v61 = vrot.slane %v1409_v37, 1  ;;  %v1577_v38 = vrot.slane %v1576_v8, 1 }
 0xa54   : > { %v1411_v39 = vadd.f32 %v1410_v61, %v1409_v37 }
 0xa56   : > { %v1420_v31 = vpack.c.bf16 %v1411_v39, %v1411_v39 }
 0xa58   : > { %v1426_v46 = vunpack.c.l.b16 %v1420_v31 }
 0xa5a   : > { %v5252_v47 = vsel %vm1205_vm4, %v1426_v46, %v1425_v43  ;;  %v1578_v46 = vadd.f32 %v1577_v38, %v1576_v8 }
 0xa62   : > { %v1228_v51 = vpop.f32.mrf.mxu1 }
 0xa63   : > { %v1232_v54 = vpack.c.bf16 %v1228_v51, %v1228_v51 }
 0xa65   : > { %4384 = vmatmul.msk.bf16.vlgmr.msrb.gmra.mxu0 %vm501_vm1, %v1232_v54 }
 0xa66   : > { %1536 = vmatpush.bf16.xpose.msrb.mxu0 %v1527_v55 }
 0xa6a   : > { %v1230_v60 = vpop.f32.mrf.mxu1 }
 0xa72   : > { %v1337_v58 = vpop.f32.mrf.mxu1 }
 0xa73   : > { %v1355_v62 = vsel %vm501_vm1, %v1337_v58, -inf }
 0xa74   : > { %v1356_v0 = vrot.slane %v1355_v62, 4 }
 0xa76   : > { %v1357_v5 = vmax.f32 %v1355_v62, %v1356_v0 }
 0xa78   : > { %v1358_v13 = vrot.slane %v1357_v5, 2 }
 0xa7a   : > { %v1359_v16 = vmax.f32 %v1357_v5, %v1358_v13  ;;  %v1339_v2 = vpop.f32.mrf.mxu1 }
 0xa7c   : > { %v1360_v45 = vrot.slane %v1359_v16, 1 }
 0xa7e   : > { %v1361_v3 = vmax.f32 %v1359_v16, %v1360_v45 }
 0xa80   : > { %v1364_v21 = vsub.f32 %v1337_v58, %v1361_v3 }
 0xa82   : > { %v1369_v53 = vmul.f32 1.442695, %v1364_v21  ;;  %v1515_v23 = vpop.f32.mrf.mxu1 }
 0xa83   : > { %v1549_v26 = vsel %vm501_vm1, %v1515_v23, -inf }
 0xa84   : > { %4661 = vpow2.f32 %v1369_v53  ;;  %v1550_v27 = vrot.slane %v1549_v26, 4 }
 0xa85   : > { %4663 = vrcp.f32 %v1578_v46 }
 0xa86   : > { %v1551_v30 = vmax.f32 %v1549_v26, %v1550_v27 }
 0xa88   : > { %v1552_v32 = vrot.slane %v1551_v30, 2 }
 0xa8a   : > { %v4662_v36 = vpop.eup %4661  ;;  %v1553_v37 = vmax.f32 %v1551_v30, %v1552_v32  ;;  %v1517_v61 = vpop.f32.mrf.mxu1 }
 0xa8b   : > { %v1385_v28 = vsel %vm501_vm1, %v4662_v36, 0.0  ;;  %v4664_v60 = vpop.eup %4663 }
 0xa8c   : > { %v1386_v39 = vrot.slane %v1385_v28, 4  ;;  %v1554_v31 = vrot.slane %v1553_v37, 1  ;;  %v1596_v5 = vmul.f32 %v4664_v60, %v4660_v1 }
 0xa8e   : > { %v1387_v40 = vadd.f32 %v1386_v39, %v1385_v28  ;;  %v1555_v43 = vmax.f32 %v1553_v37, %v1554_v31  ;;  %v1599_v17 = vsel %vm501_vm1, %v1596_v5, 0.0  ;;  %v1700_v31 = vpop.permute.xlu0 %1699 }
 0xa8f   : > { %v1600_v21 = vrot.slane %v1599_v17, 4 }
 0xa90   : > { %v1388_v49 = vrot.slane %v1387_v40, 2  ;;  %v1564_v50 = vsub.f32 %v1515_v23, %v1555_v43 }
 0xa91   : > { %v1601_v27 = vadd.f32 %v1600_v21, %v1599_v17 }
 0xa92   : > { %v1389_v51 = vadd.f32 %v1388_v49, %v1387_v40  ;;  %v1568_v52 = vmul.f32 1.442695, %v1564_v50  ;;  %v5261_v54 = vpop.f32.mrf.mxu1 }
 0xa93   : > { %v1602_v1 = vrot.slane %v1601_v27, 2 }
 0xa94   : > { %v1390_v55 = vrot.slane %v1389_v51, 1  ;;  %4665 = vpow2.f32 %v1568_v52 }
 0xa95   : > { %v1603_v38 = vadd.f32 %v1602_v1, %v1601_v27 }
 0xa96   : > { %v1391_v57 = vadd.f32 %v1390_v55, %v1389_v51  ;;  %v1705_v51 = vsel %vm501_vm1, %v1700_v31, 0 }
 0xa97   : > { %v1604_v49 = vrot.slane %v1603_v38, 1 }
 0xa98   : > { %4667 = vrcp.f32 %v1391_v57 }
 0xa99   : > { %v1605_v55 = vadd.f32 %v1604_v49, %v1603_v38 }
 0xa9a   : > { %v4666_v56 = vpop.eup %4665  ;;  %v1695_v58 = vpop.f32.mrf.mxu1 }
 0xa9b   : > { %v1579_v62 = vsel %vm501_vm1, %v4666_v56, 0.0 }
 0xa9c   : > { %v1580_v0 = vrot.slane %v1579_v62, 4 }
 0xa9e   : > { %v4668_v6 = vpop.eup %4667  ;;  %v1581_v13 = vadd.f32 %v1580_v0, %v1579_v62 }
 0xa9f   : > { %v1397_v16 = vmul.f32 %v4668_v6, %v4662_v36 }
 0xaa0   : > { %v1582_v2 = vrot.slane %v1581_v13, 2 }
 0xaa1   : > { %v1412_v45 = vsel %vm501_vm1, %v1397_v16, 0.0 }
 0xaa2   : > { %v1413_v3 = vrot.slane %v1412_v45, 4  ;;  %v1583_v20 = vadd.f32 %v1582_v2, %v1581_v13  ;;  %v1743_v2 = vsel %vm501_vm1, %v5261_v54, -inf }
 0xaa3   : > { %v1744_v17 = vrot.slane %v1743_v2, 4 }
 0xaa4   : > { %v1414_v53 = vadd.f32 %v1413_v3, %v1412_v45  ;;  %v1584_v23 = vrot.slane %v1583_v20, 1 }
 0xaa5   : > { %v1745_v45 = vmax.f32 %v1743_v2, %v1744_v17 }
 0xaa6   : > { %v1415_v25 = vrot.slane %v1414_v53, 2  ;;  %v1585_v26 = vadd.f32 %v1584_v23, %v1583_v20 }
 0xaa7   : > { %v1746_v3 = vrot.slane %v1745_v45, 2 }
 0xaa8   : > { %v1416_v30 = vadd.f32 %v1415_v25, %v1414_v53  ;;  %4669 = vrcp.f32 %v1585_v26 }
 0xaa9   : > { %v1747_v20 = vmax.f32 %v1745_v45, %v1746_v3 }
 0xaaa   : > { %v1417_v8 = vrot.slane %v1416_v30, 1 }
 0xaab   : > { %v1748_v21 = vrot.slane %v1747_v20, 1 }
 0xaac   : > { %v1418_v32 = vadd.f32 %v1417_v8, %v1416_v30 }
 0xaad   : > { %v1749_v23 = vmax.f32 %v1747_v20, %v1748_v21 }
 0xaae   : > { %v4670_v37 = vpop.eup %4669  ;;  %v1421_v36 = vpack.c.bf16 %v1418_v32, %v1418_v32 }
 0xaaf   : > { %v1597_v61 = vmul.f32 %v4670_v37, %v4666_v56  ;;  %v1620_v56 = vpack.c.bf16 %v1605_v55, %v1605_v55  ;;  %v1764_v26 = vsub.f32 %v5261_v54, %v1749_v23 }
 0xab0   : > { %v1427_v28 = vunpack.c.l.b16 %v1421_v36 }
 0xab1   : > { %v1606_v39 = vsel %vm501_vm1, %v1597_v61, 0.0  ;;  %v1626_v0 = vunpack.c.l.b16 %v1620_v56  ;;  %v1767_v30 = vmul.f32 1.442695, %v1764_v26 }
 0xab2   : > { %v1607_v40 = vrot.slane %v1606_v39, 4  ;;  %v1429_v43 = vsel %vm1207_vm5, %v1427_v28, %v5252_v47  ;;  %v1698_v47 = vpop.permute.xlu0 %1697 }
 0xab3   : > { %v1430_v46 = vpack.c.b16 %v1429_v43, %v1429_v43  ;;  %4671 = vpow2.f32 %v1767_v30 }
 0xab4   : > { %v1608_v50 = vadd.f32 %v1607_v40, %v1606_v39 }
 0xab5   : > { %4388 = vmatmul.msk.bf16.vlgmr.msra.gmra.mxu0 %vm501_vm1, %v1430_v46 }
 0xab6   : > { %v1609_v52 = vrot.slane %v1608_v50, 2  ;;  %1714 = vmatpush.bf16.xpose.msra.mxu0 %v1705_v51 }
 0xab8   : > { %v1610_v57 = vadd.f32 %v1609_v52, %v1608_v50 }
 0xab9   : > { %v4672_v37 = vpop.eup %4671 }
 0xaba   : > { %v1611_v60 = vrot.slane %v1610_v57, 1  ;;  %v1773_v61 = vsel %vm501_vm1, %v4672_v37, 0.0 }
 0xabc   : > { %v1612_v58 = vadd.f32 %v1611_v60, %v1610_v57 }
 0xabe   : > { %v1621_v62 = vpack.c.bf16 %v1612_v58, %v1612_v58 }
 0xac0   : > { %v1627_v5 = vunpack.c.l.b16 %v1621_v62 }
 0xac2   : > { %v5272_v6 = vsel %vm1205_vm4, %v1627_v5, %v1626_v0 }
 0xac5   : > { %4392 = vmatmul.msk.bf16.vlgmr.msrb.gmra.mxu0 %vm501_vm1, %v5236_v63  ;;  %v1728_v63 = vsel %vm501_vm1, %v5217_v22, 0  ;;  %v1774_v22 = vrot.slane %v1773_v61, 4 }
 0xac7   : > { %v1775_v43 = vadd.f32 %v1774_v22, %v1773_v61 }
 0xac9   : > { %v1776_v50 = vrot.slane %v1775_v43, 2 }
 0xacb   : > { %v1777_v57 = vadd.f32 %v1776_v50, %v1775_v43 }
 0xacd   : > { %v1778_v0 = vrot.slane %v1777_v57, 1 }
 0xacf   : > { %v1779_v45 = vadd.f32 %v1778_v0, %v1777_v57 }
 0xad5   : > { %4396 = vmatmul.msk.bf16.vlgmr.msra.gmra.mxu0 %vm501_vm1, %v1698_v47 }
 0xae2   : > { %v5277_v13 = vpop.f32.mrf.mxu0 }
 0xaea   : > { %v1250_v16 = vpop.f32.mrf.mxu0 }
 0xb32   : > { %v1448_v53 = vpop.f32.mrf.mxu0 }
 0xb33   : > { %v1452_v25 = vpack.c.bf16 %v1448_v53, %v1448_v53 }
 0xb35   : > { %4389 = vmatmul.msk.bf16.vlgmr.msrb.gmra.mxu2 %vm501_vm1, %v1452_v25 }
 0xb36   : > { %1737 = vmatpush.bf16.xpose.msrb.mxu2 %v1728_v63 }
 0xb3a   : > { %v1450_v27 = vpop.f32.mrf.mxu0 }
 0xb42   : > { %v1538_v8 = vpop.f32.mrf.mxu0 }
 0xb43   : > { %v1556_v1 = vsel %vm501_vm1, %v1538_v8, -inf }
 0xb44   : > { %v1557_v32 = vrot.slane %v1556_v1, 4 }
 0xb46   : > { %v1558_v36 = vmax.f32 %v1556_v1, %v1557_v32 }
 0xb48   : > { %v1559_v38 = vrot.slane %v1558_v36, 2 }
 0xb4a   : > { %v1560_v28 = vmax.f32 %v1558_v36, %v1559_v38  ;;  %v1540_v39 = vpop.f32.mrf.mxu0 }
 0xb4c   : > { %v1561_v31 = vrot.slane %v1560_v28, 1 }
 0xb4e   : > { %v1562_v40 = vmax.f32 %v1560_v28, %v1561_v31 }
 0xb50   : > { %v1565_v46 = vsub.f32 %v1538_v8, %v1562_v40 }
 0xb52   : > { %v1570_v54 = vmul.f32 1.442695, %v1565_v46  ;;  %v1716_v49 = vpop.f32.mrf.mxu0 }
 0xb53   : > { %v1750_v51 = vsel %vm501_vm1, %v1716_v49, -inf }
 0xb54   : > { %4673 = vpow2.f32 %v1570_v54  ;;  %v1751_v52 = vrot.slane %v1750_v51, 4 }
 0xb55   : > { %4675 = vrcp.f32 %v1779_v45 }
 0xb56   : > { %v1752_v55 = vmax.f32 %v1750_v51, %v1751_v52 }
 0xb58   : > { %v1753_v60 = vrot.slane %v1752_v55, 2 }
 0xb5a   : > { %v4674_v56 = vpop.eup %4673  ;;  %v1754_v58 = vmax.f32 %v1752_v55, %v1753_v60  ;;  %v1718_v62 = vpop.f32.mrf.mxu0 }
 0xb5b   : > { %v1586_v5 = vsel %vm501_vm1, %v4674_v56, 0.0  ;;  %v4676_v63 = vpop.eup %4675 }
 0xb5c   : > { %v1587_v47 = vrot.slane %v1586_v5, 4  ;;  %v1755_v16 = vrot.slane %v1754_v58, 1  ;;  %v1797_v8 = vmul.f32 %v4676_v63, %v4672_v37 }
 0xb5e   : > { %v1588_v2 = vadd.f32 %v1587_v47, %v1586_v5  ;;  %v1756_v17 = vmax.f32 %v1754_v58, %v1755_v16  ;;  %v1800_v38 = vsel %vm501_vm1, %v1797_v8, 0.0 }
 0xb5f   : > { %v1801_v31 = vrot.slane %v1800_v38, 4 }
 0xb60   : > { %v1589_v3 = vrot.slane %v1588_v2, 2  ;;  %v1765_v20 = vsub.f32 %v1716_v49, %v1756_v17 }
 0xb61   : > { %v1802_v49 = vadd.f32 %v1801_v31, %v1800_v38 }
 0xb62   : > { %v1590_v21 = vadd.f32 %v1589_v3, %v1588_v2  ;;  %v1769_v53 = vmul.f32 1.442695, %v1765_v20 }
 0xb63   : > { %v1803_v37 = vrot.slane %v1802_v49, 2 }
 0xb64   : > { %v1591_v23 = vrot.slane %v1590_v21, 1  ;;  %4677 = vpow2.f32 %v1769_v53 }
 0xb66   : > { %v1592_v25 = vadd.f32 %v1591_v23, %v1590_v21 }
 0xb68   : > { %4679 = vrcp.f32 %v1592_v25 }
 0xb6a   : > { %v4678_v26 = vpop.eup %4677 }
 0xb6b   : > { %v1780_v27 = vsel %vm501_vm1, %v4678_v26, 0.0 }
 0xb6c   : > { %v1781_v30 = vrot.slane %v1780_v27, 4 }
 0xb6e   : > { %v4680_v1 = vpop.eup %4679  ;;  %v1782_v32 = vadd.f32 %v1781_v30, %v1780_v27 }
 0xb6f   : > { %v1598_v36 = vmul.f32 %v4680_v1, %v4674_v56  ;;  %v1804_v56 = vadd.f32 %v1803_v37, %v1802_v49 }
 0xb70   : > { %v1783_v61 = vrot.slane %v1782_v32, 2 }
 0xb71   : > { %v1613_v28 = vsel %vm501_vm1, %v1598_v36, 0.0  ;;  %v1805_v16 = vrot.slane %v1804_v56, 1 }
 0xb72   : > { %v1614_v39 = vrot.slane %v1613_v28, 4  ;;  %v1784_v22 = vadd.f32 %v1783_v61, %v1782_v32 }
 0xb73   : > { %v1806_v45 = vadd.f32 %v1805_v16, %v1804_v56 }
 0xb74   : > { %v1615_v40 = vadd.f32 %v1614_v39, %v1613_v28  ;;  %v1785_v43 = vrot.slane %v1784_v22, 1 }
 0xb75   : > { %v1821_v21 = vpack.c.bf16 %v1806_v45, %v1806_v45 }
 0xb76   : > { %v1616_v46 = vrot.slane %v1615_v40, 2  ;;  %v1786_v54 = vadd.f32 %v1785_v43, %v1784_v22 }
 0xb77   : > { %v1827_v25 = vunpack.c.l.b16 %v1821_v21 }
 0xb78   : > { %v1617_v50 = vadd.f32 %v1616_v46, %v1615_v40  ;;  %4681 = vrcp.f32 %v1786_v54 }
 0xb7a   : > { %v1618_v51 = vrot.slane %v1617_v50, 1 }
 0xb7c   : > { %v1619_v52 = vadd.f32 %v1618_v51, %v1617_v50 }
 0xb7e   : > { %v4682_v55 = vpop.eup %4681  ;;  %v1622_v57 = vpack.c.bf16 %v1619_v52, %v1619_v52 }
 0xb7f   : > { %v1798_v60 = vmul.f32 %v4682_v55, %v4678_v26 }
 0xb80   : > { %v1628_v58 = vunpack.c.l.b16 %v1622_v57 }
 0xb81   : > { %v1807_v62 = vsel %vm501_vm1, %v1798_v60, 0.0 }
 0xb82   : > { %v1808_v0 = vrot.slane %v1807_v62, 4  ;;  %v1630_v5 = vsel %vm1207_vm5, %v1628_v58, %v5272_v6  ;;  %v4255_v6 = vld [vmem:[%s5973_s4 + $0x38] sm:$0x1] }
 0xb83   : > { %v1631_v47 = vpack.c.b16 %v1630_v5, %v1630_v5  ;;  %v380_v27 = vunpack.c.l.bf16 %v4255_v6 }
 0xb84   : > { %v1809_v2 = vadd.f32 %v1808_v0, %v1807_v62 }
 0xb85   : > { %4393 = vmatmul.msk.bf16.vlgmr.msra.gmra.mxu2 %vm501_vm1, %v1631_v47  ;;  %v5302_v30 = vperm.slane %v380_v27, 0  ;;  %v4254_v27 = vld [vmem:[%s5973_s4 + $0x34] sm:$0xf] }
 0xb86   : > { %v1810_v17 = vrot.slane %v1809_v2, 2 }
 0xb87   : > { %v1253_v8 = vadd.f32 %v5302_v30, %v5277_v13 }
 0xb88   : > { %v1811_v3 = vadd.f32 %v1810_v17, %v1809_v2 }
 0xb8a   : > { %v1812_v20 = vrot.slane %v1811_v3, 1 }
 0xb8c   : > { %v1813_v53 = vadd.f32 %v1812_v20, %v1811_v3 }
 0xb8e   : > { %v1822_v23 = vpack.c.bf16 %v1813_v53, %v1813_v53 }
 0xb90   : > { %v1828_v63 = vunpack.c.l.b16 %v1822_v23 }
 0xb92   : > { %v1830_v26 = vsel %vm1205_vm4, %v1828_v63, %v1827_v25 }
 0xb95   : > { %4397 = vmatmul.msk.bf16.vlgmr.msrb.gmra.mxu2 %vm501_vm1, %v5221_v34 }
 0xbb8   : > { %v1468_v1 = vpop.f32.mrf.mxu2 }
 0xbb9   : > { %v1472_v32 = vadd.f32 %v1468_v1, %v1253_v8  ;;  %v5316_v8 = vsel %vm538_vm2, %v4254_v27, 0 }
 0xbba   : > { %1868 = vmatpush.bf16.msra.mxu1 %v5316_v8 }
 0xbc0   : > { %v1470_v36 = vpop.f32.mrf.mxu2 }
 0xc08   : > { %v1649_v61 = vpop.f32.mrf.mxu2 }
 0xc09   : > { %v1653_v38 = vpack.c.bf16 %v1649_v61, %v1649_v61  ;;  %v4564_v61 = vld [vmem:[%s5972_s3 + $0x44] sm:$0xff] }
 0xc0a   : > { %1901 = vmatpush.bf16.msrb.mxu0 %v4564_v61 }
 0xc0b   : > { %4394 = vmatmul.msk.bf16.vlgmr.msra.gmra.mxu3 %vm501_vm1, %v1653_v38  ;;  %v4584_v38 = vld [vmem:[%s5975_s6 + $0x5c] sm:$0xff] }
 0xc0c   : > { %1952 = vmatpush.bf16.msra.mxu2 %v4584_v38 }
 0xc10   : > { %v1651_v28 = vpop.f32.mrf.mxu2 }
 0xc11   : > { %v4583_v28 = vld [vmem:[%s5975_s6 + $0x54] sm:$0xff] }
 0xc12   : > { %1953 = vmatpush.bf16.msra.mxu2 %v4583_v28 }
 0xc18   : > { %v1739_v39 = vpop.f32.mrf.mxu2 }
 0xc19   : > { %v1757_v34 = vsel %vm501_vm1, %v1739_v39, -inf }
 0xc1a   : > { %v1758_v22 = vrot.slane %v1757_v34, 4 }
 0xc1c   : > { %v1759_v31 = vmax.f32 %v1757_v34, %v1758_v22  ;;  %v4581_v34 = vld [vmem:[%s5975_s6 + $0x44] sm:$0xff] }
 0xc1e   : > { %v1760_v40 = vrot.slane %v1759_v31, 2 }
 0xc20   : > { %v1761_v43 = vmax.f32 %v1759_v31, %v1760_v40  ;;  %v1741_v46 = vpop.f32.mrf.mxu2  ;;  %v1875_v31 = vstv %s5338_s11 }
 0xc21   : > { %v4783_v46 = vld [vmem:[%s4924_s15] sm:$0xff] }
 0xc22   : > { %v1762_v54 = vrot.slane %v1761_v43, 1 }
 0xc24   : > { %v1763_v49 = vmax.f32 %v1761_v43, %v1762_v54 }
 0xc26   : > { %v1766_v50 = vsub.f32 %v1739_v39, %v1763_v49  ;;  %v4582_v39 = vld [vmem:[%s5975_s6 + $0x4c] sm:$0xff] }
 0xc27   : > { %1954 = vmatpush.bf16.msra.mxu2 %v4582_v39  ;;  %v2083_v39 = vpop.permute.xlu1 %2082 }
 0xc28   : > { %v1771_v13 = vmul.f32 1.442695, %v1766_v50 }
 0xc2a   : > { %4683 = vpow2.f32 %v1771_v13  ;;  %v4580_v13 = vld [vmem:[%s5975_s6 + $0x3c] sm:$0xff] }
 0xc2b   : > { %1955 = vmatpush.bf16.msra.mxu2 %v4581_v34 }
 0xc2f   : > { %1956 = vmatpush.bf16.msra.mxu2 %v4580_v13 }
 0xc30   : > { %v4684_v51 = vpop.eup %4683 }
 0xc31   : > { %v1787_v37 = vsel %vm501_vm1, %v4684_v51, 0.0 }
 0xc32   : > { %v1788_v52 = vrot.slane %v1787_v37, 4 }
 0xc34   : > { %v1789_v55 = vadd.f32 %v1788_v52, %v1787_v37  ;;  %v4240_v37 = vld [vmem:[%s5972_s3 + $0x4c] sm:$0x1] }
 0xc35   : > { %v353_v52 = vunpack.c.l.bf16 %v4240_v37 }
 0xc36   : > { %v1790_v57 = vrot.slane %v1789_v55, 2 }
 0xc38   : > { %v1791_v60 = vadd.f32 %v1790_v57, %v1789_v55  ;;  %v5354_v55 = vperm.slane %v353_v52, 0 }
 0xc3a   : > { %v1792_v56 = vrot.slane %v1791_v60, 1 }
 0xc3c   : > { %v1793_v58 = vadd.f32 %v1792_v56, %v1791_v60 }
 0xc3e   : > { %4685 = vrcp.f32 %v1793_v58 }
 0xc44   : > { %v4686_v62 = vpop.eup %4685 }
 0xc45   : > { %v1799_v0 = vmul.f32 %v4686_v62, %v4684_v51  ;;  %v4579_v51 = vld [vmem:[%s5975_s6 + $0x34] sm:$0xff] }
 0xc46   : > { %1957 = vmatpush.bf16.msra.mxu2 %v4579_v51 }
 0xc47   : > { %v1814_v5 = vsel %vm501_vm1, %v1799_v0, 0.0  ;;  %v4572_v0 = vld [vmem:[%s5974_s5 + $0x1c] sm:$0xff] }
 0xc48   : > { %v1815_v47 = vrot.slane %v1814_v5, 4  ;;  %1989 = vmatpush.bf16.msra.mxu3 %v4572_v0  ;;  %v4858_v0 = vmov 65535  }
 0xc4a   : > { %v1816_v16 = vadd.f32 %v1815_v47, %v1814_v5  ;;  %v4571_v5 = vld [vmem:[%s5974_s5 + $0x14] sm:$0xff]  ;;  %v4278_v47 = vld [vmem:[%s5975_s6 + $0x64] sm:$0x1] }
 0xc4c   : > { %v1817_v2 = vrot.slane %v1816_v16, 2  ;;  %1990 = vmatpush.bf16.msra.mxu3 %v4571_v5  ;;  %v2042_v5 = vsel %vm2040_vm8, 4294967295, %v4858_v0 }
 0xc4e   : > { %v1818_v17 = vadd.f32 %v1817_v2, %v1816_v16  ;;  %v429_v16 = vunpack.c.l.bf16 %v4278_v47  ;;  %v5414_v47 = vsel %vm2041_vm9, %v2042_v5, 0 }
 0xc50   : > { %v1819_v45 = vrot.slane %v1818_v17, 1  ;;  %v5369_v2 = vperm.slane %v429_v16, 0 }
 0xc52   : > { %v1820_v3 = vadd.f32 %v1819_v45, %v1818_v17  ;;  %v1963_v45 = vstv %s5367_s13 }
 0xc54   : > { %v1823_v20 = vpack.c.bf16 %v1820_v3, %v1820_v3 }
 0xc56   : > { %v1829_v21 = vunpack.c.l.b16 %v1823_v20 }
 0xc58   : > { %v1831_v53 = vsel %vm1207_vm5, %v1829_v21, %v1830_v26 }
 0xc59   : > { %v1832_v23 = vpack.c.b16 %v1831_v53, %v1831_v53 }
 0xc5b   : > { %4398 = vmatmul.msk.bf16.vlgmr.msrb.gmra.mxu3 %vm501_vm1, %v1832_v23 }
 0xc8e   : > { %v1669_v25 = vpop.f32.mrf.mxu3 }
 0xc8f   : > { %v1673_v63 = vadd.f32 %v1669_v25, %v1472_v32  ;;  %v4563_v32 = vld [vmem:[%s5972_s3 + $0x3c] sm:$0xff]  ;;  %v4265_v25 = vld [vmem:[%s5974_s5 + $0x24] sm:$0x1] }
 0xc90   : > { %1902 = vmatpush.bf16.msrb.mxu0 %v4563_v32  ;;  %v2001_v32 = vpop.permute.xlu2 %2000 }
 0xc96   : > { %v1671_v6 = vpop.f32.mrf.mxu3 }
 0xcde   : > { %v1850_v1 = vpop.f32.mrf.mxu3 }
 0xcdf   : > { %v1854_v36 = vpack.c.bf16 %v1850_v1, %v1850_v1 }
 0xce1   : > { %4399 = vmatmul.msk.bf16.vlgmr.msra.gmra.mxu1 %vm501_vm1, %v1854_v36 }
 0xce6   : > { %v1852_v26 = vpop.f32.mrf.mxu3 }
 0xd5e   : > { %v1870_v22 = vpop.f32.mrf.mxu1 }
 0xd5f   : > { %v1874_v40 = vadd.f32 %v1870_v22, %v1673_v63  ;;  %v400_v63 = vunpack.c.l.bf16 %v4265_v25 }
 0xd61   : > { %v1876_v43 = vmul.f32 %v1875_v31, %v1874_v40  ;;  %v5388_v6 = vperm.slane %v400_v63, 0 }
 0xd63   : > { %v1877_v54 = vadd.f32 %v4783_v46, %v1876_v43 }
 0xd65   : > { %v1878_v49 = vpack.c.bf16 %v1877_v54, %v1877_v54 }
 0xd66   : > { %v1872_v50 = vpop.f32.mrf.mxu1 }
 0xd67   : > { %4408 = vmatmul.msk.bf16.vlgmr.msrb.gmra.mxu0 %vm478_vm0, %v1878_v49 }
 0xde4   : > { %v1904_v57 = vpop.f32.mrf.mxu0 }
 0xde5   : > { %v1905_v60 = vadd.f32 %v1904_v57, %v5354_v55 }
 0xde7   : > { %v1908_v56 = vmax.f32 %v1905_v60, 0.0 }
 0xde9   : > { %v1909_v58 = vpack.c.bf16 %v1908_v56, %v1908_v56 }
 0xdeb   : > { %4433 = vmatmul.msk.bf16.vlgmr.msra.gmra.mxu2 %vm893_vm3, %v1909_v58 }
 0xdec   : > { %v1906_v62 = vpop.f32.mrf.mxu0 }
 0xe6e   : > { %v1959_v17 = vpop.f32.mrf.mxu2 }
 0xe6f   : > { %v1960_v3 = vadd.f32 %v1959_v17, %v5369_v2 }
 0xe71   : > { %v1964_v20 = vmul.f32 %v1963_v45, %v1960_v3 }
 0xe73   : > { %v1965_v21 = vadd.f32 %v1964_v20, %v1877_v54 }
 0xe75   : > { %v1966_v53 = vpack.c.bf16 %v1965_v21, %v1965_v21  ;;  %2421 = vst.msk [vmem:[%s5380_s25] sm:$0x7] %vm2420_vm6, %v1965_v21 }
 0xe76   : > { %v1961_v23 = vpop.f32.mrf.mxu2 }
 0xe77   : > { %4442 = vmatmul.msk.bf16.vlgmr.msra.gmra.mxu3 %vm478_vm0, %v1966_v53 }
 0xefa   : > { %v1992_v27 = vpop.f32.mrf.mxu3 }
 0xefb   : > { %v1993_v1 = vadd.f32 %v1992_v27, %v5388_v6 }
 0xefd   : > { %v5391_v36 = vpack.c.bf16 %v1993_v1, %v1993_v1 }
 0xeff   : > { %2084 = vrot.lane.b32.xlu0 %v5391_v36, %s5988_s20  ;;  %v2006_v26 = vsel %vm501_vm1, %v5391_v36, 0 }
 0xf00   : > { %2015 = vmatpush.bf16.xpose.msrb.mxu1 %v2006_v26  ;;  %v4256_v26 = vld [vmem:[%s5973_s4 + $0x3c] sm:$0xf] }
 0xf02   : > { %v1994_v61 = vpop.f32.mrf.mxu3 }
 0xf03   : > { %v5433_v61 = vsel %vm538_vm2, %v4256_v26, 0 }
 0xf04   : > { %2074 = vmatpush.bf16.msrb.mxu3 %v5433_v61 }
 0xf07   : > { %4443 = vmatmul.msk.bf16.vlgmr.msrb.gmra.mxu1 %vm501_vm1, %v2001_v32 }
 0xf71   : > { %v2085_v38 = vpop.permute.xlu0 %2084 }
 0xf72   : > { %v2090_v28 = vsel %vm501_vm1, %v2085_v38, 0 }
 0xf73   : > { %2099 = vmatpush.bf16.xpose.msra.mxu1 %v2090_v28 }
 0xf7a   : > { %4446 = vmatmul.msk.bf16.vlgmr.msra.gmra.mxu1 %vm501_vm1, %v2083_v39 }
 0xf84   : > { %v2017_v34 = vpop.f32.mrf.mxu1 }
 0xf85   : > { %v2022_v22 = vsel %vm2021_vm7, %v2017_v34, -inf }
 0xf86   : > { %2023 = vmax.xlane.f32.xlu2 %v2022_v22 }
 0xf8c   : > { %v2019_v40 = vpop.f32.mrf.mxu1 }
 0xff7   : > { %v2101_v43 = vpop.f32.mrf.mxu1 }
 0xff8   : > { %v2105_v46 = vsel %vm2021_vm7, %v2101_v43, -inf }
 0xff9   : > { %v2024_v54 = vpop.xlane.xlu2 %2023  ;;  %2106 = vmax.xlane.f32.xlu0 %v2105_v46 }
 0xffa   : > { %v2025_v49 = vsub.f32 %v2017_v34, %v2024_v54 }
 0xffc   : > { %v2026_v50 = vmul.f32 1.442695, %v2025_v49 }
 0xffe   : > { %4687 = vpow2.f32 %v2026_v50 }
 0xfff   : > { %v2103_v13 = vpop.f32.mrf.mxu1 }
0x1004   : > { %v4688_v51 = vpop.eup %4687 }
0x1005   : > { %v2028_v37 = vsel %vm2021_vm7, %v4688_v51, 0.0 }
0x1006   : > { %2029 = vadd.xlane.f32.xlu1 %v2028_v37 }
0x100d   : > { %2035 = vrot.lane.b32.xlu0 %v5391_v36, %s5990_s19 }
0x1015   : > { %2159 = vrot.lane.b32.xlu0 %v5172_v10, %s6002_s9 }
0x101d   : > { %2238 = vrot.lane.b32.xlu0 %v5391_v36, %s5997_s23 }
0x101f   : > { %2117 = vrot.lane.b32.xlu1 %v5391_v36, %s5986_s18 }
0x1027   : > { %2236 = vrot.lane.b32.xlu1 %v5172_v10, %s6003_s16  ;;  %v4257_v10 = vld [vmem:[%s5973_s4 + $0x40] sm:$0xf] }
0x1028   : > { %v5421_v20 = vsel %vm538_vm2, %v4257_v10, 0 }
0x106c   : > { %v2107_v52 = vpop.xlane.xlu0 %2106 }
0x106d   : > { %v2108_v57 = vsub.f32 %v2101_v43, %v2107_v52 }
0x106f   : > { %v2109_v60 = vmul.f32 1.442695, %v2108_v57 }
0x1071   : > { %4689 = vpow2.f32 %v2109_v60 }
0x1077   : > { %v4690_v56 = vpop.eup %4689 }
0x1078   : > { %v2111_v58 = vsel %vm2021_vm7, %v4690_v56, 0.0 }
0x1079   : > { %v2030_v62 = vpop.xlane.xlu1 %2029  ;;  %2112 = vadd.xlane.f32.xlu2 %v2111_v58 }
0x107a   : > { %4691 = vrcp.f32 %v2030_v62 }
0x107f   : > { %v2036_v16 = vpop.permute.xlu0 %2035 }
0x1080   : > { %v4692_v17 = vpop.eup %4691  ;;  %v2045_v3 = vand.u32 %v5414_v47, %v2036_v16 }
0x1081   : > { %v2032_v21 = vmul.f32 %v4692_v17, %v4688_v51 }
0x1082   : > { %2054 = vmatpush.bf16.msra.mxu0 %v2045_v3 }
0x1083   : > { %v2033_v53 = vpack.c.bf16 %v2032_v21, %v2032_v21 }
0x1085   : > { %4444 = vmatmul.msk.bf16.vlgmr.msra.gmra.mxu0 %vm2021_vm7, %v2033_v53 }
0x1086   : > { %2152 = vmatpush.bf16.msrb.mxu0 %v5421_v20 }
0x1087   : > { %v2160_v23 = vpop.permute.xlu0 %2159 }
0x108f   : > { %v2239_v25 = vpop.permute.xlu0 %2238 }
0x1090   : > { %v2244_v63 = vsel %vm501_vm1, %v2239_v25, 0 }
0x1091   : > { %v2118_v27 = vpop.permute.xlu1 %2117  ;;  %2161 = vrot.lane.b32.xlu2 %v5391_v36, %s5992_s22  ;;  %2253 = vmatpush.bf16.xpose.msra.mxu0 %v2244_v63  ;;  %s6011_s22 = smov 104  }
0x1092   : > { %v2123_v1 = vand.u32 %v2118_v27, %v5414_v47 }
0x1094   : > { %2132 = vmatpush.bf16.msrb.mxu2 %v2123_v1 }
0x1099   : > { %v2237_v51 = vpop.permute.xlu1 %2236 }
0x10ec   : > { %v2113_v32 = vpop.xlane.xlu2 %2112 }
0x10ed   : > { %4693 = vrcp.f32 %v2113_v32 }
0x10f3   : > { %v4694_v38 = vpop.eup %4693 }
0x10f4   : > { %v2115_v28 = vmul.f32 %v4694_v38, %v4690_v56  ;;  %v2162_v39 = vpop.permute.xlu2 %2161  ;;  %v4260_v56 = vld [vmem:[%s5973_s4 + $0x4c] sm:$0x1] }
0x10f5   : > { %v2167_v34 = vsel %vm501_vm1, %v2162_v39, 0  ;;  %v387_v58 = vunpack.c.l.bf16 %v4260_v56  ;;  %v5478_v56 = vld [vmem:[%s4924_s15 + $0x18] sm:$0x7] }
0x10f6   : > { %v2116_v22 = vpack.c.bf16 %v2115_v28, %v2115_v28  ;;  %2176 = vmatpush.bf16.xpose.msra.mxu3 %v2167_v34 }
0x10f7   : > { %v5446_v62 = vperm.slane %v387_v58, 0 }
0x10f8   : > { %4447 = vmatmul.msk.bf16.vlgmr.msrb.gmra.mxu2 %vm2021_vm7, %v2116_v22 }
0x1102   : > { %v2056_v40 = vpop.f32.mrf.mxu0 }
0x1103   : > { %v2060_v43 = vpack.c.bf16 %v2056_v40, %v2056_v40 }
0x1105   : > { %4445 = vmatmul.msk.bf16.vlgmr.msrb.gmra.mxu3 %vm501_vm1, %v2060_v43 }
0x110a   : > { %v2058_v46 = vpop.f32.mrf.mxu0 }
0x1115   : > { %4449 = vmatmul.msk.bf16.vlgmr.msra.gmra.mxu3 %vm501_vm1, %v2160_v23 }
0x117b   : > { %v2134_v54 = vpop.f32.mrf.mxu2 }
0x117c   : > { %v2138_v49 = vpack.c.bf16 %v2134_v54, %v2134_v54 }
0x117e   : > { %4448 = vmatmul.msk.bf16.vlgmr.msrb.gmra.mxu0 %vm501_vm1, %v2138_v49  ;;  %v4784_v49 = vld [vmem:[%s5972_s3 + $0x8] sm:$0xff] }
0x1183   : > { %v2136_v50 = vpop.f32.mrf.mxu2 }
0x1184   : > { %v4785_v50 = vld [vmem:[%s5972_s3] sm:$0xff] }
0x1188   : > { %v2076_v13 = vpop.f32.mrf.mxu3 }
0x1189   : > { %v2081_v0 = vadd.f32 %v5446_v62, %v2076_v13  ;;  %v4258_v13 = vld [vmem:[%s5973_s4 + $0x44] sm:$0xf] }
0x118e   : > { %4452 = vmatmul.msk.bf16.vlgmr.msra.gmra.mxu0 %vm501_vm1, %v2237_v51  ;;  %v5471_v51 = vsel %vm538_vm2, %v4258_v13, 0 }
0x118f   : > { %2229 = vmatpush.bf16.msra.mxu2 %v5471_v51 }
0x1190   : > { %v2078_v37 = vpop.f32.mrf.mxu3 }
0x1198   : > { %v2178_v52 = vpop.f32.mrf.mxu3 }
0x1199   : > { %v2182_v57 = vsel %vm2021_vm7, %v2178_v52, -inf }
0x119a   : > { %2183 = vmax.xlane.f32.xlu2 %v2182_v57 }
0x11a0   : > { %v2180_v60 = vpop.f32.mrf.mxu3 }
0x11a1   : > { %v5475_v60 = vld [vmem:[%s4924_s15 + $0x10] sm:$0xff] }
0x11fb   : > { %v2154_v5 = vpop.f32.mrf.mxu0 }
0x11fc   : > { %v5449_v10 = vadd.f32 %v2154_v5, %v2081_v0  ;;  %v2432_v0 = vpack.c.bf16 %v5478_v56, %v5475_v60 }
0x11fe   : > { %v2434_v5 = vshrl.u32 %v2432_v0, 16 }
0x1203   : > { %v2156_v16 = vpop.f32.mrf.mxu0 }
0x1204   : > { %v2437_v16 = vshll.u32 %v2432_v0, 16 }
0x120b   : > { %v2255_v17 = vpop.f32.mrf.mxu0 }
0x120c   : > { %v2259_v3 = vsel %vm2021_vm7, %v2255_v17, -inf }
0x120d   : > { %v2184_v21 = vpop.xlane.xlu2 %2183  ;;  %2260 = vmax.xlane.f32.xlu0 %v2259_v3  ;;  %v2439_v3 = vrot.slane %v2437_v16, 2 }
0x120e   : > { %v2185_v53 = vsub.f32 %v2178_v52, %v2184_v21 }
0x1210   : > { %v2186_v23 = vmul.f32 1.442695, %v2185_v53 }
0x1212   : > { %4695 = vpow2.f32 %v2186_v23 }
0x1213   : > { %v2257_v25 = vpop.f32.mrf.mxu0 }
0x1218   : > { %v4696_v63 = vpop.eup %4695 }
0x1219   : > { %v2188_v27 = vsel %vm2021_vm7, %v4696_v63, 0.0 }
0x121a   : > { %2189 = vadd.xlane.f32.xlu1 %v2188_v27 }
0x1221   : > { %2194 = vrot.lane.b32.xlu0 %v5391_v36, %s5994_s28  ;;  %s5557_s28 = sld [smem:[#allocation2 + $0x5]] }
0x1233   : > { %2271 = vrot.lane.b32.xlu1 %v5391_v36, %s5984_s29  ;;  %s5515_s29 = sld [smem:[#allocation2 + $0x4]] }
0x1280   : > { %v2261_v1 = vpop.xlane.xlu0 %2260 }
0x1281   : > { %v2262_v26 = vsub.f32 %v2255_v17, %v2261_v1  ;;  %v2436_v17 = vrot.slane %v2434_v5, 1 }
0x1283   : > { %v2263_v32 = vmul.f32 1.442695, %v2262_v26  ;;  %v2440_v23 = vor.u32 %v2439_v3, %v2436_v17 }
0x1285   : > { %4697 = vpow2.f32 %v2263_v32 }
0x128b   : > { %v4698_v38 = vpop.eup %4697 }
0x128c   : > { %v2265_v28 = vsel %vm2021_vm7, %v4698_v38, 0.0 }
0x128d   : > { %v2190_v39 = vpop.xlane.xlu1 %2189  ;;  %2266 = vadd.xlane.f32.xlu2 %v2265_v28 }
0x128e   : > { %4699 = vrcp.f32 %v2190_v39 }
0x1293   : > { %v2195_v34 = vpop.permute.xlu0 %2194 }
0x1294   : > { %v4700_v22 = vpop.eup %4699  ;;  %v2200_v40 = vand.u32 %v2195_v34, %v5414_v47 }
0x1295   : > { %v2192_v43 = vmul.f32 %v4700_v22, %v4696_v63  ;;  %v4259_v63 = vld [vmem:[%s5973_s4 + $0x48] sm:$0xf] }
0x1296   : > { %2209 = vmatpush.bf16.msrb.mxu1 %v2200_v40  ;;  %v5490_v27 = vsel %vm538_vm2, %v4259_v63, 0  ;;  %v4586_v63 = vld [vmem:[%s5975_s6 + $0x70] sm:$0xff] }
0x1297   : > { %v2193_v46 = vpack.c.bf16 %v2192_v43, %v2192_v43 }
0x1299   : > { %4450 = vmatmul.msk.bf16.vlgmr.msrb.gmra.mxu1 %vm2021_vm7, %v2193_v46 }
0x129a   : > { %2306 = vmatpush.bf16.msra.mxu1 %v5490_v27 }
0x12a5   : > { %v2272_v36 = vpop.permute.xlu1 %2271 }
0x12a6   : > { %v2277_v54 = vand.u32 %v2272_v36, %v5414_v47 }
0x12a8   : > { %2286 = vmatpush.bf16.msrb.mxu3 %v2277_v54 }
0x12ac   : > { %2450 = vmatpush.bf16.msra.mxu3 %v4784_v49 }
0x12b0   : > { %2451 = vmatpush.bf16.msra.mxu3 %v4785_v50  ;;  %v2313_v50 = vstv %s5515_s29 }
0x1300   : > { %v2267_v37 = vpop.xlane.xlu2 %2266 }
0x1301   : > { %4701 = vrcp.f32 %v2267_v37 }
0x1307   : > { %v4702_v52 = vpop.eup %4701 }
0x1308   : > { %v2269_v57 = vmul.f32 %v4702_v52, %v4698_v38 }
0x130a   : > { %v2270_v58 = vpack.c.bf16 %v2269_v57, %v2269_v57 }
0x130c   : > { %4453 = vmatmul.msk.bf16.vlgmr.msrb.gmra.mxu3 %vm2021_vm7, %v2270_v58 }
0x130d   : > { %2526 = vmatpush.bf16.msrb.mxu3 %v4967_v41 }
0x1316   : > { %v2211_v21 = vpop.f32.mrf.mxu1 }
0x1317   : > { %v2215_v53 = vpack.c.bf16 %v2211_v21, %v2211_v21 }
0x1319   : > { %4451 = vmatmul.msk.bf16.vlgmr.msra.gmra.mxu2 %vm501_vm1, %v2215_v53 }
0x131c   : > { %4494 = vmatmul.msk.bf16.vlgmr.msra.gmra.mxu3 %vm478_vm0, %v2440_v23  ;;  %v4590_v23 = vld [vmem:[%s5975_s6 + $0x90] sm:$0xff] }
0x131d   : > { %2402 = vmatpush.bf16.msrb.mxu0 %v4590_v23 }
0x131e   : > { %v2213_v25 = vpop.f32.mrf.mxu1 }
0x131f   : > { %v4587_v25 = vld [vmem:[%s5975_s6 + $0x78] sm:$0xff] }
0x138f   : > { %v2288_v41 = vpop.f32.mrf.mxu3 }
0x1390   : > { %v2292_v1 = vpack.c.bf16 %v2288_v41, %v2288_v41 }
0x1392   : > { %4454 = vmatmul.msk.bf16.vlgmr.msra.gmra.mxu1 %vm501_vm1, %v2292_v1 }
0x1397   : > { %v2290_v26 = vpop.f32.mrf.mxu3 }
0x1398   : > { %v4585_v26 = vld [vmem:[%s5975_s6 + $0x68] sm:$0xff] }
0x139c   : > { %v2231_v32 = vpop.f32.mrf.mxu2 }
0x139d   : > { %v2235_v38 = vadd.f32 %v2231_v32, %v5449_v10  ;;  %v4565_v10 = vld [vmem:[%s5972_s3 + $0x50] sm:$0xff] }
0x139f   : > { %v2453_v28 = vpop.f32.mrf.mxu3 }
0x13a0   : > { %v2454_v39 = vadd.f32 %v2453_v28, %v4938_v12  ;;  %v4566_v12 = vld [vmem:[%s5972_s3 + $0x58] sm:$0xff] }
0x13a1   : > { %2351 = vmatpush.bf16.msrb.mxu2 %v4566_v12 }
0x13a2   : > { %v5496_v34 = vpack.c.bf16 %v2454_v39, %v2454_v39  ;;  %v2457_v40 = vmul.f32 0.35355338, %v2454_v39  ;;  %v4245_v39 = vld [vmem:[%s5972_s3 + $0x60] sm:$0x1] }
0x13a4   : > { %2461 = vrot.lane.b32.xlu2 %v5496_v34, %s5990_s19  ;;  %v2233_v22 = vpop.f32.mrf.mxu2  ;;  %2536 = vrot.lane.b32.xlu0 %v5496_v34, %s5986_s18  ;;  %v5502_v46 = vpack.c.bf16 %v2457_v40, %v2457_v40 }
0x13a5   : > { %2352 = vmatpush.bf16.msrb.mxu2 %v4565_v10  ;;  %v360_v22 = vunpack.c.l.bf16 %v4245_v39 }
0x13a7   : > { %v2455_v43 = vpop.f32.mrf.mxu3  ;;  %v5546_v40 = vperm.slane %v360_v22, 0 }
0x13ac   : > { %2534 = vrot.lane.b32.xlu2 %v5502_v46, %s5988_s20 }
0x13fe   : > { %v2462_v36 = vpop.permute.xlu2 %2461 }
0x13ff   : > { %v2467_v54 = vsel %vm501_vm1, %v2462_v36, 0 }
0x1400   : > { %2476 = vmatpush.bf16.xpose.msrb.mxu1 %v2467_v54 }
0x1407   : > { %4495 = vmatmul.msk.bf16.vlgmr.msrb.gmra.mxu1 %vm501_vm1, %v5502_v46 }
0x140f   : > { %v2308_v49 = vpop.f32.mrf.mxu1 }
0x1410   : > { %v2312_v13 = vadd.f32 %v2308_v49, %v2235_v38  ;;  %v2535_v49 = vpop.permute.xlu2 %2534 }
0x1412   : > { %v2314_v37 = vmul.f32 %v2313_v50, %v2312_v13 }
0x1414   : > { %v2316_v52 = vrot.slane %v2314_v37, 5 }
0x1416   : > { %v2318_v57 = vadd.f32 %v2316_v52, %v5130_v18  ;;  %v2319_v58 = vadd.f32 %v2316_v52, %v5133_v19  ;;  %v4589_v18 = vld [vmem:[%s5975_s6 + $0x88] sm:$0xff]  ;;  %v4588_v19 = vld [vmem:[%s5975_s6 + $0x80] sm:$0xff]  ;;  %v2537_v32 = vpop.permute.xlu0 %2536 }
0x1417   : > { %v2310_v0 = vpop.f32.mrf.mxu1  ;;  %2403 = vmatpush.bf16.msrb.mxu0 %v4589_v18  ;;  %v2542_v38 = vsel %vm501_vm1, %v2537_v32, 0 }
0x1418   : > { %v2320_v5 = vpack.c.bf16 %v2319_v58, %v2318_v57 }
0x141a   : > { %v2323_v16 = vshrl.u32 %v2320_v5, 16  ;;  %v2326_v17 = vshll.u32 %v2320_v5, 16 }
0x141b   : > { %2404 = vmatpush.bf16.msrb.mxu0 %v4588_v19 }
0x141c   : > { %v2325_v3 = vrot.slane %v2323_v16, 1  ;;  %v2328_v21 = vrot.slane %v2326_v17, 2  ;;  %v4291_v16 = vld [vmem:[%s5975_s6 + $0x98] sm:$0x1] }
0x141d   : > { %v444_v17 = vunpack.c.l.bf16 %v4291_v16  ;;  %v4787_v16 = vld [vmem:[%s5972_s3 + $0x14] sm:$0xff] }
0x141e   : > { %v2329_v53 = vor.u32 %v2328_v21, %v2325_v3 }
0x141f   : > { %2405 = vmatpush.bf16.msrb.mxu0 %v4587_v25  ;;  %v5559_v3 = vperm.slane %v444_v17, 0 }
0x1420   : > { %4463 = vmatmul.msk.bf16.vlgmr.msrb.gmra.mxu2 %vm478_vm0, %v2329_v53  ;;  %v2413_v53 = vstv %s5557_s28 }
0x1423   : > { %2406 = vmatpush.bf16.msrb.mxu0 %v4586_v63 }
0x1427   : > { %2407 = vmatpush.bf16.msrb.mxu0 %v4585_v26 }
0x142b   : > { %2551 = vmatpush.bf16.xpose.msra.mxu0 %v2542_v38 }
0x1484   : > { %v2478_v41 = vpop.f32.mrf.mxu1 }
0x1485   : > { %v2482_v1 = vsel %vm501_vm1, %v2478_v41, -inf }
0x1486   : > { %2483 = vmax.xlane.f32.xlu1 %v2482_v1 }
0x148c   : > { %v2480_v28 = vpop.f32.mrf.mxu1 }
0x14a3   : > { %v2354_v43 = vpop.f32.mrf.mxu2 }
0x14a4   : > { %v2355_v12 = vadd.f32 %v2354_v43, %v5546_v40 }
0x14a6   : > { %v2358_v10 = vmax.f32 %v2355_v12, 0.0 }
0x14a8   : > { %v2359_v36 = vpack.c.bf16 %v2358_v10, %v2358_v10 }
0x14aa   : > { %4488 = vmatmul.msk.bf16.vlgmr.msrb.gmra.mxu0 %vm893_vm3, %v2359_v36 }
0x14ab   : > { %v2356_v54 = vpop.f32.mrf.mxu2 }
0x14ba   : > { %4498 = vmatmul.msk.bf16.vlgmr.msra.gmra.mxu0 %vm501_vm1, %v2535_v49 }
0x14f9   : > { %v2484_v13 = vpop.xlane.xlu1 %2483 }
0x14fa   : > { %v2485_v37 = vsub.f32 %v2478_v41, %v2484_v13 }
0x14fc   : > { %v2486_v52 = vmul.f32 1.442695, %v2485_v37 }
0x14fe   : > { %4703 = vpow2.f32 %v2486_v52 }
0x1504   : > { %v4704_v0 = vpop.eup %4703 }
0x1505   : > { %v2488_v5 = vsel %vm501_vm1, %v4704_v0, 0.0 }
0x1506   : > { %2489 = vadd.xlane.f32.xlu2 %v2488_v5 }
0x151e   : > { %2569 = vrot.lane.b32.xlu2 %v5496_v34, %s5996_s21 }
0x1526   : > { %2682 = vrot.lane.b32.xlu2 %v5502_v46, %s5997_s23 }
0x1527   : > { %v2409_v21 = vpop.f32.mrf.mxu0 }
0x1528   : > { %v2410_v23 = vadd.f32 %v2409_v21, %v5559_v3 }
0x152a   : > { %v2414_v18 = vmul.f32 %v2413_v53, %v2410_v23 }
0x152c   : > { %v2416_v19 = vrot.slane %v2414_v18, 5 }
0x152e   : > { %v2418_v25 = vadd.f32 %v2416_v19, %v2318_v57  ;;  %v2419_v63 = vadd.f32 %v2416_v19, %v2319_v58 }
0x152f   : > { %v2411_v41 = vpop.f32.mrf.mxu0 }
0x1530   : > { %2423 = vst.msk [vmem:[%s5380_s25] sm:$0xf8] %vm2422_vm10, %v2418_v25 }
0x1531   : > { %2424 = vst.msk [vmem:[%s5380_s25 + $0x8] sm:$0x7] %vm2420_vm6, %v2419_v63 }
0x1537   : > { %v2553_v1 = vpop.f32.mrf.mxu0 }
0x1538   : > { %v2557_v26 = vsel %vm501_vm1, %v2553_v1, -inf }
0x1539   : > { %2558 = vmax.xlane.f32.xlu0 %v2557_v26 }
0x153f   : > { %v2555_v32 = vpop.f32.mrf.mxu0 }
0x1540   : > { %v4789_v32 = vld [vmem:[%s5975_s6 + $0x20] sm:$0xff] }
0x154d   : > { %2494 = vrot.lane.b32.xlu0 %v5496_v34, %s6004_s17 }
0x1555   : > { %2610 = vrot.lane.b32.xlu0 %v5496_v34, %s6005_s14 }
0x155d   : > { %2608 = vrot.lane.b32.xlu0 %v5502_v46, %s6006_s26 }
0x1579   : > { %v2490_v57 = vpop.xlane.xlu2 %2489 }
0x1581   : > { %v2570_v58 = vpop.permute.xlu2 %2569 }
0x1582   : > { %v2575_v38 = vsel %vm538_vm2, %v2570_v58, 0  ;;  %v4791_v58 = vld [vmem:[%s5975_s6 + $0x10] sm:$0xff] }
0x1583   : > { %2584 = vmatpush.bf16.msra.mxu1 %v2575_v38 }
0x1587   : > { %2675 = vmatpush.bf16.msrb.mxu1 %v5007_v35 }
0x1589   : > { %v2683_v38 = vpop.permute.xlu2 %2682 }
0x15ac   : > { %v2559_v28 = vpop.xlane.xlu0 %2558 }
0x15ad   : > { %v2560_v39 = vsub.f32 %v2553_v1, %v2559_v28  ;;  %v4788_v1 = vld [vmem:[%s5975_s6 + $0x28] sm:$0xff] }
0x15ae   : > { %v4792_v28 = vld [vmem:[%s5975_s6 + $0x8] sm:$0xff] }
0x15af   : > { %v2561_v22 = vmul.f32 1.442695, %v2560_v39 }
0x15b1   : > { %4705 = vpow2.f32 %v2561_v22  ;;  %v4793_v22 = vld [vmem:[%s5975_s6] sm:$0xff] }
0x15b2   : > { %4707 = vrcp.f32 %v2490_v57  ;;  %v4790_v57 = vld [vmem:[%s5975_s6 + $0x18] sm:$0xff] }
0x15b7   : > { %v4706_v43 = vpop.eup %4705 }
0x15b8   : > { %v2563_v12 = vsel %vm501_vm1, %v4706_v43, 0.0  ;;  %v4708_v10 = vpop.eup %4707 }
0x15b9   : > { %2564 = vadd.xlane.f32.xlu1 %v2563_v12  ;;  %v2492_v36 = vmul.f32 %v4708_v10, %v4704_v0 }
0x15bb   : > { %v2493_v49 = vpack.c.bf16 %v2492_v36, %v2492_v36 }
0x15bf   : > { %v2495_v54 = vpop.permute.xlu0 %2494 }
0x15c0   : > { %v2500_v46 = vsel %vm538_vm2, %v2495_v54, 0 }
0x15c1   : > { %2509 = vmatpush.bf16.msra.mxu2 %v2500_v46 }
0x15c4   : > { %4496 = vmatmul.msk.bf16.vlgmr.msra.gmra.mxu2 %vm501_vm1, %v2493_v49 }
0x15c5   : > { %2601 = vmatpush.bf16.msrb.mxu2 %v4983_v59  ;;  %v4786_v59 = vld [vmem:[%s5972_s3 + $0x1c] sm:$0xff] }
0x15c7   : > { %v2611_v35 = vpop.permute.xlu0 %2610 }
0x15c8   : > { %v2616_v13 = vsel %vm501_vm1, %v2611_v35, 0 }
0x15c9   : > { %2625 = vmatpush.bf16.xpose.msra.mxu3 %v2616_v13 }
0x15cf   : > { %v2609_v25 = vpop.permute.xlu0 %2608 }
0x15d2   : > { %2684 = vrot.lane.b32.xlu1 %v5496_v34, %s6007_s27 }
0x162c   : > { %v2565_v37 = vpop.xlane.xlu1 %2564 }
0x162d   : > { %4709 = vrcp.f32 %v2565_v37 }
0x1633   : > { %v4710_v52 = vpop.eup %4709 }
0x1634   : > { %v2567_v0 = vmul.f32 %v4710_v52, %v4706_v43 }
0x1636   : > { %v2568_v5 = vpack.c.bf16 %v2567_v0, %v2567_v0 }
0x1638   : > { %4499 = vmatmul.msk.bf16.vlgmr.msra.gmra.mxu1 %vm501_vm1, %v2568_v5 }
0x1639   : > { %2780 = vmatpush.bf16.msra.mxu1 %v4786_v59 }
0x163d   : > { %2781 = vmatpush.bf16.msra.mxu1 %v4787_v16 }
0x1644   : > { %v2685_v17 = vpop.permute.xlu1 %2684 }
0x1645   : > { %v2690_v21 = vsel %vm501_vm1, %v2685_v17, 0 }
0x1646   : > { %2699 = vmatpush.bf16.xpose.msra.mxu2 %v2690_v21 }
0x1647   : > { %v2511_v23 = vpop.f32.mrf.mxu2 }
0x1648   : > { %v2515_v18 = vpack.c.bf16 %v2511_v23, %v2511_v23 }
0x164a   : > { %4497 = vmatmul.msk.bf16.vlgmr.msrb.gmra.mxu3 %vm501_vm1, %v2515_v18  ;;  %v4795_v18 = vld [vmem:[%s5973_s4 + $0x14] sm:$0xff] }
0x164f   : > { %v2513_v19 = vpop.f32.mrf.mxu2 }
0x165a   : > { %4501 = vmatmul.msk.bf16.vlgmr.msra.gmra.mxu3 %vm501_vm1, %v2609_v25 }
0x16b5   : > { %v2586_v63 = vpop.f32.mrf.mxu1 }
0x16b6   : > { %v2590_v41 = vpack.c.bf16 %v2586_v63, %v2586_v63 }
0x16b8   : > { %4500 = vmatmul.msk.bf16.vlgmr.msrb.gmra.mxu2 %vm501_vm1, %v2590_v41 }
0x16b9   : > { %2794 = vmatpush.bf16.msrb.mxu2 %v4788_v1 }
0x16bd   : > { %v2588_v26 = vpop.f32.mrf.mxu1  ;;  %2795 = vmatpush.bf16.msrb.mxu2 %v4789_v32 }
0x16c1   : > { %2796 = vmatpush.bf16.msrb.mxu2 %v4790_v57 }
0x16c5   : > { %2797 = vmatpush.bf16.msrb.mxu2 %v4791_v58 }
0x16c8   : > { %4504 = vmatmul.msk.bf16.vlgmr.msra.gmra.mxu2 %vm501_vm1, %v2683_v38 }
0x16c9   : > { %2798 = vmatpush.bf16.msrb.mxu2 %v4792_v28 }
0x16cd   : > { %v2528_v39 = vpop.f32.mrf.mxu3  ;;  %2799 = vmatpush.bf16.msrb.mxu2 %v4793_v22 }
0x16ce   : > { %v2532_v54 = vadd.f32 %v2528_v39, %v4998_v24  ;;  %v4794_v24 = vld [vmem:[%s5973_s4 + $0x1c] sm:$0xff] }
0x16d5   : > { %v2530_v43 = vpop.f32.mrf.mxu3 }
0x16dd   : > { %v2627_v12 = vpop.f32.mrf.mxu3 }
0x16de   : > { %v2631_v10 = vsel %vm501_vm1, %v2627_v12, -inf }
0x16df   : > { %2632 = vmax.xlane.f32.xlu2 %v2631_v10  ;;  %v4797_v10 = vld [vmem:[%s5972_s3 + $0x28] sm:$0xff] }
0x16e5   : > { %v2629_v36 = vpop.f32.mrf.mxu3 }
0x16f7   : > { %2717 = vrot.lane.b32.xlu2 %v5496_v34, %s6003_s16 }
0x173b   : > { %v2603_v46 = vpop.f32.mrf.mxu2 }
0x173c   : > { %v2607_v49 = vadd.f32 %v2603_v46, %v2532_v54 }
0x1743   : > { %v2605_v35 = vpop.f32.mrf.mxu2 }
0x174b   : > { %v2701_v13 = vpop.f32.mrf.mxu2 }
0x174c   : > { %v2705_v37 = vsel %vm501_vm1, %v2701_v13, -inf }
0x174d   : > { %2706 = vmax.xlane.f32.xlu1 %v2705_v37 }
0x1752   : > { %v2633_v52 = vpop.xlane.xlu2 %2632 }
0x1753   : > { %v2634_v0 = vsub.f32 %v2627_v12, %v2633_v52  ;;  %v2703_v5 = vpop.f32.mrf.mxu2  ;;  %v4799_v52 = vld [vmem:[%s5974_s5] sm:$0xff] }
0x1755   : > { %v2635_v59 = vmul.f32 1.442695, %v2634_v0 }
0x1757   : > { %4711 = vpow2.f32 %v2635_v59 }
0x175a   : > { %v2718_v16 = vpop.permute.xlu2 %2717 }
0x175b   : > { %v2723_v17 = vsel %vm538_vm2, %v2718_v16, 0 }
0x175c   : > { %2732 = vmatpush.bf16.msrb.mxu3 %v2723_v17 }
0x175d   : > { %v4712_v21 = vpop.eup %4711 }
0x175e   : > { %v2637_v23 = vsel %vm501_vm1, %v4712_v21, 0.0 }
0x175f   : > { %2638 = vadd.xlane.f32.xlu1 %v2637_v23 }
0x1760   : > { %2821 = vmatpush.bf16.msra.mxu3 %v4794_v24 }
0x1764   : > { %2822 = vmatpush.bf16.msra.mxu3 %v4795_v18 }
0x17c0   : > { %v2707_v19 = vpop.xlane.xlu1 %2706 }
0x17c1   : > { %v2708_v25 = vsub.f32 %v2701_v13, %v2707_v19  ;;  %v4798_v13 = vld [vmem:[%s5974_s5 + $0x8] sm:$0xff] }
0x17c3   : > { %v2709_v63 = vmul.f32 1.442695, %v2708_v25 }
0x17c5   : > { %4713 = vpow2.f32 %v2709_v63 }
0x17cb   : > { %v4714_v41 = vpop.eup %4713 }
0x17cc   : > { %v2711_v1 = vsel %vm501_vm1, %v4714_v41, 0.0 }
0x17cd   : > { %2712 = vadd.xlane.f32.xlu0 %v2711_v1 }
0x17d2   : > { %v2639_v32 = vpop.xlane.xlu1 %2638 }
0x17e1   : > { %2643 = vrot.lane.b32.xlu0 %v5496_v34, %s6002_s9  ;;  %v4796_v34 = vld [vmem:[%s5972_s3 + $0x30] sm:$0xff] }
0x1840   : > { %v2713_v26 = vpop.xlane.xlu0 %2712 }
0x1841   : > { %4715 = vrcp.f32 %v2713_v26 }
0x1842   : > { %4717 = vrcp.f32 %v2639_v32 }
0x1847   : > { %v4716_v57 = vpop.eup %4715 }
0x1848   : > { %v2715_v58 = vmul.f32 %v4716_v57, %v4714_v41  ;;  %v4718_v28 = vpop.eup %4717  ;;  %v4491_v57 = vld [vmem:[%s5069_s12 + $0x18] sm:$0xff] }
0x1849   : > { %v2641_v39 = vmul.f32 %v4718_v28, %v4712_v21 }
0x184a   : > { %v2716_v38 = vpack.c.bf16 %v2715_v58, %v2715_v58 }
0x184b   : > { %v2642_v12 = vpack.c.bf16 %v2641_v39, %v2641_v39 }
0x184c   : > { %4505 = vmatmul.msk.bf16.vlgmr.msrb.gmra.mxu3 %vm501_vm1, %v2716_v38  ;;  %v4493_v38 = vld [vmem:[%s5069_s12 + $0x28] sm:$0xff] }
0x1853   : > { %v2644_v22 = vpop.permute.xlu0 %2643 }
0x1854   : > { %v2649_v43 = vsel %vm538_vm2, %v2644_v22, 0 }
0x1855   : > { %2658 = vmatpush.bf16.msrb.mxu0 %v2649_v43 }
0x1858   : > { %4502 = vmatmul.msk.bf16.vlgmr.msrb.gmra.mxu0 %vm501_vm1, %v2642_v12 }
0x1859   : > { %2749 = vmatpush.bf16.msra.mxu0 %v5020_v15 }
0x185d   : > { %2846 = vmatpush.bf16.msrb.mxu0 %v4796_v34 }
0x1861   : > { %2847 = vmatpush.bf16.msrb.mxu0 %v4797_v10 }
0x18cf   : > { %v2734_v36 = vpop.f32.mrf.mxu3 }
0x18d0   : > { %v2738_v54 = vpack.c.bf16 %v2734_v36, %v2734_v36 }
0x18d2   : > { %4506 = vmatmul.msk.bf16.vlgmr.msra.gmra.mxu0 %vm501_vm1, %v2738_v54 }
0x18d5   : > { %v2660_v46 = vpop.f32.mrf.mxu0 }
0x18d6   : > { %v2664_v35 = vpack.c.bf16 %v2660_v46, %v2660_v46 }
0x18d7   : > { %v2736_v15 = vpop.f32.mrf.mxu3 }
0x18d8   : > { %4503 = vmatmul.msk.bf16.vlgmr.msrb.gmra.mxu1 %vm501_vm1, %v2664_v35 }
0x18d9   : > { %2867 = vmatpush.bf16.msrb.mxu1 %v4798_v13 }
0x18dd   : > { %v2662_v37 = vpop.f32.mrf.mxu0  ;;  %2868 = vmatpush.bf16.msrb.mxu1 %v4799_v52 }
0x194f   : > { %v2751_v0 = vpop.f32.mrf.mxu0 }
0x1955   : > { %v2677_v5 = vpop.f32.mrf.mxu1 }
0x1956   : > { %v2681_v59 = vadd.f32 %v2677_v5, %v2607_v49  ;;  %v2811_v49 = vpack.c.bf16 %v5475_v60, %v5475_v60 }
0x1957   : > { %v2753_v16 = vpop.f32.mrf.mxu0 }
0x1958   : > { %v2755_v17 = vadd.f32 %v2751_v0, %v2681_v59  ;;  %4509 = vmatmul.msk.bf16.vlgmr.msra.gmra.mxu3 %vm478_vm0, %v2811_v49 }
0x195a   : > { %v2756_v21 = vmul.f32 %v2755_v17, %v809_v4  ;;  %v4492_v4 = vld [vmem:[%s5069_s12 + $0x20] sm:$0xff]  ;;  %s6009_s12 = smov 120  }
0x195b   : > { %v2853_v58 = vpack.c.bf16 %v4492_v4, %v4491_v57 }
0x195c   : > { %v2758_v24 = vrot.slane %v2756_v21, 5 }
0x195d   : > { %v2679_v23 = vpop.f32.mrf.mxu1 }
0x195e   : > { %v2760_v18 = vadd.f32 %v5475_v60, %v2758_v24  ;;  %v2761_v19 = vadd.f32 %v5478_v56, %v2758_v24  ;;  %v2854_v56 = vpack.c.bf16 %v4493_v38, %v4493_v38 }
0x1960   : > { %v2762_v25 = vpack.c.bf16 %v2761_v19, %v2760_v18 }
0x1962   : > { %v2764_v63 = vshrl.u32 %v2762_v25, 16  ;;  %v2767_v41 = vshll.u32 %v2762_v25, 16 }
0x1964   : > { %v2766_v1 = vrot.slane %v2764_v63, 1  ;;  %v2769_v26 = vrot.slane %v2767_v41, 2 }
0x1966   : > { %v2770_v32 = vor.u32 %v2769_v26, %v2766_v1 }
0x1968   : > { %4507 = vmatmul.msk.bf16.vlgmr.msra.gmra.mxu1 %vm478_vm0, %v2770_v32 }
0x1978   : > { %4511 = vmatmul.msk.bf16.vlgmr.msrb.gmra.mxu1 %vm478_vm0, %v2853_v58 }
0x1988   : > { %4512 = vmatmul.msk.bf16.gmra.mxu1 %vm478_vm0, %v2854_v56 }
0x19db   : > { %v2824_v10 = vpop.f32.mrf.mxu3 }
0x19dc   : > { %v2825_v36 = vadd.f32 %v2824_v10, %v5108_v48 }
0x19de   : > { %v2882_v54 = vperm.slane %v2825_v36, 0  ;;  %v2880_v46 = vrot.slane %v2825_v36, 1  ;;  %v2881_v52 = vrot.slane %v2825_v36, 2 }
0x19e0   : > { %v2883_v13 = vperm.slane %v2880_v46, 0  ;;  %v2884_v5 = vperm.slane %v2881_v52, 0 }
0x19e3   : > { %v2826_v0 = vpop.f32.mrf.mxu3 }
0x19e5   : > { %v2783_v28 = vpop.f32.mrf.mxu1 }
0x19e6   : > { %v2784_v39 = vadd.f32 %v2783_v28, %v5091_v33 }
0x19e8   : > { %v2787_v22 = vmax.f32 %v2784_v39, 0.0 }
0x19ea   : > { %v2788_v43 = vpack.c.bf16 %v2787_v22, %v2787_v22 }
0x19ec   : > { %4508 = vmatmul.msk.bf16.vlgmr.msrb.gmra.mxu2 %vm893_vm3, %v2788_v43 }
0x19ed   : > { %v2785_v12 = vpop.f32.mrf.mxu1 }
0x19f5   : > { %v2870_v60 = vpop.f32.mrf.mxu1 }
0x19f6   : > { %v2871_v34 = vadd.f32 %v2870_v60, %v5098_v42 }
0x19f8   : > { %2897 = vrot.lane.b32.xlu1 %v2871_v34, %s6008_s30  ;;  %v2888_v15 = vadd.f32 %v2882_v54, %v2871_v34 }
0x19fa   : > { %v2891_v34 = vmul.f32 0.35355338, %v2888_v15 }
0x19fd   : > { %v2872_v35 = vpop.f32.mrf.mxu1 }
0x19fe   : > { %v2873_v33 = vadd.f32 %v2872_v35, %v5098_v42 }
0x1a00   : > { %v2889_v37 = vadd.f32 %v2883_v13, %v2873_v33  ;;  %2899 = vrot.lane.b32.xlu0 %v2873_v33, %s6008_s30 }
0x1a02   : > { %v2892_v10 = vmul.f32 0.35355338, %v2889_v37 }
0x1a04   : > { %v2910_v37 = vpack.c.bf16 %v2892_v10, %v2892_v10 }
0x1a05   : > { %v2875_v59 = vpop.f32.mrf.mxu1 }
0x1a06   : > { %v2876_v16 = vadd.f32 %v2875_v59, %v5098_v42 }
0x1a08   : > { %v2890_v48 = vadd.f32 %v2884_v5, %v2876_v16  ;;  %2901 = vrot.lane.b32.xlu2 %v2876_v16, %s6008_s30  ;;  %v2909_v5 = vpack.c.bf16 %v2891_v34, %v2891_v34 }
0x1a0a   : > { %v2893_v22 = vmul.f32 0.35355338, %v2890_v48  ;;  %v3104_v48 = vunpack.c.l.b16 %v2909_v5 }
0x1a0c   : > { %v2911_v52 = vpack.c.bf16 %v2893_v22, %v2893_v22 }
0x1a0d   : > { %v2877_v23 = vpop.f32.mrf.mxu1 }
0x1a0e   : > { %v3162_v16 = vunpack.c.l.b16 %v2911_v52 }
0x1a62   : > { %v2902_v58 = vpop.permute.xlu2 %2901 }
0x1a6f   : > { %v2801_v17 = vpop.f32.mrf.mxu2 }
0x1a70   : > { %v2802_v21 = vadd.f32 %v2801_v17, %v5123_v7  ;;  %v3133_v17 = vunpack.c.l.b16 %v2910_v37 }
0x1a72   : > { %v2805_v24 = vmul.f32 %v2802_v21, %v910_v11  ;;  %v2900_v38 = vpop.permute.xlu0 %2899  ;;  %v3105_v21 = vpack.c.b16 %v3104_v48, %v3104_v48 }
0x1a74   : > { %v2807_v25 = vrot.slane %v2805_v24, 5  ;;  %v3134_v24 = vpack.c.b16 %v3133_v17, %v3133_v17 }
0x1a76   : > { %v5676_v63 = vadd.f32 %v2807_v25, %v2760_v18  ;;  %v5678_v41 = vadd.f32 %v2807_v25, %v2761_v19  ;;  %v2898_v18 = vpop.permute.xlu1 %2897 }
0x1a77   : > { %v2803_v1 = vpop.f32.mrf.mxu2 }
0x1a78   : > { %v2828_v26 = vpack.c.bf16 %v5678_v41, %v5676_v63 }
0x1a7a   : > { %v2830_v32 = vshrl.u32 %v2828_v26, 16  ;;  %v2833_v42 = vshll.u32 %v2828_v26, 16 }
0x1a7c   : > { %v2832_v49 = vrot.slane %v2830_v32, 1  ;;  %v2835_v57 = vrot.slane %v2833_v42, 2 }
0x1a7e   : > { %v2836_v4 = vor.u32 %v2835_v57, %v2832_v49 }
0x1a80   : > { %4510 = vmatmul.msk.bf16.vlgmr.msrb.gmra.mxu0 %vm478_vm0, %v2836_v4 }
0x1afd   : > { %v2849_v7 = vpop.f32.mrf.mxu0 }
0x1afe   : > { %v2850_v11 = vadd.f32 %v2849_v7, %v5141_v29 }
0x1b00   : > { %v2908_v56 = vadd.f32 %v2902_v58, %v2850_v11  ;;  %v2915_v19 = vpack.c.bf16 %v2850_v11, %v2850_v11  ;;  %v2906_v28 = vadd.f32 %v2898_v18, %v2850_v11  ;;  %v2907_v39 = vadd.f32 %v2900_v38, %v2850_v11 }
0x1b01   : > { %v3771_v23 = vmul.f32 0.35355338, %v2850_v11 }
0x1b02   : > { %v2914_v43 = vpack.c.bf16 %v2908_v56, %v2908_v56  ;;  %3064 = vrot.lane.b32.xlu1 %v2915_v19, %s6008_s30  ;;  %v2912_v12 = vpack.c.bf16 %v2906_v28, %v2906_v28  ;;  %v2913_v60 = vpack.c.bf16 %v2907_v39, %v2907_v39 }
0x1b03   : > { %v5713_v25 = vpack.c.bf16 %v3771_v23, %v3771_v23 }
0x1b04   : > { %v2958_v36 = vsel %vm501_vm1, %v2914_v43, 0  ;;  %v3167_v54 = vunpack.c.l.b16 %v2914_v43  ;;  %v2920_v46 = vsel %vm501_vm1, %v2912_v12, 0  ;;  %v2939_v29 = vsel %vm501_vm1, %v2913_v60, 0 }
0x1b05   : > { %v2851_v35 = vpop.f32.mrf.mxu0  ;;  %2929 = vmatpush.bf16.xpose.msra.mxu2 %v2920_v46  ;;  %2948 = vmatpush.bf16.xpose.msrb.mxu3 %v2939_v29  ;;  %v3109_v33 = vunpack.c.l.b16 %v2912_v12  ;;  %v3138_v13 = vunpack.c.l.b16 %v2913_v60 }
0x1b06   : > { %v3168_v0 = vpack.c.b16 %v3167_v54, %v3167_v54  ;;  %2967 = vmatpush.bf16.xpose.msra.mxu0 %v2958_v36 }
0x1b07   : > { %v3110_v15 = vpack.c.b16 %v3109_v33, %v3109_v33  ;;  %v3139_v59 = vpack.c.b16 %v3138_v13, %v3138_v13 }
0x1b08   : > { %3169 = vrot.lane.b32.xlu0 %v3168_v0, %s6009_s12 }
0x1b09   : > { %3111 = vrot.lane.b32.xlu2 %v3110_v15, %s6009_s12 }
0x1b0a   : > { %3140 = vrot.lane.b32.xlu1 %v3139_v59, %s6009_s12 }
0x1b0c   : > { %4513 = vmatmul.msk.bf16.vlgmr.msra.gmra.mxu2 %vm501_vm1, %v2909_v5  ;;  %4514 = vmatmul.msk.bf16.vlgmr.msrb.gmra.mxu3 %vm501_vm1, %v2910_v37 }
0x1b0d   : > { %3096 = vmatpush.bf16.msra.mxu3 %v5182_v14  ;;  %4515 = vmatmul.msk.bf16.vlgmr.msra.gmra.mxu0 %vm501_vm1, %v2911_v52  ;;  %v3163_v14 = vpack.c.b16 %v3162_v16, %v3162_v16 }
0x1b10   : > { %3164 = vrot.lane.b32.xlu0 %v3163_v14, %s6009_s12 }
0x1b11   : > { %3106 = vrot.lane.b32.xlu2 %v3105_v21, %s6009_s12 }
0x1b12   : > { %3135 = vrot.lane.b32.xlu1 %v3134_v24, %s6009_s12 }
0x1b18   : > { %3280 = vrot.lane.b32.xlu0 %v2915_v19, %s6010_s10 }
0x1b19   : > { %3344 = vrot.lane.b32.xlu2 %v3139_v59, %s6006_s26 }
0x1b1a   : > { %3367 = vrot.lane.b32.xlu1 %v3168_v0, %s6006_s26 }
0x1b20   : > { %3321 = vrot.lane.b32.xlu0 %v3110_v15, %s6006_s26 }
0x1b21   : > { %3342 = vrot.lane.b32.xlu2 %v3134_v24, %s6006_s26 }
0x1b22   : > { %3365 = vrot.lane.b32.xlu1 %v3163_v14, %s6006_s26 }
0x1b28   : > { %3319 = vrot.lane.b32.xlu0 %v3105_v21, %s6006_s26 }
0x1b29   : > { %3478 = vrot.lane.b32.xlu2 %v2915_v19, %s6005_s14 }
0x1b2a   : > { %3519 = vrot.lane.b32.xlu1 %v3110_v15, %s6011_s22 }
0x1b30   : > { %3542 = vrot.lane.b32.xlu0 %v3139_v59, %s6011_s22 }
0x1b31   : > { %3565 = vrot.lane.b32.xlu2 %v3168_v0, %s6011_s22 }
0x1b32   : > { %3517 = vrot.lane.b32.xlu1 %v3105_v21, %s6011_s22 }
0x1b38   : > { %3540 = vrot.lane.b32.xlu0 %v3134_v24, %s6011_s22 }
0x1b39   : > { %3563 = vrot.lane.b32.xlu2 %v3163_v14, %s6011_s22 }
0x1b3a   : > { %3676 = vrot.lane.b32.xlu1 %v2915_v19, %s6007_s27 }
0x1b40   : > { %3775 = vrot.lane.b32.xlu0 %v5713_v25, %s6004_s17 }
0x1b42   : > { %3848 = vrot.lane.b32.xlu1 %v5713_v25, %s6012_s8 }
0x1b63   : > { %v3112_v1 = vpop.permute.xlu2 %3111 }
0x1b64   : > { %v3117_v26 = vsel %vm501_vm1, %v3112_v1, 0 }
0x1b65   : > { %3126 = vmatpush.bf16.xpose.msrb.mxu0 %v3117_v26 }
0x1b6b   : > { %v3107_v32 = vpop.permute.xlu2 %3106 }
0x1b6c   : > { %4518 = vmatmul.msk.bf16.vlgmr.msrb.gmra.mxu0 %vm501_vm1, %v3107_v32 }
0x1b6d   : > { %3312 = vmatpush.bf16.msra.mxu0 %v5195_v9 }
0x1b73   : > { %v5722_v42 = vpop.permute.xlu2 %3344 }
0x1b74   : > { %v3065_v49 = vpop.permute.xlu1 %3064 }
0x1b75   : > { %v3070_v57 = vsel %vm538_vm2, %v3065_v49, 0 }
0x1b76   : > { %3079 = vmatpush.bf16.msrb.mxu2 %v3070_v57 }
0x1b7a   : > { %v3170_v4 = vpop.permute.xlu0 %3169 }
0x1b7b   : > { %v3175_v7 = vsel %vm501_vm1, %v3170_v4, 0  ;;  %v5726_v58 = vpop.permute.xlu2 %3342 }
0x1b7c   : > { %v3141_v11 = vpop.permute.xlu1 %3140  ;;  %3184 = vmatpush.bf16.xpose.msra.mxu2 %v3175_v7 }
0x1b7d   : > { %v3146_v38 = vsel %vm501_vm1, %v3141_v11, 0 }
0x1b7e   : > { %3155 = vmatpush.bf16.xpose.msra.mxu1 %v3146_v38 }
0x1b82   : > { %v5729_v9 = vpop.permute.xlu0 %3164 }
0x1b83   : > { %v3479_v18 = vpop.permute.xlu2 %3478 }
0x1b84   : > { %v3484_v56 = vsel %vm538_vm2, %v3479_v18, 0  ;;  %v3136_v19 = vpop.permute.xlu1 %3135 }
0x1b85   : > { %3493 = vmatpush.bf16.msrb.mxu0 %v3484_v56  ;;  %4519 = vmatmul.msk.bf16.vlgmr.msra.gmra.mxu1 %vm501_vm1, %v3136_v19 }
0x1b8a   : > { %v2969_v28 = vpop.f32.mrf.mxu0  ;;  %v3281_v39 = vpop.permute.xlu0 %3280 }
0x1b8b   : > { %v2987_v22 = vsel %vm501_vm1, %v2969_v28, -inf  ;;  %v3286_v43 = vsel %vm538_vm2, %v3281_v39, 0 }
0x1b8c   : > { %v2988_v12 = vrot.slane %v2987_v22, 4  ;;  %v5735_v60 = vpop.permute.xlu1 %3367  ;;  %3295 = vmatpush.bf16.msrb.mxu3 %v3286_v43 }
0x1b8e   : > { %v2989_v34 = vmax.f32 %v2987_v22, %v2988_v12 }
0x1b8f   : > { %v2931_v10 = vpop.f32.mrf.mxu2  ;;  %v2950_v36 = vpop.f32.mrf.mxu3 }
0x1b90   : > { %v2990_v54 = vrot.slane %v2989_v34, 2  ;;  %v2973_v46 = vsel %vm501_vm1, %v2931_v10, -inf  ;;  %v2980_v29 = vsel %vm501_vm1, %v2950_v36, -inf }
0x1b91   : > { %v2974_v35 = vrot.slane %v2973_v46, 4  ;;  %v2981_v33 = vrot.slane %v2980_v29, 4 }
0x1b92   : > { %v2991_v13 = vmax.f32 %v2989_v34, %v2990_v54  ;;  %v2971_v52 = vpop.f32.mrf.mxu0  ;;  %v3322_v0 = vpop.permute.xlu0 %3321 }
0x1b93   : > { %v2975_v5 = vmax.f32 %v2973_v46, %v2974_v35  ;;  %v2982_v15 = vmax.f32 %v2980_v29, %v2981_v33  ;;  %v3327_v37 = vsel %vm501_vm1, %v3322_v0, 0 }
0x1b94   : > { %v2992_v59 = vrot.slane %v2991_v13, 1  ;;  %v5740_v16 = vpop.permute.xlu1 %3365  ;;  %3336 = vmatpush.bf16.xpose.msrb.mxu1 %v3327_v37 }
0x1b95   : > { %v2976_v48 = vrot.slane %v2975_v5, 2  ;;  %v2983_v17 = vrot.slane %v2982_v15, 2 }
0x1b96   : > { %v2993_v14 = vmax.f32 %v2991_v13, %v2992_v59 }
0x1b97   : > { %v2977_v21 = vmax.f32 %v2975_v5, %v2976_v48  ;;  %v2984_v24 = vmax.f32 %v2982_v15, %v2983_v17  ;;  %v2933_v23 = vpop.f32.mrf.mxu2  ;;  %v2952_v1 = vpop.f32.mrf.mxu3 }
0x1b98   : > { %v2996_v26 = vsub.f32 %v2969_v28, %v2993_v14 }
0x1b99   : > { %v2978_v32 = vrot.slane %v2977_v21, 1  ;;  %v2985_v49 = vrot.slane %v2984_v24, 1 }
0x1b9a   : > { %v3001_v57 = vmul.f32 1.442695, %v2996_v26  ;;  %v3320_v4 = vpop.permute.xlu0 %3319 }
0x1b9b   : > { %v2979_v7 = vmax.f32 %v2977_v21, %v2978_v32  ;;  %v2986_v11 = vmax.f32 %v2984_v24, %v2985_v49  ;;  %4523 = vmatmul.msk.bf16.vlgmr.msrb.gmra.mxu1 %vm501_vm1, %v3320_v4 }
0x1b9c   : > { %3510 = vmatpush.bf16.msra.mxu1 %v5209_v44  ;;  %4719 = vpow2.f32 %v3001_v57  ;;  %v5744_v38 = vpop.permute.xlu1 %3519 }
0x1b9d   : > { %v2994_v18 = vsub.f32 %v2931_v10, %v2979_v7  ;;  %v2995_v56 = vsub.f32 %v2950_v36, %v2986_v11 }
0x1b9f   : > { %v2997_v44 = vmul.f32 1.442695, %v2994_v18  ;;  %v2999_v19 = vmul.f32 1.442695, %v2995_v56 }
0x1ba1   : > { %4721 = vpow2.f32 %v2997_v44 }
0x1ba2   : > { %v4720_v39 = vpop.eup %4719  ;;  %4723 = vpow2.f32 %v2999_v19 }
0x1ba3   : > { %v3017_v28 = vsel %vm501_vm1, %v4720_v39, 0.0 }
0x1ba4   : > { %v3018_v22 = vrot.slane %v3017_v28, 4  ;;  %v5747_v43 = vpop.permute.xlu1 %3517 }
0x1ba6   : > { %v3019_v12 = vadd.f32 %v3018_v22, %v3017_v28 }
0x1ba7   : > { %v4722_v34 = vpop.eup %4721 }
0x1ba8   : > { %v4724_v54 = vpop.eup %4723  ;;  %v3020_v46 = vrot.slane %v3019_v12, 2  ;;  %v3003_v29 = vsel %vm501_vm1, %v4722_v34, 0.0 }
0x1ba9   : > { %v3004_v35 = vrot.slane %v3003_v29, 4  ;;  %v3010_v10 = vsel %vm501_vm1, %v4724_v54, 0.0 }
0x1baa   : > { %v3021_v36 = vadd.f32 %v3020_v46, %v3019_v12  ;;  %v3011_v33 = vrot.slane %v3010_v10, 4 }
0x1bab   : > { %v3005_v13 = vadd.f32 %v3004_v35, %v3003_v29 }
0x1bac   : > { %v3022_v52 = vrot.slane %v3021_v36, 1  ;;  %v3012_v0 = vadd.f32 %v3011_v33, %v3010_v10  ;;  %v3677_v5 = vpop.permute.xlu1 %3676 }
0x1bad   : > { %v3006_v15 = vrot.slane %v3005_v13, 2  ;;  %v3682_v37 = vsel %vm538_vm2, %v3677_v5, 0 }
0x1bae   : > { %v3023_v59 = vadd.f32 %v3022_v52, %v3021_v36  ;;  %v3013_v48 = vrot.slane %v3012_v0, 2  ;;  %3691 = vmatpush.bf16.msrb.mxu1 %v3682_v37 }
0x1baf   : > { %v3007_v17 = vadd.f32 %v3006_v15, %v3005_v13 }
0x1bb0   : > { %4725 = vrcp.f32 %v3023_v59  ;;  %v3014_v14 = vadd.f32 %v3013_v48, %v3012_v0 }
0x1bb1   : > { %v3008_v21 = vrot.slane %v3007_v17, 1 }
0x1bb2   : > { %v3015_v24 = vrot.slane %v3014_v14, 1 }
0x1bb3   : > { %v3009_v23 = vadd.f32 %v3008_v21, %v3007_v17 }
0x1bb4   : > { %v3016_v1 = vadd.f32 %v3015_v24, %v3014_v14 }
0x1bb5   : > { %4727 = vrcp.f32 %v3009_v23 }
0x1bb6   : > { %v4726_v26 = vpop.eup %4725  ;;  %4729 = vrcp.f32 %v3016_v1  ;;  %v3350_v1 = vsel %vm501_vm1, %v5722_v42, 0 }
0x1bb7   : > { %v3029_v32 = vmul.f32 %v4726_v26, %v4720_v39  ;;  %v3525_v26 = vsel %vm501_vm1, %v5744_v38, 0 }
0x1bb9   : > { %v3044_v49 = vsel %vm501_vm1, %v3029_v32, 0.0 }
0x1bba   : > { %v3045_v57 = vrot.slane %v3044_v49, 4 }
0x1bbb   : > { %v4728_v4 = vpop.eup %4727 }
0x1bbc   : > { %v4730_v7 = vpop.eup %4729  ;;  %v3046_v11 = vadd.f32 %v3045_v57, %v3044_v49  ;;  %v3027_v18 = vmul.f32 %v4728_v4, %v4722_v34 }
0x1bbd   : > { %v3028_v56 = vmul.f32 %v4730_v7, %v4724_v54 }
0x1bbe   : > { %v3047_v44 = vrot.slane %v3046_v11, 2  ;;  %v3030_v19 = vsel %vm501_vm1, %v3027_v18, 0.0 }
0x1bbf   : > { %v3031_v28 = vrot.slane %v3030_v19, 4  ;;  %v3037_v22 = vsel %vm501_vm1, %v3028_v56, 0.0 }
0x1bc0   : > { %v3048_v12 = vadd.f32 %v3047_v44, %v3046_v11  ;;  %v3038_v46 = vrot.slane %v3037_v22, 4 }
0x1bc1   : > { %v3032_v29 = vadd.f32 %v3031_v28, %v3030_v19 }
0x1bc2   : > { %v3039_v35 = vadd.f32 %v3038_v46, %v3037_v22  ;;  %v3049_v10 = vrot.slane %v3048_v12, 1 }
0x1bc3   : > { %v3033_v39 = vrot.slane %v3032_v29, 2 }
0x1bc4   : > { %v3040_v36 = vrot.slane %v3039_v35, 2  ;;  %v3050_v52 = vadd.f32 %v3049_v10, %v3048_v12 }
0x1bc5   : > { %v3034_v33 = vadd.f32 %v3033_v39, %v3032_v29 }
0x1bc6   : > { %v3041_v13 = vadd.f32 %v3040_v36, %v3039_v35  ;;  %v3053_v15 = vpack.c.bf16 %v3050_v52, %v3050_v52 }
0x1bc7   : > { %v3035_v0 = vrot.slane %v3034_v33, 1 }
0x1bc8   : > { %v3042_v5 = vrot.slane %v3041_v13, 1  ;;  %v3059_v14 = vunpack.c.l.b16 %v3053_v15 }
0x1bc9   : > { %v3036_v34 = vadd.f32 %v3035_v0, %v3034_v33 }
0x1bca   : > { %v3043_v54 = vadd.f32 %v3042_v5, %v3041_v13 }
0x1bcb   : > { %v3051_v37 = vpack.c.bf16 %v3036_v34, %v3036_v34 }
0x1bcc   : > { %v3052_v59 = vpack.c.bf16 %v3043_v54, %v3043_v54 }
0x1bcd   : > { %v3057_v48 = vunpack.c.l.b16 %v3051_v37 }
0x1bce   : > { %v3058_v17 = vunpack.c.l.b16 %v3052_v59 }
0x1bd0   : > { %v3060_v21 = vsel %vm1205_vm4, %v3058_v17, %v3057_v48 }
0x1bd1   : > { %v3061_v24 = vsel %vm1207_vm5, %v3059_v14, %v3060_v21 }
0x1bd2   : > { %v3062_v23 = vpack.c.b16 %v3061_v24, %v3061_v24 }
0x1bd4   : > { %4516 = vmatmul.msk.bf16.vlgmr.msrb.gmra.mxu2 %vm501_vm1, %v3062_v23 }
0x1bd5   : > { %3359 = vmatpush.bf16.xpose.msrb.mxu2 %v3350_v1 }
0x1be4   : > { %4520 = vmatmul.msk.bf16.vlgmr.msra.gmra.mxu2 %vm501_vm1, %v5729_v9 }
0x1be5   : > { %3534 = vmatpush.bf16.xpose.msra.mxu2 %v3525_v26 }
0x1be9   : > { %v3128_v32 = vpop.f32.mrf.mxu0 }
0x1bea   : > { %v3190_v49 = vsel %vm501_vm1, %v3128_v32, -inf }
0x1beb   : > { %v3191_v57 = vrot.slane %v3190_v49, 4 }
0x1bed   : > { %v3192_v4 = vmax.f32 %v3190_v49, %v3191_v57 }
0x1bef   : > { %v3193_v7 = vrot.slane %v3192_v4, 2 }
0x1bf1   : > { %v3194_v11 = vmax.f32 %v3192_v4, %v3193_v7  ;;  %v3130_v18 = vpop.f32.mrf.mxu0 }
0x1bf3   : > { %v3195_v56 = vrot.slane %v3194_v11, 1 }
0x1bf4   : > { %4524 = vmatmul.msk.bf16.vlgmr.msrb.gmra.mxu2 %vm501_vm1, %v5726_v58 }
0x1bf5   : > { %v3196_v42 = vmax.f32 %v3194_v11, %v3195_v56  ;;  %3708 = vmatpush.bf16.msrb.mxu2 %v5316_v8 }
0x1bf7   : > { %v3211_v38 = vsub.f32 %v3128_v32, %v3196_v42 }
0x1bf9   : > { %v3214_v44 = vmul.f32 1.442695, %v3211_v38 }
0x1bfb   : > { %4731 = vpow2.f32 %v3214_v44 }
0x1c01   : > { %v4732_v9 = vpop.eup %4731 }
0x1c02   : > { %v3220_v19 = vsel %vm501_vm1, %v4732_v9, 0.0  ;;  %v3157_v28 = vpop.f32.mrf.mxu1 }
0x1c03   : > { %v3221_v22 = vrot.slane %v3220_v19, 4  ;;  %v3197_v12 = vsel %vm501_vm1, %v3157_v28, -inf }
0x1c04   : > { %v3198_v46 = vrot.slane %v3197_v12, 4  ;;  %4528 = vmatmul.msk.bf16.vlgmr.msra.gmra.mxu2 %vm501_vm1, %v5747_v43 }
0x1c05   : > { %v3222_v29 = vadd.f32 %v3221_v22, %v3220_v19 }
0x1c06   : > { %v3199_v35 = vmax.f32 %v3197_v12, %v3198_v46 }
0x1c07   : > { %v3223_v58 = vrot.slane %v3222_v29, 2 }
0x1c08   : > { %v3200_v10 = vrot.slane %v3199_v35, 2 }
0x1c09   : > { %v3224_v39 = vadd.f32 %v3223_v58, %v3222_v29 }
0x1c0a   : > { %v3201_v8 = vmax.f32 %v3199_v35, %v3200_v10  ;;  %v3159_v36 = vpop.f32.mrf.mxu1 }
0x1c0b   : > { %v3225_v33 = vrot.slane %v3224_v39, 1 }
0x1c0c   : > { %v3202_v13 = vrot.slane %v3201_v8, 1 }
0x1c0d   : > { %v3226_v0 = vadd.f32 %v3225_v33, %v3224_v39 }
0x1c0e   : > { %v3203_v52 = vmax.f32 %v3201_v8, %v3202_v13 }
0x1c0f   : > { %4733 = vrcp.f32 %v3226_v0 }
0x1c10   : > { %v3212_v5 = vsub.f32 %v3157_v28, %v3203_v52 }
0x1c12   : > { %v3216_v34 = vmul.f32 1.442695, %v3212_v5 }
0x1c14   : > { %4735 = vpow2.f32 %v3216_v34  ;;  %v3373_v34 = vsel %vm501_vm1, %v5735_v60, 0 }
0x1c15   : > { %v4734_v15 = vpop.eup %4733 }
0x1c16   : > { %v3244_v48 = vmul.f32 %v4734_v15, %v4732_v9 }
0x1c18   : > { %v3338_v54 = vpop.f32.mrf.mxu1  ;;  %v3247_v24 = vsel %vm501_vm1, %v3244_v48, 0.0 }
0x1c19   : > { %v3248_v1 = vrot.slane %v3247_v24, 4  ;;  %v3388_v58 = vsel %vm501_vm1, %v3338_v54, -inf }
0x1c1a   : > { %v4736_v37 = vpop.eup %4735  ;;  %v3389_v39 = vrot.slane %v3388_v58, 4 }
0x1c1b   : > { %v3227_v43 = vsel %vm501_vm1, %v4736_v37, 0.0  ;;  %v3249_v49 = vadd.f32 %v3248_v1, %v3247_v24 }
0x1c1c   : > { %v3228_v59 = vrot.slane %v3227_v43, 4  ;;  %v3390_v8 = vmax.f32 %v3388_v58, %v3389_v39 }
0x1c1d   : > { %v3250_v57 = vrot.slane %v3249_v49, 2 }
0x1c1e   : > { %v3229_v17 = vadd.f32 %v3228_v59, %v3227_v43  ;;  %v3391_v36 = vrot.slane %v3390_v8, 2 }
0x1c1f   : > { %v3251_v11 = vadd.f32 %v3250_v57, %v3249_v49 }
0x1c20   : > { %v3230_v14 = vrot.slane %v3229_v17, 2  ;;  %v3340_v21 = vpop.f32.mrf.mxu1  ;;  %v3392_v33 = vmax.f32 %v3390_v8, %v3391_v36 }
0x1c21   : > { %v3252_v42 = vrot.slane %v3251_v11, 1 }
0x1c22   : > { %v3231_v23 = vadd.f32 %v3230_v14, %v3229_v17  ;;  %v3393_v13 = vrot.slane %v3392_v33, 1 }
0x1c23   : > { %v3253_v9 = vadd.f32 %v3252_v42, %v3251_v11 }
0x1c24   : > { %v3232_v26 = vrot.slane %v3231_v23, 1  ;;  %v3394_v0 = vmax.f32 %v3392_v33, %v3393_v13 }
0x1c25   : > { %v3268_v22 = vpack.c.bf16 %v3253_v9, %v3253_v9 }
0x1c26   : > { %v3233_v32 = vadd.f32 %v3232_v26, %v3231_v23  ;;  %v3409_v15 = vsub.f32 %v3338_v54, %v3394_v0 }
0x1c27   : > { %v3274_v29 = vunpack.c.l.b16 %v3268_v22 }
0x1c28   : > { %4737 = vrcp.f32 %v3233_v32  ;;  %v3412_v43 = vmul.f32 1.442695, %v3409_v15 }
0x1c2a   : > { %4739 = vpow2.f32 %v3412_v43 }
0x1c2e   : > { %v4738_v4 = vpop.eup %4737 }
0x1c2f   : > { %v3245_v7 = vmul.f32 %v4738_v4, %v4736_v37 }
0x1c30   : > { %v4740_v14 = vpop.eup %4739 }
0x1c31   : > { %v3254_v18 = vsel %vm501_vm1, %v3245_v7, 0.0  ;;  %v3418_v24 = vsel %vm501_vm1, %v4740_v14, 0.0 }
0x1c32   : > { %v3255_v56 = vrot.slane %v3254_v18, 4  ;;  %v3419_v32 = vrot.slane %v3418_v24, 4 }
0x1c34   : > { %v3256_v38 = vadd.f32 %v3255_v56, %v3254_v18  ;;  %v3420_v57 = vadd.f32 %v3419_v32, %v3418_v24 }
0x1c36   : > { %v3257_v44 = vrot.slane %v3256_v38, 2  ;;  %v3421_v11 = vrot.slane %v3420_v57, 2 }
0x1c38   : > { %v3258_v19 = vadd.f32 %v3257_v44, %v3256_v38  ;;  %v3422_v38 = vadd.f32 %v3421_v11, %v3420_v57 }
0x1c3a   : > { %v3259_v28 = vrot.slane %v3258_v19, 1  ;;  %v3423_v22 = vrot.slane %v3422_v38, 1 }
0x1c3c   : > { %v3260_v12 = vadd.f32 %v3259_v28, %v3258_v19  ;;  %v3424_v39 = vadd.f32 %v3423_v22, %v3422_v38 }
0x1c3e   : > { %v3269_v46 = vpack.c.bf16 %v3260_v12, %v3260_v12 }
0x1c40   : > { %v3275_v35 = vunpack.c.l.b16 %v3269_v46 }
0x1c42   : > { %v5777_v10 = vsel %vm1205_vm4, %v3275_v35, %v3274_v29 }
0x1c57   : > { %v3081_v52 = vpop.f32.mrf.mxu2 }
0x1c58   : > { %v3085_v5 = vpack.c.bf16 %v3081_v52, %v3081_v52 }
0x1c5a   : > { %4517 = vmatmul.msk.bf16.vlgmr.msra.gmra.mxu3 %vm501_vm1, %v3085_v5 }
0x1c5b   : > { %3382 = vmatpush.bf16.xpose.msra.mxu3 %v3373_v34 }
0x1c5f   : > { %v3083_v37 = vpop.f32.mrf.mxu2 }
0x1c67   : > { %v3186_v59 = vpop.f32.mrf.mxu2 }
0x1c68   : > { %v3204_v48 = vsel %vm501_vm1, %v3186_v59, -inf }
0x1c69   : > { %v3205_v17 = vrot.slane %v3204_v48, 4 }
0x1c6b   : > { %v3206_v21 = vmax.f32 %v3204_v48, %v3205_v17 }
0x1c6d   : > { %v3207_v23 = vrot.slane %v3206_v21, 2 }
0x1c6f   : > { %v3208_v1 = vmax.f32 %v3206_v21, %v3207_v23  ;;  %v3188_v26 = vpop.f32.mrf.mxu2 }
0x1c71   : > { %v3209_v60 = vrot.slane %v3208_v1, 1 }
0x1c73   : > { %v3210_v49 = vmax.f32 %v3208_v1, %v3209_v60 }
0x1c75   : > { %v3213_v4 = vsub.f32 %v3186_v59, %v3210_v49 }
0x1c77   : > { %v3218_v54 = vmul.f32 1.442695, %v3213_v4  ;;  %v3361_v7 = vpop.f32.mrf.mxu2 }
0x1c78   : > { %v3395_v18 = vsel %vm501_vm1, %v3361_v7, -inf }
0x1c79   : > { %4741 = vpow2.f32 %v3218_v54  ;;  %v3396_v56 = vrot.slane %v3395_v18, 4 }
0x1c7a   : > { %4743 = vrcp.f32 %v3424_v39 }
0x1c7b   : > { %v3397_v42 = vmax.f32 %v3395_v18, %v3396_v56 }
0x1c7d   : > { %v3398_v44 = vrot.slane %v3397_v42, 2 }
0x1c7f   : > { %v4742_v9 = vpop.eup %4741  ;;  %v3399_v19 = vmax.f32 %v3397_v42, %v3398_v44  ;;  %v3363_v28 = vpop.f32.mrf.mxu2 }
0x1c80   : > { %v3234_v12 = vsel %vm501_vm1, %v4742_v9, 0.0  ;;  %v4744_v34 = vpop.eup %4743 }
0x1c81   : > { %v3235_v46 = vrot.slane %v3234_v12, 4  ;;  %v3400_v29 = vrot.slane %v3399_v19, 1  ;;  %v3442_v48 = vmul.f32 %v4744_v34, %v4740_v14 }
0x1c83   : > { %v3236_v35 = vadd.f32 %v3235_v46, %v3234_v12  ;;  %v3401_v58 = vmax.f32 %v3399_v19, %v3400_v29  ;;  %v3445_v1 = vsel %vm501_vm1, %v3442_v48, 0.0  ;;  %v3543_v12 = vpop.permute.xlu0 %3542  ;;  %v4801_v48 = vld [vmem:[%s5972_s3 + $0x3c] sm:$0xff] }
0x1c84   : > { %v3446_v49 = vrot.slane %v3445_v1, 4 }
0x1c85   : > { %v3237_v8 = vrot.slane %v3236_v35, 2  ;;  %v3410_v36 = vsub.f32 %v3361_v7, %v3401_v58 }
0x1c86   : > { %v3447_v11 = vadd.f32 %v3446_v49, %v3445_v1  ;;  %v3566_v49 = vpop.permute.xlu2 %3565 }
0x1c87   : > { %v3238_v33 = vadd.f32 %v3237_v8, %v3236_v35  ;;  %v3414_v13 = vmul.f32 1.442695, %v3410_v36  ;;  %v5786_v52 = vpop.f32.mrf.mxu2  ;;  %v3548_v8 = vsel %vm501_vm1, %v3543_v12, 0 }
0x1c88   : > { %v3448_v14 = vrot.slane %v3447_v11, 2 }
0x1c89   : > { %v3239_v0 = vrot.slane %v3238_v33, 1  ;;  %4745 = vpow2.f32 %v3414_v13 }
0x1c8a   : > { %v3449_v19 = vadd.f32 %v3448_v14, %v3447_v11 }
0x1c8b   : > { %v3240_v5 = vadd.f32 %v3239_v0, %v3238_v33 }
0x1c8c   : > { %v3450_v58 = vrot.slane %v3449_v19, 1 }
0x1c8d   : > { %4747 = vrcp.f32 %v3240_v5 }
0x1c8e   : > { %v3451_v33 = vadd.f32 %v3450_v58, %v3449_v19 }
0x1c8f   : > { %v4746_v15 = vpop.eup %4745  ;;  %v3538_v37 = vpop.f32.mrf.mxu2 }
0x1c90   : > { %v3425_v43 = vsel %vm501_vm1, %v4746_v15, 0.0  ;;  %v3466_v5 = vpack.c.bf16 %v3451_v33, %v3451_v33 }
0x1c91   : > { %v3426_v59 = vrot.slane %v3425_v43, 4 }
0x1c92   : > { %v3472_v37 = vunpack.c.l.b16 %v3466_v5 }
0x1c93   : > { %v4748_v17 = vpop.eup %4747  ;;  %v3427_v21 = vadd.f32 %v3426_v59, %v3425_v43 }
0x1c94   : > { %v3246_v24 = vmul.f32 %v4748_v17, %v4742_v9  ;;  %v3541_v17 = vpop.permute.xlu0 %3540 }
0x1c95   : > { %v3428_v23 = vrot.slane %v3427_v21, 2 }
0x1c96   : > { %v3261_v26 = vsel %vm501_vm1, %v3246_v24, 0.0 }
0x1c97   : > { %v3262_v32 = vrot.slane %v3261_v26, 4  ;;  %v3429_v60 = vadd.f32 %v3428_v23, %v3427_v21  ;;  %v3586_v23 = vsel %vm501_vm1, %v5786_v52, -inf }
0x1c99   : > { %v3263_v57 = vadd.f32 %v3262_v32, %v3261_v26  ;;  %v3430_v4 = vrot.slane %v3429_v60, 1 }
0x1c9b   : > { %v3264_v54 = vrot.slane %v3263_v57, 2  ;;  %v3431_v7 = vadd.f32 %v3430_v4, %v3429_v60 }
0x1c9d   : > { %v3265_v18 = vadd.f32 %v3264_v54, %v3263_v57  ;;  %4749 = vrcp.f32 %v3431_v7  ;;  %v3571_v7 = vsel %vm501_vm1, %v3566_v49, 0 }
0x1c9f   : > { %v3266_v56 = vrot.slane %v3265_v18, 1 }
0x1ca1   : > { %v3267_v42 = vadd.f32 %v3266_v56, %v3265_v18 }
0x1ca3   : > { %v4750_v38 = vpop.eup %4749  ;;  %v3270_v44 = vpack.c.bf16 %v3267_v42, %v3267_v42 }
0x1ca4   : > { %v3443_v9 = vmul.f32 %v4750_v38, %v4746_v15 }
0x1ca5   : > { %v3276_v28 = vunpack.c.l.b16 %v3270_v44 }
0x1ca6   : > { %v3452_v22 = vsel %vm501_vm1, %v3443_v9, 0.0 }
0x1ca7   : > { %v3453_v46 = vrot.slane %v3452_v22, 4  ;;  %v3278_v29 = vsel %vm1207_vm5, %v3276_v28, %v5777_v10  ;;  %v4800_v10 = vld [vmem:[%s5972_s3 + $0x44] sm:$0xff] }
0x1ca8   : > { %v3279_v35 = vpack.c.b16 %v3278_v29, %v3278_v29 }
0x1ca9   : > { %v3454_v39 = vadd.f32 %v3453_v46, %v3452_v22 }
0x1caa   : > { %4521 = vmatmul.msk.bf16.vlgmr.msrb.gmra.mxu3 %vm501_vm1, %v3279_v35 }
0x1cab   : > { %v3455_v36 = vrot.slane %v3454_v39, 2  ;;  %3557 = vmatpush.bf16.xpose.msrb.mxu3 %v3548_v8 }
0x1cad   : > { %v3456_v13 = vadd.f32 %v3455_v36, %v3454_v39 }
0x1caf   : > { %v3457_v0 = vrot.slane %v3456_v13, 1 }
0x1cb1   : > { %v3458_v34 = vadd.f32 %v3457_v0, %v3456_v13 }
0x1cb3   : > { %v3467_v15 = vpack.c.bf16 %v3458_v34, %v3458_v34 }
0x1cb5   : > { %v3473_v43 = vunpack.c.l.b16 %v3467_v15 }
0x1cb7   : > { %v5797_v59 = vsel %vm1205_vm4, %v3473_v43, %v3472_v37 }
0x1cba   : > { %4525 = vmatmul.msk.bf16.vlgmr.msra.gmra.mxu3 %vm501_vm1, %v5740_v16  ;;  %v3587_v16 = vrot.slane %v3586_v23, 4 }
0x1cbb   : > { %3727 = vmatpush.bf16.msra.mxu3 %v4800_v10 }
0x1cbc   : > { %v3588_v1 = vmax.f32 %v3586_v23, %v3587_v16 }
0x1cbe   : > { %v3589_v26 = vrot.slane %v3588_v1, 2 }
0x1cbf   : > { %3728 = vmatpush.bf16.msra.mxu3 %v4801_v48 }
0x1cc0   : > { %v3590_v32 = vmax.f32 %v3588_v1, %v3589_v26 }
0x1cc2   : > { %v3591_v60 = vrot.slane %v3590_v32, 1 }
0x1cc4   : > { %v3592_v4 = vmax.f32 %v3590_v32, %v3591_v60 }
0x1cc6   : > { %v3607_v11 = vsub.f32 %v5786_v52, %v3592_v4 }
0x1cc8   : > { %v3610_v56 = vmul.f32 1.442695, %v3607_v11 }
0x1cca   : > { %4529 = vmatmul.msk.bf16.vlgmr.msrb.gmra.mxu3 %vm501_vm1, %v3541_v17  ;;  %4751 = vpow2.f32 %v3610_v56 }
0x1cd0   : > { %v4752_v44 = vpop.eup %4751 }
0x1cd1   : > { %v3616_v19 = vsel %vm501_vm1, %v4752_v44, 0.0 }
0x1cd2   : > { %v3617_v46 = vrot.slane %v3616_v19, 4 }
0x1cd4   : > { %v3618_v58 = vadd.f32 %v3617_v46, %v3616_v19 }
0x1cd6   : > { %v3619_v36 = vrot.slane %v3618_v58, 2 }
0x1cd8   : > { %v3620_v5 = vadd.f32 %v3619_v36, %v3618_v58 }
0x1cda   : > { %v3621_v10 = vrot.slane %v3620_v5, 1 }
0x1cdc   : > { %v3622_v1 = vadd.f32 %v3621_v10, %v3620_v5 }
0x1cdd   : > { %v5808_v21 = vpop.f32.mrf.mxu3 }
0x1ce5   : > { %v3100_v24 = vpop.f32.mrf.mxu3 }
0x1d2d   : > { %v3297_v57 = vpop.f32.mrf.mxu3 }
0x1d2e   : > { %v3301_v54 = vpack.c.bf16 %v3297_v57, %v3297_v57 }
0x1d30   : > { %4522 = vmatmul.msk.bf16.vlgmr.msra.gmra.mxu0 %vm501_vm1, %v3301_v54 }
0x1d31   : > { %3580 = vmatpush.bf16.xpose.msra.mxu0 %v3571_v7 }
0x1d35   : > { %v3299_v18 = vpop.f32.mrf.mxu3 }
0x1d3d   : > { %v3384_v14 = vpop.f32.mrf.mxu3 }
0x1d3e   : > { %v3402_v42 = vsel %vm501_vm1, %v3384_v14, -inf }
0x1d3f   : > { %v3403_v38 = vrot.slane %v3402_v42, 4 }
0x1d41   : > { %v3404_v9 = vmax.f32 %v3402_v42, %v3403_v38 }
0x1d43   : > { %v3405_v28 = vrot.slane %v3404_v9, 2 }
0x1d45   : > { %v3406_v22 = vmax.f32 %v3404_v9, %v3405_v28  ;;  %v3386_v12 = vpop.f32.mrf.mxu3 }
0x1d47   : > { %v3407_v29 = vrot.slane %v3406_v22, 1 }
0x1d49   : > { %v3408_v35 = vmax.f32 %v3406_v22, %v3407_v29 }
0x1d4b   : > { %v3411_v39 = vsub.f32 %v3384_v14, %v3408_v35 }
0x1d4d   : > { %v3416_v52 = vmul.f32 1.442695, %v3411_v39  ;;  %v3559_v8 = vpop.f32.mrf.mxu3 }
0x1d4e   : > { %v3593_v33 = vsel %vm501_vm1, %v3559_v8, -inf }
0x1d4f   : > { %4753 = vpow2.f32 %v3416_v52  ;;  %v3594_v13 = vrot.slane %v3593_v33, 4 }
0x1d50   : > { %4755 = vrcp.f32 %v3622_v1 }
0x1d51   : > { %v3595_v0 = vmax.f32 %v3593_v33, %v3594_v13 }
0x1d53   : > { %v3596_v34 = vrot.slane %v3595_v0, 2 }
0x1d55   : > { %v4754_v15 = vpop.eup %4753  ;;  %v3597_v37 = vmax.f32 %v3595_v0, %v3596_v34  ;;  %v3561_v43 = vpop.f32.mrf.mxu3 }
0x1d56   : > { %v3432_v48 = vsel %vm501_vm1, %v4754_v15, 0.0  ;;  %v4756_v54 = vpop.eup %4755 }
0x1d57   : > { %v3433_v17 = vrot.slane %v3432_v48, 4  ;;  %v3598_v24 = vrot.slane %v3597_v37, 1  ;;  %v3640_v56 = vmul.f32 %v4756_v54, %v4752_v44 }
0x1d59   : > { %v3434_v23 = vadd.f32 %v3433_v17, %v3432_v48  ;;  %v3599_v16 = vmax.f32 %v3597_v37, %v3598_v24  ;;  %v3643_v19 = vsel %vm501_vm1, %v3640_v56, 0.0  ;;  %v3564_v56 = vpop.permute.xlu2 %3563 }
0x1d5a   : > { %v3644_v46 = vrot.slane %v3643_v19, 4 }
0x1d5b   : > { %v3435_v26 = vrot.slane %v3434_v23, 2  ;;  %v3608_v32 = vsub.f32 %v3559_v8, %v3599_v16  ;;  %v4802_v16 = vld [vmem:[%s5975_s6 + $0x5c] sm:$0xff] }
0x1d5c   : > { %v3645_v52 = vadd.f32 %v3644_v46, %v3643_v19  ;;  %v4808_v46 = vld [vmem:[%s5974_s5 + $0x1c] sm:$0xff] }
0x1d5d   : > { %v3436_v60 = vadd.f32 %v3435_v26, %v3434_v23  ;;  %v3612_v49 = vmul.f32 1.442695, %v3608_v32 }
0x1d5e   : > { %v3646_v44 = vrot.slane %v3645_v52, 2 }
0x1d5f   : > { %v3437_v57 = vrot.slane %v3436_v60, 1  ;;  %4757 = vpow2.f32 %v3612_v49 }
0x1d60   : > { %v3647_v34 = vadd.f32 %v3646_v44, %v3645_v52 }
0x1d61   : > { %v3438_v4 = vadd.f32 %v3437_v57, %v3436_v60  ;;  %v4803_v60 = vld [vmem:[%s5975_s6 + $0x54] sm:$0xff] }
0x1d62   : > { %v3648_v17 = vrot.slane %v3647_v34, 1 }
0x1d63   : > { %4759 = vrcp.f32 %v3438_v4  ;;  %v4804_v4 = vld [vmem:[%s5975_s6 + $0x4c] sm:$0xff] }
0x1d64   : > { %v3649_v1 = vadd.f32 %v3648_v17, %v3647_v34 }
0x1d65   : > { %v4758_v7 = vpop.eup %4757 }
0x1d66   : > { %v3623_v11 = vsel %vm501_vm1, %v4758_v7, 0.0 }
0x1d67   : > { %v3624_v18 = vrot.slane %v3623_v11, 4 }
0x1d69   : > { %v4760_v14 = vpop.eup %4759  ;;  %v3625_v42 = vadd.f32 %v3624_v18, %v3623_v11  ;;  %v4805_v18 = vld [vmem:[%s5975_s6 + $0x44] sm:$0xff] }
0x1d6a   : > { %v3444_v38 = vmul.f32 %v4760_v14, %v4754_v15  ;;  %v4806_v14 = vld [vmem:[%s5975_s6 + $0x3c] sm:$0xff] }
0x1d6b   : > { %v3626_v9 = vrot.slane %v3625_v42, 2 }
0x1d6c   : > { %v3459_v28 = vsel %vm501_vm1, %v3444_v38, 0.0  ;;  %v3102_v38 = vadd.f32 %v5808_v21, %v5302_v30 }
0x1d6d   : > { %v3460_v22 = vrot.slane %v3459_v28, 4  ;;  %v3627_v12 = vadd.f32 %v3626_v9, %v3625_v42  ;;  %v4807_v42 = vld [vmem:[%s5975_s6 + $0x34] sm:$0xff] }
0x1d6f   : > { %v3461_v29 = vadd.f32 %v3460_v22, %v3459_v28  ;;  %v3628_v35 = vrot.slane %v3627_v12, 1 }
0x1d71   : > { %v3462_v58 = vrot.slane %v3461_v29, 2  ;;  %v3629_v39 = vadd.f32 %v3628_v35, %v3627_v12  ;;  %v4809_v35 = vld [vmem:[%s5974_s5 + $0x14] sm:$0xff] }
0x1d73   : > { %v3463_v8 = vadd.f32 %v3462_v58, %v3461_v29  ;;  %4761 = vrcp.f32 %v3629_v39 }
0x1d75   : > { %v3464_v36 = vrot.slane %v3463_v8, 1 }
0x1d77   : > { %v3465_v33 = vadd.f32 %v3464_v36, %v3463_v8 }
0x1d79   : > { %v4762_v13 = vpop.eup %4761  ;;  %v3468_v0 = vpack.c.bf16 %v3465_v33, %v3465_v33 }
0x1d7a   : > { %v3641_v5 = vmul.f32 %v4762_v13, %v4758_v7 }
0x1d7b   : > { %v3474_v15 = vunpack.c.l.b16 %v3468_v0 }
0x1d7c   : > { %v3650_v37 = vsel %vm501_vm1, %v3641_v5, 0.0 }
0x1d7d   : > { %v3651_v43 = vrot.slane %v3650_v37, 4  ;;  %v3476_v10 = vsel %vm1207_vm5, %v3474_v15, %v5797_v59  ;;  %v3664_v59 = vpack.c.bf16 %v3649_v1, %v3649_v1 }
0x1d7e   : > { %v3477_v48 = vpack.c.b16 %v3476_v10, %v3476_v10 }
0x1d7f   : > { %v3652_v24 = vadd.f32 %v3651_v43, %v3650_v37  ;;  %v3670_v54 = vunpack.c.l.b16 %v3664_v59 }
0x1d80   : > { %4526 = vmatmul.msk.bf16.vlgmr.msrb.gmra.mxu0 %vm501_vm1, %v3477_v48 }
0x1d81   : > { %v3653_v23 = vrot.slane %v3652_v24, 2  ;;  %3741 = vmatpush.bf16.msrb.mxu0 %v4802_v16 }
0x1d83   : > { %v3654_v26 = vadd.f32 %v3653_v23, %v3652_v24 }
0x1d85   : > { %v3655_v32 = vrot.slane %v3654_v26, 1  ;;  %3742 = vmatpush.bf16.msrb.mxu0 %v4803_v60 }
0x1d87   : > { %v3656_v49 = vadd.f32 %v3655_v32, %v3654_v26 }
0x1d89   : > { %v3665_v57 = vpack.c.bf16 %v3656_v49, %v3656_v49  ;;  %3743 = vmatpush.bf16.msrb.mxu0 %v4804_v4 }
0x1d8b   : > { %v3671_v7 = vunpack.c.l.b16 %v3665_v57 }
0x1d8d   : > { %v3673_v11 = vsel %vm1205_vm4, %v3671_v7, %v3670_v54  ;;  %3744 = vmatpush.bf16.msrb.mxu0 %v4805_v18 }
0x1d90   : > { %4530 = vmatmul.msk.bf16.vlgmr.msra.gmra.mxu0 %vm501_vm1, %v3564_v56 }
0x1d91   : > { %3745 = vmatpush.bf16.msrb.mxu0 %v4806_v14 }
0x1d95   : > { %3746 = vmatpush.bf16.msrb.mxu0 %v4807_v42 }
0x1dad   : > { %v3314_v9 = vpop.f32.mrf.mxu0 }
0x1dae   : > { %v3318_v19 = vadd.f32 %v3314_v9, %v3102_v38 }
0x1db5   : > { %v3316_v28 = vpop.f32.mrf.mxu0 }
0x1dfd   : > { %v3495_v22 = vpop.f32.mrf.mxu0 }
0x1dfe   : > { %v3499_v12 = vpack.c.bf16 %v3495_v22, %v3495_v22 }
0x1e00   : > { %4527 = vmatmul.msk.bf16.vlgmr.msra.gmra.mxu1 %vm501_vm1, %v3499_v12 }
0x1e01   : > { %3764 = vmatpush.bf16.msra.mxu1 %v4808_v46  ;;  %v4810_v46 = vld [vmem:[%s4924_s15 + $0x10] sm:$0xff] }
0x1e05   : > { %v3497_v29 = vpop.f32.mrf.mxu0  ;;  %3765 = vmatpush.bf16.msra.mxu1 %v4809_v35 }
0x1e0d   : > { %v3582_v58 = vpop.f32.mrf.mxu0 }
0x1e0e   : > { %v3600_v30 = vsel %vm501_vm1, %v3582_v58, -inf }
0x1e0f   : > { %v3601_v21 = vrot.slane %v3600_v30, 4 }
0x1e11   : > { %v3602_v39 = vmax.f32 %v3600_v30, %v3601_v21 }
0x1e13   : > { %v3603_v52 = vrot.slane %v3602_v39, 2 }
0x1e15   : > { %v3604_v8 = vmax.f32 %v3602_v39, %v3603_v52  ;;  %v3584_v36 = vpop.f32.mrf.mxu0 }
0x1e17   : > { %v3605_v44 = vrot.slane %v3604_v8, 1 }
0x1e19   : > { %v3606_v33 = vmax.f32 %v3604_v8, %v3605_v44 }
0x1e1b   : > { %v3609_v13 = vsub.f32 %v3582_v58, %v3606_v33 }
0x1e1d   : > { %v3614_v0 = vmul.f32 1.442695, %v3609_v13 }
0x1e1f   : > { %4763 = vpow2.f32 %v3614_v0  ;;  %v3776_v0 = vpop.permute.xlu0 %3775 }
0x1e25   : > { %v4764_v5 = vpop.eup %4763 }
0x1e26   : > { %v3630_v34 = vsel %vm501_vm1, %v4764_v5, 0.0 }
0x1e27   : > { %v3631_v15 = vrot.slane %v3630_v34, 4 }
0x1e29   : > { %v3632_v37 = vadd.f32 %v3631_v15, %v3630_v34  ;;  %v3849_v15 = vpop.permute.xlu1 %3848 }
0x1e2b   : > { %v3633_v43 = vrot.slane %v3632_v37, 2 }
0x1e2d   : > { %v3634_v10 = vadd.f32 %v3633_v43, %v3632_v37 }
0x1e2f   : > { %v3635_v48 = vrot.slane %v3634_v10, 1 }
0x1e31   : > { %v3636_v17 = vadd.f32 %v3635_v48, %v3634_v10 }
0x1e33   : > { %4765 = vrcp.f32 %v3636_v17 }
0x1e39   : > { %v4766_v24 = vpop.eup %4765 }
0x1e3a   : > { %v3642_v23 = vmul.f32 %v4766_v24, %v4764_v5 }
0x1e3c   : > { %v3657_v16 = vsel %vm501_vm1, %v3642_v23, 0.0 }
0x1e3d   : > { %v3658_v1 = vrot.slane %v3657_v16, 4 }
0x1e3f   : > { %v3659_v26 = vadd.f32 %v3658_v1, %v3657_v16 }
0x1e41   : > { %v3660_v32 = vrot.slane %v3659_v26, 2 }
0x1e43   : > { %v3661_v60 = vadd.f32 %v3660_v32, %v3659_v26 }
0x1e45   : > { %v3662_v59 = vrot.slane %v3661_v60, 1 }
0x1e47   : > { %v3663_v49 = vadd.f32 %v3662_v59, %v3661_v60 }
0x1e49   : > { %v3666_v57 = vpack.c.bf16 %v3663_v49, %v3663_v49 }
0x1e4b   : > { %v3672_v4 = vunpack.c.l.b16 %v3666_v57 }
0x1e4d   : > { %v3674_v54 = vsel %vm1207_vm5, %v3672_v4, %v3673_v11 }
0x1e4e   : > { %v3675_v7 = vpack.c.b16 %v3674_v54, %v3674_v54 }
0x1e50   : > { %4531 = vmatmul.msk.bf16.vlgmr.msrb.gmra.mxu1 %vm501_vm1, %v3675_v7 }
0x1e51   : > { %3841 = vmatpush.bf16.msrb.mxu1 %v5433_v61 }
0x1e7d   : > { %v3512_v18 = vpop.f32.mrf.mxu1 }
0x1e7e   : > { %v3516_v56 = vadd.f32 %v3512_v18, %v3318_v19 }
0x1e85   : > { %v3514_v14 = vpop.f32.mrf.mxu1 }
0x1ecd   : > { %v3693_v42 = vpop.f32.mrf.mxu1 }
0x1ece   : > { %v3697_v38 = vpack.c.bf16 %v3693_v42, %v3693_v42 }
0x1ed0   : > { %4532 = vmatmul.msk.bf16.vlgmr.msrb.gmra.mxu2 %vm501_vm1, %v3697_v38 }
0x1ed5   : > { %v3695_v9 = vpop.f32.mrf.mxu1 }
0x1f53   : > { %v3710_v28 = vpop.f32.mrf.mxu2 }
0x1f54   : > { %v3714_v22 = vadd.f32 %v3710_v28, %v3516_v56 }
0x1f56   : > { %v3715_v12 = vmul.f32 %v3714_v22, %v1875_v31 }
0x1f58   : > { %v3716_v11 = vadd.f32 %v4810_v46, %v3715_v12  ;;  %v4811_v46 = vld [vmem:[%s5972_s3 + $0x58] sm:$0xff] }
0x1f5a   : > { %v3717_v29 = vpack.c.bf16 %v3716_v11, %v3716_v11 }
0x1f5b   : > { %v3712_v35 = vpop.f32.mrf.mxu2 }
0x1f5c   : > { %4533 = vmatmul.msk.bf16.vlgmr.msra.gmra.mxu3 %vm478_vm0, %v3717_v29 }
0x1fdf   : > { %v3730_v61 = vpop.f32.mrf.mxu3 }
0x1fe0   : > { %v3731_v19 = vadd.f32 %v3730_v61, %v5354_v55 }
0x1fe2   : > { %v3734_v58 = vmax.f32 %v3731_v19, 0.0 }
0x1fe4   : > { %v3735_v30 = vpack.c.bf16 %v3734_v58, %v3734_v58 }
0x1fe6   : > { %4534 = vmatmul.msk.bf16.vlgmr.msrb.gmra.mxu0 %vm893_vm3, %v3735_v30 }
0x1fe7   : > { %v3732_v21 = vpop.f32.mrf.mxu3 }
0x2063   : > { %v3748_v39 = vpop.f32.mrf.mxu0 }
0x2064   : > { %v3749_v52 = vadd.f32 %v3748_v39, %v5369_v2  ;;  %v4813_v39 = vld [vmem:[%s5975_s6 + $0x90] sm:$0xff] }
0x2066   : > { %v3752_v31 = vmul.f32 %v3749_v52, %v1963_v45 }
0x2068   : > { %v3753_v8 = vadd.f32 %v3752_v31, %v3716_v11  ;;  %v4812_v11 = vld [vmem:[%s5972_s3 + $0x50] sm:$0xff]  ;;  %v4814_v31 = vld [vmem:[%s5975_s6 + $0x88] sm:$0xff] }
0x206a   : > { %v3754_v36 = vpack.c.bf16 %v3753_v8, %v3753_v8  ;;  %4550 = vst.msk [vmem:[%s5380_s25 + $0x10] sm:$0x7] %vm2420_vm6, %v3753_v8  ;;  %v4815_v8 = vld [vmem:[%s5975_s6 + $0x80] sm:$0xff] }
0x206b   : > { %v3750_v44 = vpop.f32.mrf.mxu0 }
0x206c   : > { %4535 = vmatmul.msk.bf16.vlgmr.msra.gmra.mxu1 %vm478_vm0, %v3754_v36  ;;  %v4816_v36 = vld [vmem:[%s5975_s6 + $0x78] sm:$0xff] }
0x20e9   : > { %v3767_v33 = vpop.f32.mrf.mxu1 }
0x20ea   : > { %v3768_v55 = vadd.f32 %v3767_v33, %v5388_v6  ;;  %v4817_v33 = vld [vmem:[%s5975_s6 + $0x70] sm:$0xff] }
0x20ec   : > { %v5875_v13 = vpack.c.bf16 %v3768_v55, %v3768_v55  ;;  %v4818_v55 = vld [vmem:[%s5975_s6 + $0x68] sm:$0xff] }
0x20ee   : > { %3850 = vrot.lane.b32.xlu2 %v5875_v13, %s6009_s12  ;;  %v3781_v2 = vsel %vm501_vm1, %v5875_v13, 0 }
0x20ef   : > { %3790 = vmatpush.bf16.xpose.msra.mxu2 %v3781_v2 }
0x20f1   : > { %v3769_v45 = vpop.f32.mrf.mxu1 }
0x20f6   : > { %4536 = vmatmul.msk.bf16.vlgmr.msra.gmra.mxu2 %vm501_vm1, %v3776_v0 }
0x2148   : > { %v3851_v5 = vpop.permute.xlu2 %3850 }
0x2149   : > { %v3856_v34 = vsel %vm501_vm1, %v3851_v5, 0 }
0x214a   : > { %3865 = vmatpush.bf16.xpose.msra.mxu0 %v3856_v34 }
0x2151   : > { %4539 = vmatmul.msk.bf16.vlgmr.msra.gmra.mxu0 %vm501_vm1, %v3849_v15 }
0x2179   : > { %v3792_v6 = vpop.f32.mrf.mxu2 }
0x217a   : > { %v3796_v37 = vsel %vm2021_vm7, %v3792_v6, -inf }
0x217b   : > { %3797 = vmax.xlane.f32.xlu0 %v3796_v37 }
0x2181   : > { %v3794_v43 = vpop.f32.mrf.mxu2 }
0x21ce   : > { %v3867_v10 = vpop.f32.mrf.mxu0 }
0x21cf   : > { %v3871_v48 = vsel %vm2021_vm7, %v3867_v10, -inf }
0x21d0   : > { %3872 = vmax.xlane.f32.xlu2 %v3871_v48 }
0x21d6   : > { %v3869_v17 = vpop.f32.mrf.mxu0 }
0x21e8   : > { %3809 = vrot.lane.b32.xlu2 %v5875_v13, %s6008_s30 }
0x21ee   : > { %v3798_v24 = vpop.xlane.xlu0 %3797 }
0x21ef   : > { %v3799_v23 = vsub.f32 %v3792_v6, %v3798_v24 }
0x21f0   : > { %3998 = vrot.lane.b32.xlu2 %v5875_v13, %s6011_s22 }
0x21f1   : > { %v3800_v16 = vmul.f32 1.442695, %v3799_v23 }
0x21f3   : > { %4767 = vpow2.f32 %v3800_v16 }
0x21f9   : > { %v4768_v1 = vpop.eup %4767 }
0x21fa   : > { %v3802_v26 = vsel %vm2021_vm7, %v4768_v1, 0.0 }
0x21fb   : > { %3803 = vadd.xlane.f32.xlu1 %v3802_v26 }
0x2214   : > { %3883 = vrot.lane.b32.xlu1 %v5875_v13, %s6010_s10 }
0x221c   : > { %3996 = vrot.lane.b32.xlu1 %v5713_v25, %s6003_s16 }
0x2243   : > { %v3873_v32 = vpop.xlane.xlu2 %3872 }
0x2244   : > { %v3874_v60 = vsub.f32 %v3867_v10, %v3873_v32 }
0x2246   : > { %v3875_v59 = vmul.f32 1.442695, %v3874_v60 }
0x2248   : > { %4769 = vpow2.f32 %v3875_v59 }
0x224b   : > { %v3810_v49 = vpop.permute.xlu2 %3809 }
0x224c   : > { %v3815_v57 = vand.u32 %v3810_v49, %v5414_v47 }
0x224e   : > { %v4770_v4 = vpop.eup %4769  ;;  %3824 = vmatpush.bf16.msrb.mxu3 %v3815_v57 }
0x224f   : > { %v3877_v54 = vsel %vm2021_vm7, %v4770_v4, 0.0 }
0x2250   : > { %3878 = vadd.xlane.f32.xlu0 %v3877_v54 }
0x2252   : > { %3915 = vmatpush.bf16.msra.mxu3 %v5421_v20 }
0x2253   : > { %v3999_v14 = vpop.permute.xlu2 %3998 }
0x2254   : > { %v4004_v38 = vsel %vm501_vm1, %v3999_v14, 0 }
0x2264   : > { %3924 = vrot.lane.b32.xlu0 %v5875_v13, %s6006_s26 }
0x226c   : > { %3922 = vrot.lane.b32.xlu0 %v5713_v25, %s6002_s9 }
0x226e   : > { %v3804_v7 = vpop.xlane.xlu1 %3803 }
0x226f   : > { %4771 = vrcp.f32 %v3804_v7 }
0x2275   : > { %v4772_v18 = vpop.eup %4771 }
0x2276   : > { %v3806_v56 = vmul.f32 %v4772_v18, %v4768_v1 }
0x2278   : > { %v3807_v42 = vpack.c.bf16 %v3806_v56, %v3806_v56 }
0x227a   : > { %4537 = vmatmul.msk.bf16.vlgmr.msrb.gmra.mxu3 %vm2021_vm7, %v3807_v42 }
0x227b   : > { %4013 = vmatpush.bf16.xpose.msrb.mxu3 %v4004_v38 }
0x2286   : > { %v3884_v9 = vpop.permute.xlu1 %3883 }
0x2287   : > { %v3889_v20 = vand.u32 %v3884_v9, %v5414_v47 }
0x2289   : > { %3898 = vmatpush.bf16.msrb.mxu2 %v3889_v20 }
0x228d   : > { %3989 = vmatpush.bf16.msra.mxu2 %v5471_v51 }
0x228e   : > { %v3997_v44 = vpop.permute.xlu1 %3996 }
0x22c3   : > { %v3879_v28 = vpop.xlane.xlu0 %3878 }
0x22c4   : > { %4773 = vrcp.f32 %v3879_v28 }
0x22ca   : > { %v4774_v25 = vpop.eup %4773 }
0x22cb   : > { %v3881_v22 = vmul.f32 %v4774_v25, %v4770_v4 }
0x22cd   : > { %v3882_v12 = vpack.c.bf16 %v3881_v22, %v3881_v22 }
0x22cf   : > { %4540 = vmatmul.msk.bf16.vlgmr.msrb.gmra.mxu2 %vm2021_vm7, %v3882_v12 }
0x22d0   : > { %4094 = vmatpush.bf16.msrb.mxu2 %v4811_v46 }
0x22d4   : > { %4095 = vmatpush.bf16.msrb.mxu2 %v4812_v11 }
0x22d6   : > { %v3925_v29 = vpop.permute.xlu0 %3924 }
0x22d7   : > { %v3930_v51 = vsel %vm501_vm1, %v3925_v29, 0 }
0x22d8   : > { %3939 = vmatpush.bf16.xpose.msra.mxu1 %v3930_v51 }
0x22de   : > { %v3923_v58 = vpop.permute.xlu0 %3922 }
0x22fd   : > { %v3826_v35 = vpop.f32.mrf.mxu3 }
0x22fe   : > { %v3830_v61 = vpack.c.bf16 %v3826_v35, %v3826_v35 }
0x2300   : > { %4538 = vmatmul.msk.bf16.vlgmr.msrb.gmra.mxu1 %vm501_vm1, %v3830_v61 }
0x2305   : > { %v3828_v19 = vpop.f32.mrf.mxu3 }
0x2310   : > { %4542 = vmatmul.msk.bf16.vlgmr.msra.gmra.mxu1 %vm501_vm1, %v3923_v58 }
0x2352   : > { %v3900_v30 = vpop.f32.mrf.mxu2 }
0x2353   : > { %v3904_v21 = vpack.c.bf16 %v3900_v30, %v3900_v30 }
0x2355   : > { %4541 = vmatmul.msk.bf16.vlgmr.msra.gmra.mxu3 %vm501_vm1, %v3904_v21 }
0x2356   : > { %4108 = vmatpush.bf16.msra.mxu3 %v4813_v39 }
0x235a   : > { %v3902_v52 = vpop.f32.mrf.mxu2  ;;  %4109 = vmatpush.bf16.msra.mxu3 %v4814_v31 }
0x235e   : > { %4110 = vmatpush.bf16.msra.mxu3 %v4815_v8 }
0x2362   : > { %4111 = vmatpush.bf16.msra.mxu3 %v4816_v36 }
0x2365   : > { %4545 = vmatmul.msk.bf16.vlgmr.msrb.gmra.mxu3 %vm501_vm1, %v3997_v44 }
0x2366   : > { %4112 = vmatpush.bf16.msra.mxu3 %v4817_v33 }
0x236a   : > { %4113 = vmatpush.bf16.msra.mxu3 %v4818_v55 }
0x237d   : > { %v3843_v2 = vpop.f32.mrf.mxu1 }
0x237e   : > { %v3847_v15 = vadd.f32 %v3843_v2, %v5446_v62 }
0x2385   : > { %v3845_v45 = vpop.f32.mrf.mxu1 }
0x238d   : > { %v3941_v0 = vpop.f32.mrf.mxu1 }
0x238e   : > { %v3945_v5 = vsel %vm2021_vm7, %v3941_v0, -inf }
0x238f   : > { %3946 = vmax.xlane.f32.xlu2 %v3945_v5 }
0x2395   : > { %v3943_v34 = vpop.f32.mrf.mxu1 }
0x23a7   : > { %3957 = vrot.lane.b32.xlu2 %v5875_v13, %s6005_s14 }
0x23d8   : > { %v3917_v6 = vpop.f32.mrf.mxu3 }
0x23d9   : > { %v3921_v37 = vadd.f32 %v3917_v6, %v3847_v15 }
0x23e0   : > { %v3919_v43 = vpop.f32.mrf.mxu3 }
0x23e8   : > { %v4015_v10 = vpop.f32.mrf.mxu3 }
0x23e9   : > { %v4019_v48 = vsel %vm2021_vm7, %v4015_v10, -inf }
0x23ea   : > { %4020 = vmax.xlane.f32.xlu0 %v4019_v48 }
0x23f0   : > { %v4017_v17 = vpop.f32.mrf.mxu3 }
0x2402   : > { %v3947_v24 = vpop.xlane.xlu2 %3946 }
0x2403   : > { %v3948_v23 = vsub.f32 %v3941_v0, %v3947_v24 }
0x2405   : > { %v3949_v16 = vmul.f32 1.442695, %v3948_v23 }
0x2407   : > { %4775 = vpow2.f32 %v3949_v16 }
0x240a   : > { %v3958_v1 = vpop.permute.xlu2 %3957 }
0x240b   : > { %v3963_v26 = vand.u32 %v3958_v1, %v5414_v47 }
0x240d   : > { %v4776_v32 = vpop.eup %4775  ;;  %3972 = vmatpush.bf16.msrb.mxu0 %v3963_v26 }
0x240e   : > { %v3951_v60 = vsel %vm2021_vm7, %v4776_v32, 0.0 }
0x240f   : > { %3952 = vadd.xlane.f32.xlu1 %v3951_v60 }
0x2411   : > { %4063 = vmatpush.bf16.msra.mxu0 %v5490_v27 }
0x2428   : > { %4031 = vrot.lane.b32.xlu1 %v5875_v13, %s6007_s27 }
0x245d   : > { %v4021_v62 = vpop.xlane.xlu0 %4020 }
0x245e   : > { %v4022_v59 = vsub.f32 %v4015_v10, %v4021_v62 }
0x2460   : > { %v4023_v49 = vmul.f32 1.442695, %v4022_v59 }
0x2462   : > { %4777 = vpow2.f32 %v4023_v49 }
0x2468   : > { %v4778_v57 = vpop.eup %4777 }
0x2469   : > { %v4025_v4 = vsel %vm2021_vm7, %v4778_v57, 0.0 }
0x246a   : > { %4026 = vadd.xlane.f32.xlu0 %v4025_v4 }
0x2482   : > { %v3953_v54 = vpop.xlane.xlu1 %3952 }
0x2483   : > { %4779 = vrcp.f32 %v3953_v54 }
0x2489   : > { %v4780_v7 = vpop.eup %4779 }
0x248a   : > { %v3955_v18 = vmul.f32 %v4780_v7, %v4776_v32 }
0x248c   : > { %v3956_v56 = vpack.c.bf16 %v3955_v18, %v3955_v18 }
0x248e   : > { %4543 = vmatmul.msk.bf16.vlgmr.msrb.gmra.mxu0 %vm2021_vm7, %v3956_v56 }
0x249a   : > { %v4032_v27 = vpop.permute.xlu1 %4031 }
0x249b   : > { %v4037_v14 = vand.u32 %v4032_v27, %v5414_v47 }
0x249d   : > { %4046 = vmatpush.bf16.msrb.mxu1 %v4037_v14 }
0x24dd   : > { %v4027_v13 = vpop.xlane.xlu0 %4026 }
0x24de   : > { %4781 = vrcp.f32 %v4027_v13 }
0x24e4   : > { %v4782_v42 = vpop.eup %4781 }
0x24e5   : > { %v4029_v38 = vmul.f32 %v4782_v42, %v4778_v57 }
0x24e7   : > { %v4030_v9 = vpack.c.bf16 %v4029_v38, %v4029_v38 }
0x24e9   : > { %4546 = vmatmul.msk.bf16.vlgmr.msrb.gmra.mxu1 %vm2021_vm7, %v4030_v9 }
0x250b   : > { %v3974_v20 = vpop.f32.mrf.mxu0 }
0x250c   : > { %v3978_v28 = vpack.c.bf16 %v3974_v20, %v3974_v20 }
0x250e   : > { %4544 = vmatmul.msk.bf16.vlgmr.msra.gmra.mxu2 %vm501_vm1, %v3978_v28 }
0x2513   : > { %v3976_v25 = vpop.f32.mrf.mxu0 }
0x2566   : > { %v4048_v22 = vpop.f32.mrf.mxu1 }
0x2567   : > { %v4052_v12 = vpack.c.bf16 %v4048_v22, %v4048_v22 }
0x2569   : > { %4547 = vmatmul.msk.bf16.vlgmr.msra.gmra.mxu0 %vm501_vm1, %v4052_v12 }
0x256e   : > { %v4050_v46 = vpop.f32.mrf.mxu1 }
0x2591   : > { %v3991_v47 = vpop.f32.mrf.mxu2 }
0x2592   : > { %v3995_v11 = vadd.f32 %v3991_v47, %v3921_v37 }
0x2599   : > { %v3993_v29 = vpop.f32.mrf.mxu2 }
0x25e6   : > { %v4065_v51 = vpop.f32.mrf.mxu0 }
0x25e7   : > { %v4069_v35 = vadd.f32 %v4065_v51, %v3995_v11 }
0x25e9   : > { %v4070_v61 = vmul.f32 %v4069_v35, %v2313_v50 }
0x25eb   : > { %v4072_v19 = vrot.slane %v4070_v61, 5 }
0x25ed   : > { %v4074_v58 = vadd.f32 %v4072_v19, %v5676_v63  ;;  %v4075_v30 = vadd.f32 %v4072_v19, %v5678_v41 }
0x25ee   : > { %v4067_v21 = vpop.f32.mrf.mxu0 }
0x25ef   : > { %v4076_v39 = vpack.c.bf16 %v4075_v30, %v4074_v58 }
0x25f1   : > { %v4078_v52 = vshrl.u32 %v4076_v39, 16  ;;  %v4081_v31 = vshll.u32 %v4076_v39, 16 }
0x25f3   : > { %v4080_v8 = vrot.slane %v4078_v52, 1  ;;  %v4083_v36 = vrot.slane %v4081_v31, 2 }
0x25f5   : > { %v4084_v44 = vor.u32 %v4083_v36, %v4080_v8 }
0x25f7   : > { %4548 = vmatmul.msk.bf16.vlgmr.msrb.gmra.mxu2 %vm478_vm0, %v4084_v44 }
0x267a   : > { %v4097_v33 = vpop.f32.mrf.mxu2 }
0x267b   : > { %v4098_v50 = vadd.f32 %v4097_v33, %v5546_v40 }
0x267d   : > { %v4101_v55 = vmax.f32 %v4098_v50, 0.0 }
0x267f   : > { %v4102_v2 = vpack.c.bf16 %v4101_v55, %v4101_v55 }
0x2681   : > { %4549 = vmatmul.msk.bf16.vlgmr.msra.gmra.mxu3 %vm893_vm3, %v4102_v2 }
0x2682   : > { %v4099_v63 = vpop.f32.mrf.mxu2 }
0x2704   : > { %v4115_v41 = vpop.f32.mrf.mxu3 }
0x2705   : > { %v4116_v45 = vadd.f32 %v4115_v41, %v5559_v3 }
0x2707   : > { %v4119_v0 = vmul.f32 %v4116_v45, %v2413_v53 }
0x2709   : > { %v4121_v5 = vrot.slane %v4119_v0, 5 }
0x270b   : > { %v4123_v34 = vadd.f32 %v4121_v5, %v4074_v58  ;;  %v4124_v15 = vadd.f32 %v4121_v5, %v4075_v30 }
0x270c   : > { %v4117_v6 = vpop.f32.mrf.mxu3 }
0x270d   : > { %4551 = vst.msk [vmem:[%s5380_s25 + $0x10] sm:$0xf8] %vm2422_vm10, %v4123_v34 }
0x270e   : > { %4552 = vst.msk [vmem:[%s5380_s25 + $0x18] sm:$0x7] %vm2420_vm6, %v4124_v15 }
0x270f PF: > { %s18_s24 = sadd.s32 1, %s4844_s24  }
0x2710   : > { %p15_p7 = scmp.ge.s32.totalorder %s18_s24, 4  }
0x2712   :  { %17 = sbr.rel (!%p15_p7) target bundleno = 3 (0x3), region = 99 }
0x2717   :  { %4153 = vsyncpa [#allocation3], 1 }
0x2718   :  { %4155 = vsyncpa [#allocation3 + $0x1], 1 }

</bundles_post_ra>
